<compile_context>
chip_gen: v7x
topology: tpu7x:2x2x1
jax: 0.10.0
libtpu: 0.0.40
codegen_flags: <defaults>
</compile_context>

<pallas_src>
import functools

import jax
import jax.numpy as jnp
from jax.experimental import pallas as pl
from jax.experimental.pallas import tpu as pltpu


# ----------------------------------------------------------------------------
# Bilinear x2 upsample (align_corners=False) via interleave math (no gathers).
# Stays in the XLA wrapper; result is materialized in bf16.
# ----------------------------------------------------------------------------
def _upsample2_axis_interleave(x, axis):
    n = x.shape[axis]

    def sl(a, b):
        idx = [slice(None)] * x.ndim
        idx[axis] = slice(a, b)
        return x[tuple(idx)]

    prev_ = jnp.concatenate([sl(0, 1), sl(0, n - 1)], axis=axis)   # clamped x[i-1]
    next_ = jnp.concatenate([sl(1, n), sl(n - 1, n)], axis=axis)   # clamped x[i+1]
    even = 0.25 * prev_ + 0.75 * x        # output index 2i
    odd = 0.75 * x + 0.25 * next_         # output index 2i+1
    out = jnp.stack([even, odd], axis=axis + 1)
    return out.reshape(x.shape[:axis] + (2 * n,) + x.shape[axis + 1:])


def upsample2_bilinear_nhwc(x):
    x = _upsample2_axis_interleave(x, axis=1)
    x = _upsample2_axis_interleave(x, axis=2)
    return x


# ----------------------------------------------------------------------------
# Kernel: per-tile halo staging + bf16 im2col 3x3 conv (f32 accumulation)
#         + single-pass (skip + bias + LeakyReLU) epilogue, lane-dense store.
# ----------------------------------------------------------------------------
def _upsample_conv_bn_lrelu_kernel(*refs, th, hp, wp, cin, cout, has_skip):
    if has_skip:
        (x_ref, w_ref, skip_ref, bias_ref, out_ref, pad_ref, patch_ref) = refs
    else:
        (x_ref, w_ref, bias_ref, out_ref, pad_ref, patch_ref) = refs
        skip_ref = None

    bf = x_ref.dtype
    t = pl.program_id(1)
    row0 = pl.multiple_of(t * th, th)

    # ---- per-tile halo staging: O(th) scratch, border-only zeroing --------
    zero_col = jnp.zeros((th + 2, 1, cin), bf)
    pad_ref[:, 0:1, :] = zero_col                       # left conv pad column
    pad_ref[:, wp + 1:wp + 2, :] = zero_col             # right conv pad column

    # Boundary halo rows are read clamped and zeroed via a scalar mask when the
    # tile touches the image border (single straight-line path, no pl.when).
    top_live = jnp.where(row0 > 0, 1.0, 0.0).astype(bf)
    bot_live = jnp.where(row0 + th < hp, 1.0, 0.0).astype(bf)
    top = x_ref[0, pl.ds(jnp.maximum(row0 - 1, 0), 1), :, :] * top_live
    bot = x_ref[0, pl.ds(jnp.minimum(row0 + th, hp - 1), 1), :, :] * bot_live

    pad_ref[0:1, 1:wp + 1, :] = top
    pad_ref[1:th + 1, 1:wp + 1, :] = x_ref[0, pl.ds(row0, th), :, :]
    pad_ref[th + 1:th + 2, 1:wp + 1, :] = bot

    # ---- im2col (bf16): pack the 9 taps along channels -> one K=9*Cin matmul
    # TODO(synk): for Cin >= 32 nine accumulating dots (no patch duplication)
    #             would be preferable; im2col is kept for small Cin.
    for kh in range(3):
        for kw in range(3):
            k = kh * 3 + kw
            patch_ref[:, :, k * cin:(k + 1) * cin] = \
                pad_ref[kh:kh + th, kw:kw + wp, :]

    acc = jax.lax.dot_general(
        patch_ref[...], w_ref[...],
        dimension_numbers=(((2,), (0,)), ((), ())),
        preferred_element_type=jnp.float32)             # (th, wp, cout), BN scale in weights

    acc = acc + bias_ref[...]                           # folded BN bias, (1, cout) broadcast

    # ---- single-pass epilogue + store (skip is already BN-scaled) ---------
    # TODO(synk): the (th, wp, cout) -> (th, wp*cout) repack is done with
    #             per-column-group stores (Mosaic has no general minor-dim
    #             merge reshape); each group is written exactly once.
    for w in range(wp):
        col = acc[:, w, :]
        if has_skip:
            col = col + skip_ref[0, :, w * cout:(w + 1) * cout].astype(jnp.float32)
        out_ref[0, :, w * cout:(w + 1) * cout] = \
            jnp.where(col >= 0.0, col, 0.1 * col)       # LeakyReLU(0.1)


def _pick_row_tile(hp, flat_w, n_batch):
    """Row tile for the output block.

    Targets a <= ~2 MiB f32 output block (amortizes the ~0.35 us per-step
    overhead), avoids row tiling when the whole image already fits, but keeps
    >= 4 parallel grid chunks so both v7x TensorCores get work.  Tiles are
    multiples of 8 (sublane) dividing hp.
    """
    if hp % 8 != 0:
        return hp                                       # single block == full dim
    divisors = [d for d in range(8, hp + 1, 8) if hp % d == 0]
    budget = 2 * 1024 * 1024
    fitting = [d for d in divisors if d * flat_w * 4 <= budget]
    th = max(fitting) if fitting else min(divisors)
    while n_batch * (hp // th) < 4 and th > 8 and (th // 2) in divisors:
        th //= 2
    return th


def upsample_block_forward(features_nchw, new_features_nchw, params):
    """Forward pass of UpsampleBlock.

    features_nchw:     (N, Cin, H, W)
    new_features_nchw: (N, Cout, 2H, 2W) or None
    returns:           (N, Cout, 2H, 2W)
    """
    w = params["conv_w"]                                   # (Cout, Cin, 3, 3)
    gamma, beta = params["bn_gamma"], params["bn_beta"]
    rmean, rvar, eps = params["bn_mean"], params["bn_var"], params["bn_eps"]

    n, cin, h, wdim = features_nchw.shape
    cout = w.shape[0]
    hp, wp = 2 * h, 2 * wdim
    flat_w = wp * cout

    # Folded eval-mode BatchNorm affine.
    scale = (gamma / jnp.sqrt(rvar + eps)).astype(jnp.float32)           # (Cout,)
    bias_row = (beta - rmean * scale).reshape(1, cout).astype(jnp.float32)

    # NCHW -> NHWC, bilinear x2 upsample (fused XLA producer), bf16 in HBM.
    x = jnp.transpose(features_nchw, (0, 2, 3, 1)).astype(jnp.float32)
    x_up = upsample2_bilinear_nhwc(x).astype(jnp.bfloat16)               # (N, 2H, 2W, Cin)

    # Conv weights (Cout,Cin,3,3) -> (9*Cin, Cout) with the BN scale folded in.
    w_mat = (jnp.transpose(w, (2, 3, 1, 0)).reshape(9 * cin, cout)
             * scale[None, :]).astype(jnp.bfloat16)

    th = _pick_row_tile(hp, flat_w, n)
    has_skip = new_features_nchw is not None

    kernel = functools.partial(
        _upsample_conv_bn_lrelu_kernel,
        th=th, hp=hp, wp=wp, cin=cin, cout=cout, has_skip=has_skip)

    in_specs = [
        pl.BlockSpec((1, hp, wp, cin), lambda b, t: (b, 0, 0, 0)),  # fetched once per b
        pl.BlockSpec((9 * cin, cout), lambda b, t: (0, 0)),
    ]
    args = [x_up, w_mat]
    if has_skip:
        # BN scale folded into the skip inside the transpose+cast pass XLA
        # already runs, so (conv + skip) * scale + bias is preserved exactly.
        skip_flat = (jnp.transpose(new_features_nchw, (0, 2, 3, 1)) * scale) \
            .astype(jnp.bfloat16).reshape(n, hp, flat_w)
        in_specs.append(pl.BlockSpec((1, th, flat_w), lambda b, t: (b, t, 0)))
        args.append(skip_flat)
    in_specs.append(pl.BlockSpec((1, cout), lambda b, t: (0, 0)))
    args.append(bias_row)

    out_flat = pl.pallas_call(
        kernel,
        out_shape=jax.ShapeDtypeStruct((n, hp, flat_w), jnp.float32),
        grid_spec=pltpu.PrefetchScalarGridSpec(
            num_scalar_prefetch=0,
            grid=(n, hp // th),
            in_specs=in_specs,
            out_specs=pl.BlockSpec((1, th, flat_w), lambda b, t: (b, t, 0)),
            scratch_shapes=[
                pltpu.VMEM((th + 2, wp + 2, cin), jnp.bfloat16),    # halo tile
                pltpu.VMEM((th, wp, 9 * cin), jnp.bfloat16),        # im2col patch
            ]),
        compiler_params=pltpu.CompilerParams(
            dimension_semantics=("parallel", "parallel"),
            vmem_limit_bytes=48 * 1024 * 1024),                     # <= v7x 64 MiB physical
    )(*args)

    out = out_flat.reshape(n, hp, wp, cout)
    # TODO(synk): if downstream consumes NHWC (or the flat layout), drop the
    #             entry/exit transposes to save two full HBM round trips.
    return jnp.transpose(out, (0, 3, 1, 2))


# ----------------------------------------------------------------------------
# Pure-JAX reference (independent gather-based upsample, HIGHEST-precision conv)
# ----------------------------------------------------------------------------
def _upsample2_axis_gather(x, axis):
    size = x.shape[axis]
    dst = jnp.arange(2 * size, dtype=jnp.float32)
    src = jnp.maximum((dst + 0.5) * 0.5 - 0.5, 0.0)
    i0 = jnp.floor(src).astype(jnp.int32)
    i1 = jnp.minimum(i0 + 1, size - 1)
    w1 = src - i0.astype(jnp.float32)
    w0 = 1.0 - w1
    g0 = jnp.take(x, i0, axis=axis)
    g1 = jnp.take(x, i1, axis=axis)
    bshape = [1] * x.ndim
    bshape[axis] = 2 * size
    return g0 * w0.reshape(bshape) + g1 * w1.reshape(bshape)


def reference(features_nchw, new_features_nchw, params):
    x = jnp.transpose(features_nchw, (0, 2, 3, 1))
    x = _upsample2_axis_gather(x, 1)
    x = _upsample2_axis_gather(x, 2)
    y = jax.lax.conv_general_dilated(
        x, jnp.transpose(params["conv_w"], (2, 3, 1, 0)),
        window_strides=(1, 1), padding="SAME",
        dimension_numbers=("NHWC", "HWIO", "NHWC"),
        precision=jax.lax.Precision.HIGHEST)
    if new_features_nchw is not None:
        y = y + jnp.transpose(new_features_nchw, (0, 2, 3, 1))
    scale = params["bn_gamma"] / jnp.sqrt(params["bn_var"] + params["bn_eps"])
    bias = params["bn_beta"] - params["bn_mean"] * scale
    y = y * scale + bias
    y = jnp.where(y >= 0, y, 0.1 * y)
    return jnp.transpose(y, (0, 3, 1, 2))


if __name__ == "__main__":
    key = jax.random.PRNGKey(0)
    k1, k2, k3, k4, k5, k6, k7 = jax.random.split(key, 7)

    N, Cin, Cout, H, W = 2, 4, 8, 8, 8          # upsampled spatial = 16 x 16
    features = jax.random.normal(k1, (N, Cin, H, W), jnp.float32)
    new_features = jax.random.normal(k2, (N, Cout, 2 * H, 2 * W), jnp.float32)

    bound = float(1.0 / (Cin * 3 * 3) ** 0.5)   # PyTorch-style uniform init bound
    conv_w = jax.random.uniform(k3, (Cout, Cin, 3, 3), jnp.float32,
                                minval=-bound, maxval=bound)

    params = dict(
        conv_w=conv_w,
        bn_gamma=jax.random.uniform(k4, (Cout,), jnp.float32, minval=0.5, maxval=1.2),
        bn_beta=0.1 * jax.random.normal(k5, (Cout,), jnp.float32),
        bn_mean=0.1 * jax.random.normal(k6, (Cout,), jnp.float32),
        bn_var=jax.random.uniform(k7, (Cout,), jnp.float32, minval=0.5, maxval=1.5),
        bn_eps=1e-5,
    )

    forward = jax.jit(upsample_block_forward)

    # With skip connection (grid = (2 batches, 2 row tiles) -> exercises halo).
    out = jax.block_until_ready(forward(features, new_features, params))
    ref = reference(features, new_features, params)
    assert out.shape == (N, Cout, 2 * H, 2 * W)
    # Tolerance accounts for bf16 operands / bf16 staging (f32 accumulation).
    assert jnp.allclose(out, ref, atol=6e-2, rtol=6e-2), \
        float(jnp.max(jnp.abs(out - ref)))

    # Without skip connection (separate kernel variant; no zeros DMA).
    out2 = jax.block_until_ready(forward(features, None, params))
    ref2 = reference(features, None, params)
    assert jnp.allclose(out2, ref2, atol=6e-2, rtol=6e-2), \
        float(jnp.max(jnp.abs(out2 - ref2)))

    print("KERNEL_OK")
</pallas_src>

<mosaic_0001>
module attributes {stable_mosaic.version = 11 : i64} {
  func.func @_upsample_conv_bn_lrelu_kernel(%arg0: i32, %arg1: i32, %arg2: memref<1x16x16x4xbf16, #tpu.memory_space<vmem>>, %arg3: memref<36x8xbf16, #tpu.memory_space<vmem>>, %arg4: memref<1x8x128xbf16, #tpu.memory_space<vmem>>, %arg5: memref<1x8xf32, #tpu.memory_space<vmem>>, %arg6: memref<1x8x128xf32, #tpu.memory_space<vmem>>, %arg7: memref<10x18x4xbf16, #tpu.memory_space<vmem>>, %arg8: memref<8x16x36xbf16, #tpu.memory_space<vmem>>) attributes {dimension_semantics = [#tpu.dimension_semantics<parallel>, #tpu.dimension_semantics<parallel>], iteration_bounds = array<i64: 2, 2>, scalar_prefetch = 0 : i64, scratch_operands = 2 : i64, tpu.core_type = #tpu.core_type<tc>, window_params = [{transform_indices = @transform_0, window_bounds = array<i64: 1, 16, 16, 4>}, {pipeline_mode = #tpu.pipeline_mode<synchronous>, transform_indices = @transform_1, window_bounds = array<i64: 36, 8>}, {transform_indices = @transform_2, window_bounds = array<i64: 1, 8, 128>}, {pipeline_mode = #tpu.pipeline_mode<synchronous>, transform_indices = @transform_3, window_bounds = array<i64: 1, 8>}, {transform_indices = @transform_4, window_bounds = array<i64: 1, 8, 128>}]} {
    %c8_i32 = arith.constant 8 : i32
    %0 = arith.muli %arg1, %c8_i32 : i32
    %1 = tpu.assume_multiple %0, 8 : i32
    %cst = arith.constant 0.000000e+00 : bf16
    %2 = vector.broadcast %cst : bf16 to vector<10x1x4xbf16>
    %c0 = arith.constant 0 : index
    %c0_0 = arith.constant 0 : index
    %c0_1 = arith.constant 0 : index
    %3 = vector.load %arg7[%c0, %c0_0, %c0_1] : memref<10x18x4xbf16, #tpu.memory_space<vmem>>, vector<10x1x4xbf16>
    tpu.vector_store %arg7[%c0, %c0_0, %c0_1], %2 {strides = array<i32>} : memref<10x18x4xbf16, #tpu.memory_space<vmem>>, vector<10x1x4xbf16>,
    %c0_2 = arith.constant 0 : index
    %c17 = arith.constant 17 : index
    %c0_3 = arith.constant 0 : index
    %4 = vector.load %arg7[%c0_2, %c17, %c0_3] : memref<10x18x4xbf16, #tpu.memory_space<vmem>>, vector<10x1x4xbf16>
    tpu.vector_store %arg7[%c0_2, %c17, %c0_3], %2 {strides = array<i32>} : memref<10x18x4xbf16, #tpu.memory_space<vmem>>, vector<10x1x4xbf16>,
    %c0_i32 = arith.constant 0 : i32
    %5 = arith.cmpi sgt, %1, %c0_i32 : i32
    %cst_4 = arith.constant 1.000000e+00 : f32
    %cst_5 = arith.constant 0.000000e+00 : f32
    %6 = arith.select %5, %cst_4, %cst_5 : f32
    %7 = arith.truncf %6 : f32 to bf16
    %c8_i32_6 = arith.constant 8 : i32
    %8 = arith.addi %1, %c8_i32_6 : i32
    %c16_i32 = arith.constant 16 : i32
    %9 = arith.cmpi slt, %8, %c16_i32 : i32
    %cst_7 = arith.constant 1.000000e+00 : f32
    %cst_8 = arith.constant 0.000000e+00 : f32
    %10 = arith.select %9, %cst_7, %cst_8 : f32
    %11 = arith.truncf %10 : f32 to bf16
    %c1_i32 = arith.constant 1 : i32
    %12 = arith.subi %1, %c1_i32 : i32
    %c0_i32_9 = arith.constant 0 : i32
    %13 = arith.maxsi %12, %c0_i32_9 : i32
    %c0_10 = arith.constant 0 : index
    %14 = arith.index_cast %13 : i32 to index
    %c0_11 = arith.constant 0 : index
    %c0_12 = arith.constant 0 : index
    %15 = vector.load %arg2[%c0_10, %14, %c0_11, %c0_12] : memref<1x16x16x4xbf16, #tpu.memory_space<vmem>>, vector<1x1x16x4xbf16>
    %16 = vector.shape_cast %15 : vector<1x1x16x4xbf16> to vector<1x16x4xbf16>
    %17 = vector.broadcast %7 : bf16 to vector<1x16x4xbf16>
    %18 = arith.mulf %16, %17 : vector<1x16x4xbf16>
    %c8_i32_13 = arith.constant 8 : i32
    %19 = arith.addi %1, %c8_i32_13 : i32
    %c15_i32 = arith.constant 15 : i32
    %20 = arith.minsi %19, %c15_i32 : i32
    %c0_14 = arith.constant 0 : index
    %21 = arith.index_cast %20 : i32 to index
    %c0_15 = arith.constant 0 : index
    %c0_16 = arith.constant 0 : index
    %22 = vector.load %arg2[%c0_14, %21, %c0_15, %c0_16] : memref<1x16x16x4xbf16, #tpu.memory_space<vmem>>, vector<1x1x16x4xbf16>
    %23 = vector.shape_cast %22 : vector<1x1x16x4xbf16> to vector<1x16x4xbf16>
    %24 = vector.broadcast %11 : bf16 to vector<1x16x4xbf16>
    %25 = arith.mulf %23, %24 : vector<1x16x4xbf16>
    %c0_17 = arith.constant 0 : index
    %c1 = arith.constant 1 : index
    %c0_18 = arith.constant 0 : index
    %26 = vector.load %arg7[%c0_17, %c1, %c0_18] : memref<10x18x4xbf16, #tpu.memory_space<vmem>>, vector<1x16x4xbf16>
    tpu.vector_store %arg7[%c0_17, %c1, %c0_18], %18 {strides = array<i32>} : memref<10x18x4xbf16, #tpu.memory_space<vmem>>, vector<1x16x4xbf16>,
    %c0_19 = arith.constant 0 : index
    %27 = arith.index_cast %1 : i32 to index
    %c0_20 = arith.constant 0 : index
    %c0_21 = arith.constant 0 : index
    %28 = vector.load %arg2[%c0_19, %27, %c0_20, %c0_21] : memref<1x16x16x4xbf16, #tpu.memory_space<vmem>>, vector<1x8x16x4xbf16>
    %29 = vector.shape_cast %28 : vector<1x8x16x4xbf16> to vector<8x16x4xbf16>
    %c1_22 = arith.constant 1 : index
    %c1_23 = arith.constant 1 : index
    %c0_24 = arith.constant 0 : index
    %30 = vector.load %arg7[%c1_22, %c1_23, %c0_24] : memref<10x18x4xbf16, #tpu.memory_space<vmem>>, vector<8x16x4xbf16>
    tpu.vector_store %arg7[%c1_22, %c1_23, %c0_24], %29 {strides = array<i32>} : memref<10x18x4xbf16, #tpu.memory_space<vmem>>, vector<8x16x4xbf16>,
    %c9 = arith.constant 9 : index
    %c1_25 = arith.constant 1 : index
    %c0_26 = arith.constant 0 : index
    %31 = vector.load %arg7[%c9, %c1_25, %c0_26] : memref<10x18x4xbf16, #tpu.memory_space<vmem>>, vector<1x16x4xbf16>
    tpu.vector_store %arg7[%c9, %c1_25, %c0_26], %25 {strides = array<i32>} : memref<10x18x4xbf16, #tpu.memory_space<vmem>>, vector<1x16x4xbf16>,
    %c0_27 = arith.constant 0 : index
    %c0_28 = arith.constant 0 : index
    %c0_29 = arith.constant 0 : index
    %32 = vector.load %arg7[%c0_27, %c0_28, %c0_29] : memref<10x18x4xbf16, #tpu.memory_space<vmem>>, vector<8x16x4xbf16>
    %c0_30 = arith.constant 0 : index
    %c0_31 = arith.constant 0 : index
    %c0_32 = arith.constant 0 : index
    %33 = vector.load %arg8[%c0_30, %c0_31, %c0_32] : memref<8x16x36xbf16, #tpu.memory_space<vmem>>, vector<8x16x4xbf16>
    tpu.vector_store %arg8[%c0_30, %c0_31, %c0_32], %32 {strides = array<i32>} : memref<8x16x36xbf16, #tpu.memory_space<vmem>>, vector<8x16x4xbf16>,
    %c0_33 = arith.constant 0 : index
    %c1_34 = arith.constant 1 : index
    %c0_35 = arith.constant 0 : index
    %34 = vector.load %arg7[%c0_33, %c1_34, %c0_35] : memref<10x18x4xbf16, #tpu.memory_space<vmem>>, vector<8x16x4xbf16>
    %c0_36 = arith.constant 0 : index
    %c0_37 = arith.constant 0 : index
    %c4 = arith.constant 4 : index
    %35 = vector.load %arg8[%c0_36, %c0_37, %c4] : memref<8x16x36xbf16, #tpu.memory_space<vmem>>, vector<8x16x4xbf16>
    tpu.vector_store %arg8[%c0_36, %c0_37, %c4], %34 {strides = array<i32>} : memref<8x16x36xbf16, #tpu.memory_space<vmem>>, vector<8x16x4xbf16>,
    %c0_38 = arith.constant 0 : index
    %c2 = arith.constant 2 : index
    %c0_39 = arith.constant 0 : index
    %36 = vector.load %arg7[%c0_38, %c2, %c0_39] : memref<10x18x4xbf16, #tpu.memory_space<vmem>>, vector<8x16x4xbf16>
    %c0_40 = arith.constant 0 : index
    %c0_41 = arith.constant 0 : index
    %c8 = arith.constant 8 : index
    %37 = vector.load %arg8[%c0_40, %c0_41, %c8] : memref<8x16x36xbf16, #tpu.memory_space<vmem>>, vector<8x16x4xbf16>
    tpu.vector_store %arg8[%c0_40, %c0_41, %c8], %36 {strides = array<i32>} : memref<8x16x36xbf16, #tpu.memory_space<vmem>>, vector<8x16x4xbf16>,
    %c1_42 = arith.constant 1 : index
    %c0_43 = arith.constant 0 : index
    %c0_44 = arith.constant 0 : index
    %38 = vector.load %arg7[%c1_42, %c0_43, %c0_44] : memref<10x18x4xbf16, #tpu.memory_space<vmem>>, vector<8x16x4xbf16>
    %c0_45 = arith.constant 0 : index
    %c0_46 = arith.constant 0 : index
    %c12 = arith.constant 12 : index
    %39 = vector.load %arg8[%c0_45, %c0_46, %c12] : memref<8x16x36xbf16, #tpu.memory_space<vmem>>, vector<8x16x4xbf16>
    tpu.vector_store %arg8[%c0_45, %c0_46, %c12], %38 {strides = array<i32>} : memref<8x16x36xbf16, #tpu.memory_space<vmem>>, vector<8x16x4xbf16>,
    %c1_47 = arith.constant 1 : index
    %c1_48 = arith.constant 1 : index
    %c0_49 = arith.constant 0 : index
    %40 = vector.load %arg7[%c1_47, %c1_48, %c0_49] : memref<10x18x4xbf16, #tpu.memory_space<vmem>>, vector<8x16x4xbf16>
    %c0_50 = arith.constant 0 : index
    %c0_51 = arith.constant 0 : index
    %c16 = arith.constant 16 : index
    %41 = vector.load %arg8[%c0_50, %c0_51, %c16] : memref<8x16x36xbf16, #tpu.memory_space<vmem>>, vector<8x16x4xbf16>
    tpu.vector_store %arg8[%c0_50, %c0_51, %c16], %40 {strides = array<i32>} : memref<8x16x36xbf16, #tpu.memory_space<vmem>>, vector<8x16x4xbf16>,
    %c1_52 = arith.constant 1 : index
    %c2_53 = arith.constant 2 : index
    %c0_54 = arith.constant 0 : index
    %42 = vector.load %arg7[%c1_52, %c2_53, %c0_54] : memref<10x18x4xbf16, #tpu.memory_space<vmem>>, vector<8x16x4xbf16>
    %c0_55 = arith.constant 0 : index
    %c0_56 = arith.constant 0 : index
    %c20 = arith.constant 20 : index
    %43 = vector.load %arg8[%c0_55, %c0_56, %c20] : memref<8x16x36xbf16, #tpu.memory_space<vmem>>, vector<8x16x4xbf16>
    tpu.vector_store %arg8[%c0_55, %c0_56, %c20], %42 {strides = array<i32>} : memref<8x16x36xbf16, #tpu.memory_space<vmem>>, vector<8x16x4xbf16>,
    %c2_57 = arith.constant 2 : index
    %c0_58 = arith.constant 0 : index
    %c0_59 = arith.constant 0 : index
    %44 = vector.load %arg7[%c2_57, %c0_58, %c0_59] : memref<10x18x4xbf16, #tpu.memory_space<vmem>>, vector<8x16x4xbf16>
    %c0_60 = arith.constant 0 : index
    %c0_61 = arith.constant 0 : index
    %c24 = arith.constant 24 : index
    %45 = vector.load %arg8[%c0_60, %c0_61, %c24] : memref<8x16x36xbf16, #tpu.memory_space<vmem>>, vector<8x16x4xbf16>
    tpu.vector_store %arg8[%c0_60, %c0_61, %c24], %44 {strides = array<i32>} : memref<8x16x36xbf16, #tpu.memory_space<vmem>>, vector<8x16x4xbf16>,
    %c2_62 = arith.constant 2 : index
    %c1_63 = arith.constant 1 : index
    %c0_64 = arith.constant 0 : index
    %46 = vector.load %arg7[%c2_62, %c1_63, %c0_64] : memref<10x18x4xbf16, #tpu.memory_space<vmem>>, vector<8x16x4xbf16>
    %c0_65 = arith.constant 0 : index
    %c0_66 = arith.constant 0 : index
    %c28 = arith.constant 28 : index
    %47 = vector.load %arg8[%c0_65, %c0_66, %c28] : memref<8x16x36xbf16, #tpu.memory_space<vmem>>, vector<8x16x4xbf16>
    tpu.vector_store %arg8[%c0_65, %c0_66, %c28], %46 {strides = array<i32>} : memref<8x16x36xbf16, #tpu.memory_space<vmem>>, vector<8x16x4xbf16>,
    %c2_67 = arith.constant 2 : index
    %c2_68 = arith.constant 2 : index
    %c0_69 = arith.constant 0 : index
    %48 = vector.load %arg7[%c2_67, %c2_68, %c0_69] : memref<10x18x4xbf16, #tpu.memory_space<vmem>>, vector<8x16x4xbf16>
    %c0_70 = arith.constant 0 : index
    %c0_71 = arith.constant 0 : index
    %c32 = arith.constant 32 : index
    %49 = vector.load %arg8[%c0_70, %c0_71, %c32] : memref<8x16x36xbf16, #tpu.memory_space<vmem>>, vector<8x16x4xbf16>
    tpu.vector_store %arg8[%c0_70, %c0_71, %c32], %48 {strides = array<i32>} : memref<8x16x36xbf16, #tpu.memory_space<vmem>>, vector<8x16x4xbf16>,
    %c0_72 = arith.constant 0 : index
    %c0_73 = arith.constant 0 : index
    %c0_74 = arith.constant 0 : index
    %50 = vector.load %arg8[%c0_72, %c0_73, %c0_74] : memref<8x16x36xbf16, #tpu.memory_space<vmem>>, vector<8x16x36xbf16>
    %c0_75 = arith.constant 0 : index
    %c0_76 = arith.constant 0 : index
    %51 = vector.load %arg3[%c0_75, %c0_76] : memref<36x8xbf16, #tpu.memory_space<vmem>>, vector<36x8xbf16>
    %cst_77 = arith.constant dense<0.000000e+00> : vector<8x16x8xf32>
    %52 = tpu.matmul %50, %51, %cst_77 {dimension_numbers = #tpu.dot_dimension_numbers<[2], [0], [0, 1], [1], [0, 0, 0, 1, 1, 1], [], []>} : vector<8x16x36xbf16>, vector<36x8xbf16>, vector<8x16x8xf32> -> vector<8x16x8xf32>
    %c0_78 = arith.constant 0 : index
    %c0_79 = arith.constant 0 : index
    %53 = vector.load %arg5[%c0_78, %c0_79] : memref<1x8xf32, #tpu.memory_space<vmem>>, vector<1x8xf32>
    %54 = vector.shape_cast %53 : vector<1x8xf32> to vector<1x1x8xf32>
    %55 = vector.broadcast %54 : vector<1x1x8xf32> to vector<8x16x8xf32>
    %56 = arith.addf %52, %55 : vector<8x16x8xf32>
    %57 = vector.extract_strided_slice %56 {offsets = [0, 0, 0], sizes = [8, 1, 8], strides = [1, 1, 1]} : vector<8x16x8xf32> to vector<8x1x8xf32>
    %58 = vector.shape_cast %57 : vector<8x1x8xf32> to vector<8x8xf32>
    %c0_80 = arith.constant 0 : index
    %c0_81 = arith.constant 0 : index
    %c0_82 = arith.constant 0 : index
    %59 = vector.load %arg4[%c0_80, %c0_81, %c0_82] : memref<1x8x128xbf16, #tpu.memory_space<vmem>>, vector<1x8x8xbf16>
    %60 = vector.shape_cast %59 : vector<1x8x8xbf16> to vector<8x8xbf16>
    %61 = arith.extf %60 : vector<8x8xbf16> to vector<8x8xf32>
    %62 = arith.addf %58, %61 : vector<8x8xf32>
    %cst_83 = arith.constant 0.000000e+00 : f32
    %63 = vector.broadcast %cst_83 : f32 to vector<8x8xf32>
    %64 = arith.cmpf oge, %62, %63 : vector<8x8xf32>
    %cst_84 = arith.constant 1.000000e-01 : f32
    %65 = vector.broadcast %cst_84 : f32 to vector<8x8xf32>
    %66 = arith.mulf %65, %62 : vector<8x8xf32>
    %67 = arith.select %64, %62, %66 : vector<8x8xi1>, vector<8x8xf32>
    %c0_85 = arith.constant 0 : index
    %c0_86 = arith.constant 0 : index
    %c0_87 = arith.constant 0 : index
    %68 = vector.load %arg6[%c0_85, %c0_86, %c0_87] : memref<1x8x128xf32, #tpu.memory_space<vmem>>, vector<1x8x8xf32>
    %69 = vector.shape_cast %68 : vector<1x8x8xf32> to vector<8x8xf32>
    %70 = vector.shape_cast %67 : vector<8x8xf32> to vector<1x8x8xf32>
    tpu.vector_store %arg6[%c0_85, %c0_86, %c0_87], %70 {strides = array<i32>} : memref<1x8x128xf32, #tpu.memory_space<vmem>>, vector<1x8x8xf32>,
    %71 = vector.extract_strided_slice %56 {offsets = [0, 1, 0], sizes = [8, 1, 8], strides = [1, 1, 1]} : vector<8x16x8xf32> to vector<8x1x8xf32>
    %72 = vector.shape_cast %71 : vector<8x1x8xf32> to vector<8x8xf32>
    %c0_88 = arith.constant 0 : index
    %c0_89 = arith.constant 0 : index
    %c8_90 = arith.constant 8 : index
    %73 = vector.load %arg4[%c0_88, %c0_89, %c8_90] : memref<1x8x128xbf16, #tpu.memory_space<vmem>>, vector<1x8x8xbf16>
    %74 = vector.shape_cast %73 : vector<1x8x8xbf16> to vector<8x8xbf16>
    %75 = arith.extf %74 : vector<8x8xbf16> to vector<8x8xf32>
    %76 = arith.addf %72, %75 : vector<8x8xf32>
    %cst_91 = arith.constant 0.000000e+00 : f32
    %77 = vector.broadcast %cst_91 : f32 to vector<8x8xf32>
    %78 = arith.cmpf oge, %76, %77 : vector<8x8xf32>
    %cst_92 = arith.constant 1.000000e-01 : f32
    %79 = vector.broadcast %cst_92 : f32 to vector<8x8xf32>
    %80 = arith.mulf %79, %76 : vector<8x8xf32>
    %81 = arith.select %78, %76, %80 : vector<8x8xi1>, vector<8x8xf32>
    %c0_93 = arith.constant 0 : index
    %c0_94 = arith.constant 0 : index
    %c8_95 = arith.constant 8 : index
    %82 = vector.load %arg6[%c0_93, %c0_94, %c8_95] : memref<1x8x128xf32, #tpu.memory_space<vmem>>, vector<1x8x8xf32>
    %83 = vector.shape_cast %82 : vector<1x8x8xf32> to vector<8x8xf32>
    %84 = vector.shape_cast %81 : vector<8x8xf32> to vector<1x8x8xf32>
    tpu.vector_store %arg6[%c0_93, %c0_94, %c8_95], %84 {strides = array<i32>} : memref<1x8x128xf32, #tpu.memory_space<vmem>>, vector<1x8x8xf32>,
    %85 = vector.extract_strided_slice %56 {offsets = [0, 2, 0], sizes = [8, 1, 8], strides = [1, 1, 1]} : vector<8x16x8xf32> to vector<8x1x8xf32>
    %86 = vector.shape_cast %85 : vector<8x1x8xf32> to vector<8x8xf32>
    %c0_96 = arith.constant 0 : index
    %c0_97 = arith.constant 0 : index
    %c16_98 = arith.constant 16 : index
    %87 = vector.load %arg4[%c0_96, %c0_97, %c16_98] : memref<1x8x128xbf16, #tpu.memory_space<vmem>>, vector<1x8x8xbf16>
    %88 = vector.shape_cast %87 : vector<1x8x8xbf16> to vector<8x8xbf16>
    %89 = arith.extf %88 : vector<8x8xbf16> to vector<8x8xf32>
    %90 = arith.addf %86, %89 : vector<8x8xf32>
    %cst_99 = arith.constant 0.000000e+00 : f32
    %91 = vector.broadcast %cst_99 : f32 to vector<8x8xf32>
    %92 = arith.cmpf oge, %90, %91 : vector<8x8xf32>
    %cst_100 = arith.constant 1.000000e-01 : f32
    %93 = vector.broadcast %cst_100 : f32 to vector<8x8xf32>
    %94 = arith.mulf %93, %90 : vector<8x8xf32>
    %95 = arith.select %92, %90, %94 : vector<8x8xi1>, vector<8x8xf32>
    %c0_101 = arith.constant 0 : index
    %c0_102 = arith.constant 0 : index
    %c16_103 = arith.constant 16 : index
    %96 = vector.load %arg6[%c0_101, %c0_102, %c16_103] : memref<1x8x128xf32, #tpu.memory_space<vmem>>, vector<1x8x8xf32>
    %97 = vector.shape_cast %96 : vector<1x8x8xf32> to vector<8x8xf32>
    %98 = vector.shape_cast %95 : vector<8x8xf32> to vector<1x8x8xf32>
    tpu.vector_store %arg6[%c0_101, %c0_102, %c16_103], %98 {strides = array<i32>} : memref<1x8x128xf32, #tpu.memory_space<vmem>>, vector<1x8x8xf32>,
    %99 = vector.extract_strided_slice %56 {offsets = [0, 3, 0], sizes = [8, 1, 8], strides = [1, 1, 1]} : vector<8x16x8xf32> to vector<8x1x8xf32>
    %100 = vector.shape_cast %99 : vector<8x1x8xf32> to vector<8x8xf32>
    %c0_104 = arith.constant 0 : index
    %c0_105 = arith.constant 0 : index
    %c24_106 = arith.constant 24 : index
    %101 = vector.load %arg4[%c0_104, %c0_105, %c24_106] : memref<1x8x128xbf16, #tpu.memory_space<vmem>>, vector<1x8x8xbf16>
    %102 = vector.shape_cast %101 : vector<1x8x8xbf16> to vector<8x8xbf16>
    %103 = arith.extf %102 : vector<8x8xbf16> to vector<8x8xf32>
    %104 = arith.addf %100, %103 : vector<8x8xf32>
    %cst_107 = arith.constant 0.000000e+00 : f32
    %105 = vector.broadcast %cst_107 : f32 to vector<8x8xf32>
    %106 = arith.cmpf oge, %104, %105 : vector<8x8xf32>
    %cst_108 = arith.constant 1.000000e-01 : f32
    %107 = vector.broadcast %cst_108 : f32 to vector<8x8xf32>
    %108 = arith.mulf %107, %104 : vector<8x8xf32>
    %109 = arith.select %106, %104, %108 : vector<8x8xi1>, vector<8x8xf32>
    %c0_109 = arith.constant 0 : index
    %c0_110 = arith.constant 0 : index
    %c24_111 = arith.constant 24 : index
    %110 = vector.load %arg6[%c0_109, %c0_110, %c24_111] : memref<1x8x128xf32, #tpu.memory_space<vmem>>, vector<1x8x8xf32>
    %111 = vector.shape_cast %110 : vector<1x8x8xf32> to vector<8x8xf32>
    %112 = vector.shape_cast %109 : vector<8x8xf32> to vector<1x8x8xf32>
    tpu.vector_store %arg6[%c0_109, %c0_110, %c24_111], %112 {strides = array<i32>} : memref<1x8x128xf32, #tpu.memory_space<vmem>>, vector<1x8x8xf32>,
    %113 = vector.extract_strided_slice %56 {offsets = [0, 4, 0], sizes = [8, 1, 8], strides = [1, 1, 1]} : vector<8x16x8xf32> to vector<8x1x8xf32>
    %114 = vector.shape_cast %113 : vector<8x1x8xf32> to vector<8x8xf32>
    %c0_112 = arith.constant 0 : index
    %c0_113 = arith.constant 0 : index
    %c32_114 = arith.constant 32 : index
    %115 = vector.load %arg4[%c0_112, %c0_113, %c32_114] : memref<1x8x128xbf16, #tpu.memory_space<vmem>>, vector<1x8x8xbf16>
    %116 = vector.shape_cast %115 : vector<1x8x8xbf16> to vector<8x8xbf16>
    %117 = arith.extf %116 : vector<8x8xbf16> to vector<8x8xf32>
    %118 = arith.addf %114, %117 : vector<8x8xf32>
    %cst_115 = arith.constant 0.000000e+00 : f32
    %119 = vector.broadcast %cst_115 : f32 to vector<8x8xf32>
    %120 = arith.cmpf oge, %118, %119 : vector<8x8xf32>
    %cst_116 = arith.constant 1.000000e-01 : f32
    %121 = vector.broadcast %cst_116 : f32 to vector<8x8xf32>
    %122 = arith.mulf %121, %118 : vector<8x8xf32>
    %123 = arith.select %120, %118, %122 : vector<8x8xi1>, vector<8x8xf32>
    %c0_117 = arith.constant 0 : index
    %c0_118 = arith.constant 0 : index
    %c32_119 = arith.constant 32 : index
    %124 = vector.load %arg6[%c0_117, %c0_118, %c32_119] : memref<1x8x128xf32, #tpu.memory_space<vmem>>, vector<1x8x8xf32>
    %125 = vector.shape_cast %124 : vector<1x8x8xf32> to vector<8x8xf32>
    %126 = vector.shape_cast %123 : vector<8x8xf32> to vector<1x8x8xf32>
    tpu.vector_store %arg6[%c0_117, %c0_118, %c32_119], %126 {strides = array<i32>} : memref<1x8x128xf32, #tpu.memory_space<vmem>>, vector<1x8x8xf32>,
    %127 = vector.extract_strided_slice %56 {offsets = [0, 5, 0], sizes = [8, 1, 8], strides = [1, 1, 1]} : vector<8x16x8xf32> to vector<8x1x8xf32>
    %128 = vector.shape_cast %127 : vector<8x1x8xf32> to vector<8x8xf32>
    %c0_120 = arith.constant 0 : index
    %c0_121 = arith.constant 0 : index
    %c40 = arith.constant 40 : index
    %129 = vector.load %arg4[%c0_120, %c0_121, %c40] : memref<1x8x128xbf16, #tpu.memory_space<vmem>>, vector<1x8x8xbf16>
    %130 = vector.shape_cast %129 : vector<1x8x8xbf16> to vector<8x8xbf16>
    %131 = arith.extf %130 : vector<8x8xbf16> to vector<8x8xf32>
    %132 = arith.addf %128, %131 : vector<8x8xf32>
    %cst_122 = arith.constant 0.000000e+00 : f32
    %133 = vector.broadcast %cst_122 : f32 to vector<8x8xf32>
    %134 = arith.cmpf oge, %132, %133 : vector<8x8xf32>
    %cst_123 = arith.constant 1.000000e-01 : f32
    %135 = vector.broadcast %cst_123 : f32 to vector<8x8xf32>
    %136 = arith.mulf %135, %132 : vector<8x8xf32>
    %137 = arith.select %134, %132, %136 : vector<8x8xi1>, vector<8x8xf32>
    %c0_124 = arith.constant 0 : index
    %c0_125 = arith.constant 0 : index
    %c40_126 = arith.constant 40 : index
    %138 = vector.load %arg6[%c0_124, %c0_125, %c40_126] : memref<1x8x128xf32, #tpu.memory_space<vmem>>, vector<1x8x8xf32>
    %139 = vector.shape_cast %138 : vector<1x8x8xf32> to vector<8x8xf32>
    %140 = vector.shape_cast %137 : vector<8x8xf32> to vector<1x8x8xf32>
    tpu.vector_store %arg6[%c0_124, %c0_125, %c40_126], %140 {strides = array<i32>} : memref<1x8x128xf32, #tpu.memory_space<vmem>>, vector<1x8x8xf32>,
    %141 = vector.extract_strided_slice %56 {offsets = [0, 6, 0], sizes = [8, 1, 8], strides = [1, 1, 1]} : vector<8x16x8xf32> to vector<8x1x8xf32>
    %142 = vector.shape_cast %141 : vector<8x1x8xf32> to vector<8x8xf32>
    %c0_127 = arith.constant 0 : index
    %c0_128 = arith.constant 0 : index
    %c48 = arith.constant 48 : index
    %143 = vector.load %arg4[%c0_127, %c0_128, %c48] : memref<1x8x128xbf16, #tpu.memory_space<vmem>>, vector<1x8x8xbf16>
    %144 = vector.shape_cast %143 : vector<1x8x8xbf16> to vector<8x8xbf16>
    %145 = arith.extf %144 : vector<8x8xbf16> to vector<8x8xf32>
    %146 = arith.addf %142, %145 : vector<8x8xf32>
    %cst_129 = arith.constant 0.000000e+00 : f32
    %147 = vector.broadcast %cst_129 : f32 to vector<8x8xf32>
    %148 = arith.cmpf oge, %146, %147 : vector<8x8xf32>
    %cst_130 = arith.constant 1.000000e-01 : f32
    %149 = vector.broadcast %cst_130 : f32 to vector<8x8xf32>
    %150 = arith.mulf %149, %146 : vector<8x8xf32>
    %151 = arith.select %148, %146, %150 : vector<8x8xi1>, vector<8x8xf32>
    %c0_131 = arith.constant 0 : index
    %c0_132 = arith.constant 0 : index
    %c48_133 = arith.constant 48 : index
    %152 = vector.load %arg6[%c0_131, %c0_132, %c48_133] : memref<1x8x128xf32, #tpu.memory_space<vmem>>, vector<1x8x8xf32>
    %153 = vector.shape_cast %152 : vector<1x8x8xf32> to vector<8x8xf32>
    %154 = vector.shape_cast %151 : vector<8x8xf32> to vector<1x8x8xf32>
    tpu.vector_store %arg6[%c0_131, %c0_132, %c48_133], %154 {strides = array<i32>} : memref<1x8x128xf32, #tpu.memory_space<vmem>>, vector<1x8x8xf32>,
    %155 = vector.extract_strided_slice %56 {offsets = [0, 7, 0], sizes = [8, 1, 8], strides = [1, 1, 1]} : vector<8x16x8xf32> to vector<8x1x8xf32>
    %156 = vector.shape_cast %155 : vector<8x1x8xf32> to vector<8x8xf32>
    %c0_134 = arith.constant 0 : index
    %c0_135 = arith.constant 0 : index
    %c56 = arith.constant 56 : index
    %157 = vector.load %arg4[%c0_134, %c0_135, %c56] : memref<1x8x128xbf16, #tpu.memory_space<vmem>>, vector<1x8x8xbf16>
    %158 = vector.shape_cast %157 : vector<1x8x8xbf16> to vector<8x8xbf16>
    %159 = arith.extf %158 : vector<8x8xbf16> to vector<8x8xf32>
    %160 = arith.addf %156, %159 : vector<8x8xf32>
    %cst_136 = arith.constant 0.000000e+00 : f32
    %161 = vector.broadcast %cst_136 : f32 to vector<8x8xf32>
    %162 = arith.cmpf oge, %160, %161 : vector<8x8xf32>
    %cst_137 = arith.constant 1.000000e-01 : f32
    %163 = vector.broadcast %cst_137 : f32 to vector<8x8xf32>
    %164 = arith.mulf %163, %160 : vector<8x8xf32>
    %165 = arith.select %162, %160, %164 : vector<8x8xi1>, vector<8x8xf32>
    %c0_138 = arith.constant 0 : index
    %c0_139 = arith.constant 0 : index
    %c56_140 = arith.constant 56 : index
    %166 = vector.load %arg6[%c0_138, %c0_139, %c56_140] : memref<1x8x128xf32, #tpu.memory_space<vmem>>, vector<1x8x8xf32>
    %167 = vector.shape_cast %166 : vector<1x8x8xf32> to vector<8x8xf32>
    %168 = vector.shape_cast %165 : vector<8x8xf32> to vector<1x8x8xf32>
    tpu.vector_store %arg6[%c0_138, %c0_139, %c56_140], %168 {strides = array<i32>} : memref<1x8x128xf32, #tpu.memory_space<vmem>>, vector<1x8x8xf32>,
    %169 = vector.extract_strided_slice %56 {offsets = [0, 8, 0], sizes = [8, 1, 8], strides = [1, 1, 1]} : vector<8x16x8xf32> to vector<8x1x8xf32>
    %170 = vector.shape_cast %169 : vector<8x1x8xf32> to vector<8x8xf32>
    %c0_141 = arith.constant 0 : index
    %c0_142 = arith.constant 0 : index
    %c64 = arith.constant 64 : index
    %171 = vector.load %arg4[%c0_141, %c0_142, %c64] : memref<1x8x128xbf16, #tpu.memory_space<vmem>>, vector<1x8x8xbf16>
    %172 = vector.shape_cast %171 : vector<1x8x8xbf16> to vector<8x8xbf16>
    %173 = arith.extf %172 : vector<8x8xbf16> to vector<8x8xf32>
    %174 = arith.addf %170, %173 : vector<8x8xf32>
    %cst_143 = arith.constant 0.000000e+00 : f32
    %175 = vector.broadcast %cst_143 : f32 to vector<8x8xf32>
    %176 = arith.cmpf oge, %174, %175 : vector<8x8xf32>
    %cst_144 = arith.constant 1.000000e-01 : f32
    %177 = vector.broadcast %cst_144 : f32 to vector<8x8xf32>
    %178 = arith.mulf %177, %174 : vector<8x8xf32>
    %179 = arith.select %176, %174, %178 : vector<8x8xi1>, vector<8x8xf32>
    %c0_145 = arith.constant 0 : index
    %c0_146 = arith.constant 0 : index
    %c64_147 = arith.constant 64 : index
    %180 = vector.load %arg6[%c0_145, %c0_146, %c64_147] : memref<1x8x128xf32, #tpu.memory_space<vmem>>, vector<1x8x8xf32>
    %181 = vector.shape_cast %180 : vector<1x8x8xf32> to vector<8x8xf32>
    %182 = vector.shape_cast %179 : vector<8x8xf32> to vector<1x8x8xf32>
    tpu.vector_store %arg6[%c0_145, %c0_146, %c64_147], %182 {strides = array<i32>} : memref<1x8x128xf32, #tpu.memory_space<vmem>>, vector<1x8x8xf32>,
    %183 = vector.extract_strided_slice %56 {offsets = [0, 9, 0], sizes = [8, 1, 8], strides = [1, 1, 1]} : vector<8x16x8xf32> to vector<8x1x8xf32>
    %184 = vector.shape_cast %183 : vector<8x1x8xf32> to vector<8x8xf32>
    %c0_148 = arith.constant 0 : index
    %c0_149 = arith.constant 0 : index
    %c72 = arith.constant 72 : index
    %185 = vector.load %arg4[%c0_148, %c0_149, %c72] : memref<1x8x128xbf16, #tpu.memory_space<vmem>>, vector<1x8x8xbf16>
    %186 = vector.shape_cast %185 : vector<1x8x8xbf16> to vector<8x8xbf16>
    %187 = arith.extf %186 : vector<8x8xbf16> to vector<8x8xf32>
    %188 = arith.addf %184, %187 : vector<8x8xf32>
    %cst_150 = arith.constant 0.000000e+00 : f32
    %189 = vector.broadcast %cst_150 : f32 to vector<8x8xf32>
    %190 = arith.cmpf oge, %188, %189 : vector<8x8xf32>
    %cst_151 = arith.constant 1.000000e-01 : f32
    %191 = vector.broadcast %cst_151 : f32 to vector<8x8xf32>
    %192 = arith.mulf %191, %188 : vector<8x8xf32>
    %193 = arith.select %190, %188, %192 : vector<8x8xi1>, vector<8x8xf32>
    %c0_152 = arith.constant 0 : index
    %c0_153 = arith.constant 0 : index
    %c72_154 = arith.constant 72 : index
    %194 = vector.load %arg6[%c0_152, %c0_153, %c72_154] : memref<1x8x128xf32, #tpu.memory_space<vmem>>, vector<1x8x8xf32>
    %195 = vector.shape_cast %194 : vector<1x8x8xf32> to vector<8x8xf32>
    %196 = vector.shape_cast %193 : vector<8x8xf32> to vector<1x8x8xf32>
    tpu.vector_store %arg6[%c0_152, %c0_153, %c72_154], %196 {strides = array<i32>} : memref<1x8x128xf32, #tpu.memory_space<vmem>>, vector<1x8x8xf32>,
    %197 = vector.extract_strided_slice %56 {offsets = [0, 10, 0], sizes = [8, 1, 8], strides = [1, 1, 1]} : vector<8x16x8xf32> to vector<8x1x8xf32>
    %198 = vector.shape_cast %197 : vector<8x1x8xf32> to vector<8x8xf32>
    %c0_155 = arith.constant 0 : index
    %c0_156 = arith.constant 0 : index
    %c80 = arith.constant 80 : index
    %199 = vector.load %arg4[%c0_155, %c0_156, %c80] : memref<1x8x128xbf16, #tpu.memory_space<vmem>>, vector<1x8x8xbf16>
    %200 = vector.shape_cast %199 : vector<1x8x8xbf16> to vector<8x8xbf16>
    %201 = arith.extf %200 : vector<8x8xbf16> to vector<8x8xf32>
    %202 = arith.addf %198, %201 : vector<8x8xf32>
    %cst_157 = arith.constant 0.000000e+00 : f32
    %203 = vector.broadcast %cst_157 : f32 to vector<8x8xf32>
    %204 = arith.cmpf oge, %202, %203 : vector<8x8xf32>
    %cst_158 = arith.constant 1.000000e-01 : f32
    %205 = vector.broadcast %cst_158 : f32 to vector<8x8xf32>
    %206 = arith.mulf %205, %202 : vector<8x8xf32>
    %207 = arith.select %204, %202, %206 : vector<8x8xi1>, vector<8x8xf32>
    %c0_159 = arith.constant 0 : index
    %c0_160 = arith.constant 0 : index
    %c80_161 = arith.constant 80 : index
    %208 = vector.load %arg6[%c0_159, %c0_160, %c80_161] : memref<1x8x128xf32, #tpu.memory_space<vmem>>, vector<1x8x8xf32>
    %209 = vector.shape_cast %208 : vector<1x8x8xf32> to vector<8x8xf32>
    %210 = vector.shape_cast %207 : vector<8x8xf32> to vector<1x8x8xf32>
    tpu.vector_store %arg6[%c0_159, %c0_160, %c80_161], %210 {strides = array<i32>} : memref<1x8x128xf32, #tpu.memory_space<vmem>>, vector<1x8x8xf32>,
    %211 = vector.extract_strided_slice %56 {offsets = [0, 11, 0], sizes = [8, 1, 8], strides = [1, 1, 1]} : vector<8x16x8xf32> to vector<8x1x8xf32>
    %212 = vector.shape_cast %211 : vector<8x1x8xf32> to vector<8x8xf32>
    %c0_162 = arith.constant 0 : index
    %c0_163 = arith.constant 0 : index
    %c88 = arith.constant 88 : index
    %213 = vector.load %arg4[%c0_162, %c0_163, %c88] : memref<1x8x128xbf16, #tpu.memory_space<vmem>>, vector<1x8x8xbf16>
    %214 = vector.shape_cast %213 : vector<1x8x8xbf16> to vector<8x8xbf16>
    %215 = arith.extf %214 : vector<8x8xbf16> to vector<8x8xf32>
    %216 = arith.addf %212, %215 : vector<8x8xf32>
    %cst_164 = arith.constant 0.000000e+00 : f32
    %217 = vector.broadcast %cst_164 : f32 to vector<8x8xf32>
    %218 = arith.cmpf oge, %216, %217 : vector<8x8xf32>
    %cst_165 = arith.constant 1.000000e-01 : f32
    %219 = vector.broadcast %cst_165 : f32 to vector<8x8xf32>
    %220 = arith.mulf %219, %216 : vector<8x8xf32>
    %221 = arith.select %218, %216, %220 : vector<8x8xi1>, vector<8x8xf32>
    %c0_166 = arith.constant 0 : index
    %c0_167 = arith.constant 0 : index
    %c88_168 = arith.constant 88 : index
    %222 = vector.load %arg6[%c0_166, %c0_167, %c88_168] : memref<1x8x128xf32, #tpu.memory_space<vmem>>, vector<1x8x8xf32>
    %223 = vector.shape_cast %222 : vector<1x8x8xf32> to vector<8x8xf32>
    %224 = vector.shape_cast %221 : vector<8x8xf32> to vector<1x8x8xf32>
    tpu.vector_store %arg6[%c0_166, %c0_167, %c88_168], %224 {strides = array<i32>} : memref<1x8x128xf32, #tpu.memory_space<vmem>>, vector<1x8x8xf32>,
    %225 = vector.extract_strided_slice %56 {offsets = [0, 12, 0], sizes = [8, 1, 8], strides = [1, 1, 1]} : vector<8x16x8xf32> to vector<8x1x8xf32>
    %226 = vector.shape_cast %225 : vector<8x1x8xf32> to vector<8x8xf32>
    %c0_169 = arith.constant 0 : index
    %c0_170 = arith.constant 0 : index
    %c96 = arith.constant 96 : index
    %227 = vector.load %arg4[%c0_169, %c0_170, %c96] : memref<1x8x128xbf16, #tpu.memory_space<vmem>>, vector<1x8x8xbf16>
    %228 = vector.shape_cast %227 : vector<1x8x8xbf16> to vector<8x8xbf16>
    %229 = arith.extf %228 : vector<8x8xbf16> to vector<8x8xf32>
    %230 = arith.addf %226, %229 : vector<8x8xf32>
    %cst_171 = arith.constant 0.000000e+00 : f32
    %231 = vector.broadcast %cst_171 : f32 to vector<8x8xf32>
    %232 = arith.cmpf oge, %230, %231 : vector<8x8xf32>
    %cst_172 = arith.constant 1.000000e-01 : f32
    %233 = vector.broadcast %cst_172 : f32 to vector<8x8xf32>
    %234 = arith.mulf %233, %230 : vector<8x8xf32>
    %235 = arith.select %232, %230, %234 : vector<8x8xi1>, vector<8x8xf32>
    %c0_173 = arith.constant 0 : index
    %c0_174 = arith.constant 0 : index
    %c96_175 = arith.constant 96 : index
    %236 = vector.load %arg6[%c0_173, %c0_174, %c96_175] : memref<1x8x128xf32, #tpu.memory_space<vmem>>, vector<1x8x8xf32>
    %237 = vector.shape_cast %236 : vector<1x8x8xf32> to vector<8x8xf32>
    %238 = vector.shape_cast %235 : vector<8x8xf32> to vector<1x8x8xf32>
    tpu.vector_store %arg6[%c0_173, %c0_174, %c96_175], %238 {strides = array<i32>} : memref<1x8x128xf32, #tpu.memory_space<vmem>>, vector<1x8x8xf32>,
    %239 = vector.extract_strided_slice %56 {offsets = [0, 13, 0], sizes = [8, 1, 8], strides = [1, 1, 1]} : vector<8x16x8xf32> to vector<8x1x8xf32>
    %240 = vector.shape_cast %239 : vector<8x1x8xf32> to vector<8x8xf32>
    %c0_176 = arith.constant 0 : index
    %c0_177 = arith.constant 0 : index
    %c104 = arith.constant 104 : index
    %241 = vector.load %arg4[%c0_176, %c0_177, %c104] : memref<1x8x128xbf16, #tpu.memory_space<vmem>>, vector<1x8x8xbf16>
    %242 = vector.shape_cast %241 : vector<1x8x8xbf16> to vector<8x8xbf16>
    %243 = arith.extf %242 : vector<8x8xbf16> to vector<8x8xf32>
    %244 = arith.addf %240, %243 : vector<8x8xf32>
    %cst_178 = arith.constant 0.000000e+00 : f32
    %245 = vector.broadcast %cst_178 : f32 to vector<8x8xf32>
    %246 = arith.cmpf oge, %244, %245 : vector<8x8xf32>
    %cst_179 = arith.constant 1.000000e-01 : f32
    %247 = vector.broadcast %cst_179 : f32 to vector<8x8xf32>
    %248 = arith.mulf %247, %244 : vector<8x8xf32>
    %249 = arith.select %246, %244, %248 : vector<8x8xi1>, vector<8x8xf32>
    %c0_180 = arith.constant 0 : index
    %c0_181 = arith.constant 0 : index
    %c104_182 = arith.constant 104 : index
    %250 = vector.load %arg6[%c0_180, %c0_181, %c104_182] : memref<1x8x128xf32, #tpu.memory_space<vmem>>, vector<1x8x8xf32>
    %251 = vector.shape_cast %250 : vector<1x8x8xf32> to vector<8x8xf32>
    %252 = vector.shape_cast %249 : vector<8x8xf32> to vector<1x8x8xf32>
    tpu.vector_store %arg6[%c0_180, %c0_181, %c104_182], %252 {strides = array<i32>} : memref<1x8x128xf32, #tpu.memory_space<vmem>>, vector<1x8x8xf32>,
    %253 = vector.extract_strided_slice %56 {offsets = [0, 14, 0], sizes = [8, 1, 8], strides = [1, 1, 1]} : vector<8x16x8xf32> to vector<8x1x8xf32>
    %254 = vector.shape_cast %253 : vector<8x1x8xf32> to vector<8x8xf32>
    %c0_183 = arith.constant 0 : index
    %c0_184 = arith.constant 0 : index
    %c112 = arith.constant 112 : index
    %255 = vector.load %arg4[%c0_183, %c0_184, %c112] : memref<1x8x128xbf16, #tpu.memory_space<vmem>>, vector<1x8x8xbf16>
    %256 = vector.shape_cast %255 : vector<1x8x8xbf16> to vector<8x8xbf16>
    %257 = arith.extf %256 : vector<8x8xbf16> to vector<8x8xf32>
    %258 = arith.addf %254, %257 : vector<8x8xf32>
    %cst_185 = arith.constant 0.000000e+00 : f32
    %259 = vector.broadcast %cst_185 : f32 to vector<8x8xf32>
    %260 = arith.cmpf oge, %258, %259 : vector<8x8xf32>
    %cst_186 = arith.constant 1.000000e-01 : f32
    %261 = vector.broadcast %cst_186 : f32 to vector<8x8xf32>
    %262 = arith.mulf %261, %258 : vector<8x8xf32>
    %263 = arith.select %260, %258, %262 : vector<8x8xi1>, vector<8x8xf32>
    %c0_187 = arith.constant 0 : index
    %c0_188 = arith.constant 0 : index
    %c112_189 = arith.constant 112 : index
    %264 = vector.load %arg6[%c0_187, %c0_188, %c112_189] : memref<1x8x128xf32, #tpu.memory_space<vmem>>, vector<1x8x8xf32>
    %265 = vector.shape_cast %264 : vector<1x8x8xf32> to vector<8x8xf32>
    %266 = vector.shape_cast %263 : vector<8x8xf32> to vector<1x8x8xf32>
    tpu.vector_store %arg6[%c0_187, %c0_188, %c112_189], %266 {strides = array<i32>} : memref<1x8x128xf32, #tpu.memory_space<vmem>>, vector<1x8x8xf32>,
    %267 = vector.extract_strided_slice %56 {offsets = [0, 15, 0], sizes = [8, 1, 8], strides = [1, 1, 1]} : vector<8x16x8xf32> to vector<8x1x8xf32>
    %268 = vector.shape_cast %267 : vector<8x1x8xf32> to vector<8x8xf32>
    %c0_190 = arith.constant 0 : index
    %c0_191 = arith.constant 0 : index
    %c120 = arith.constant 120 : index
    %269 = vector.load %arg4[%c0_190, %c0_191, %c120] : memref<1x8x128xbf16, #tpu.memory_space<vmem>>, vector<1x8x8xbf16>
    %270 = vector.shape_cast %269 : vector<1x8x8xbf16> to vector<8x8xbf16>
    %271 = arith.extf %270 : vector<8x8xbf16> to vector<8x8xf32>
    %272 = arith.addf %268, %271 : vector<8x8xf32>
    %cst_192 = arith.constant 0.000000e+00 : f32
    %273 = vector.broadcast %cst_192 : f32 to vector<8x8xf32>
    %274 = arith.cmpf oge, %272, %273 : vector<8x8xf32>
    %cst_193 = arith.constant 1.000000e-01 : f32
    %275 = vector.broadcast %cst_193 : f32 to vector<8x8xf32>
    %276 = arith.mulf %275, %272 : vector<8x8xf32>
    %277 = arith.select %274, %272, %276 : vector<8x8xi1>, vector<8x8xf32>
    %c0_194 = arith.constant 0 : index
    %c0_195 = arith.constant 0 : index
    %c120_196 = arith.constant 120 : index
    %278 = vector.load %arg6[%c0_194, %c0_195, %c120_196] : memref<1x8x128xf32, #tpu.memory_space<vmem>>, vector<1x8x8xf32>
    %279 = vector.shape_cast %278 : vector<1x8x8xf32> to vector<8x8xf32>
    %280 = vector.shape_cast %277 : vector<8x8xf32> to vector<1x8x8xf32>
    tpu.vector_store %arg6[%c0_194, %c0_195, %c120_196], %280 {strides = array<i32>} : memref<1x8x128xf32, #tpu.memory_space<vmem>>, vector<1x8x8xf32>,
    return
  }
  func.func @transform_0(%arg0: i32, %arg1: i32) -> (i32, i32, i32, i32) {
    %c0_i32 = arith.constant 0 : i32
    %c0_i32_0 = arith.constant 0 : i32
    %c0_i32_1 = arith.constant 0 : i32
    %c0_i32_2 = arith.constant 0 : i32
    return %arg0, %c0_i32, %c0_i32_0, %c0_i32_1 : i32, i32, i32, i32
  }
  func.func @transform_1(%arg0: i32, %arg1: i32) -> (i32, i32) {
    %c0_i32 = arith.constant 0 : i32
    %c0_i32_0 = arith.constant 0 : i32
    %c0_i32_1 = arith.constant 0 : i32
    return %c0_i32, %c0_i32_0 : i32, i32
  }
  func.func @transform_2(%arg0: i32, %arg1: i32) -> (i32, i32, i32) {
    %c0_i32 = arith.constant 0 : i32
    %c0_i32_0 = arith.constant 0 : i32
    return %arg0, %arg1, %c0_i32 : i32, i32, i32
  }
  func.func @transform_3(%arg0: i32, %arg1: i32) -> (i32, i32) {
    %c0_i32 = arith.constant 0 : i32
    %c0_i32_0 = arith.constant 0 : i32
    %c0_i32_1 = arith.constant 0 : i32
    return %c0_i32, %c0_i32_0 : i32, i32
  }
  func.func @transform_4(%arg0: i32, %arg1: i32) -> (i32, i32, i32) {
    %c0_i32 = arith.constant 0 : i32
    %c0_i32_0 = arith.constant 0 : i32
    return %arg0, %arg1, %c0_i32 : i32, i32, i32
  }
}

</mosaic_0001>

<bundles_post_ra>
// kernel: upsample_block_forward.1
= control target key start
LH: loop header
LB: loop body
LE: loop exit
PB: predicated region body
PF: predicated region fallthrough
CT: control target
= control target key end

     0   :  { %s4673_s15 = smov 0   ;;  %s4675_s16 = smov 0   ;;  %s6176_s0 = inlined_call_operand.vmem [shape: bf16[2,16,16,4], index: 0, kind: input, shape index: {}]   ;;  %s6177_s1 = inlined_call_operand.vmem [shape: bf16[36,8], index: 1, kind: input, shape index: {}]   ;;  %s6178_s2 = inlined_call_operand.vmem [shape: bf16[2,16,128], index: 2, kind: input, shape index: {}]   ;;  %s6179_s3 = inlined_call_operand.vmem [shape: f32[1,8], index: 3, kind: input, shape index: {}]   ;;  %s6180_s4 = inlined_call_operand.vmem [shape: f32[2,16,128], index: 4, kind: output, shape index: {}]  }
   0x1   :  { %s4677_s17 = smov 0   ;;  %s4679_s18 = smov 0  }
   0x2   :  { %s4681_s19 = smov 0  }
   0x3 LB: > { %s23_s20 = sadd.s32 1, %s4619_s17  ;;  %s26_s21 = sadd.s32 1, %s4623_s18  ;;  %s4627_s19 = sphi %s4681_s19, %s14_s19   ;;  %s4623_s18 = sphi %s4679_s18, %s6347_s18   ;;  %s4619_s17 = sphi %s4677_s17, %s6346_s17   ;;  %s4615_s16 = sphi %s4675_s16, %s6345_s16   ;;  %s4611_s15 = sphi %s4673_s15, %s6344_s15  }
   0x4   : > { %p24_p0 = scmp.ge.s32.totalorder %s23_s20, 2  ;;  %p3806_p1 = scmp.ge.s32.totalorder %s4627_s19, 1 }
   0x5   : > { %p191_p2 = scmp.lt.s32.totalorder %s4627_s19, 5 }
   0x6   : > { %s6349_s20 = smov (%p24_p0, %s23_s20), 0  ;;  %s6351_s21 = smov (!%p24_p0, %s26_s21), %s4623_s18 }
   0x7   : > { %p192_p3 = pnand %p3806_p1, %p191_p2  ;;  %p28_p4 = scmp.ge.s32.totalorder %s6351_s21, 2 }
   0x9   : > { %s6353_s21 = smov (%p28_p4, %s6351_s21), 0  ;;  %195 = sbr.rel (%p192_p3) target bundleno = 787 (0x313), region = 36 }
  0x10   : > { %p228_p5 = scmp.lt.s32.totalorder %s4615_s16, 1  ;;  %vm251_vm0 = vcmask 24576   ;;  %vm252_vm1 = vsmask.f32 256  ;;  %v260_v0 = vld [vmem:[#allocation2 + $0x18] sm:$0x1] }
  0x11   : > { %vm4706_vm2 = vmand %vm251_vm0, %vm252_vm1  ;;  %vm284_vm3 = vsmask.f32 7938  ;;  %v257_v4 = vld [vmem:[#allocation2 + $0xc] sm:$0x1]  ;;  %v263_v5 = vld [vmem:[#allocation2 + $0x24] sm:$0x1] }
  0x12   : > { %s6355_s16 = smov (!%p228_p5, %s4615_s16), 1  ;;  %v261_v2 = vsel %vm4706_vm2, 0, %v260_v0  ;;  %vm4715_vm4 = vmand %vm251_vm0, %vm284_vm3  ;;  %s3959_s22 = sshll.u32 %s4611_s15, 6  ;;  %v258_v6 = vsel %vm4706_vm2, 0, %v257_v4  ;;  %v264_v7 = vsel %vm4706_vm2, 0, %v263_v5  ;;  %vm390_vm6 = vcmask 27648  }
  0x13   : > { %262 = vst [vmem:[#allocation2 + $0x18] sm:$0x1] %v261_v2  ;;  %v289_v8 = vld [vmem:[#allocation2 + $0x14] sm:$0x1]  ;;  %s3955_s23 = sshll.u32 %s6355_s16, 7  ;;  %vm4754_vm8 = vmand %vm390_vm6, %vm284_vm3  ;;  %vm1043_vm9 = vcmask 1046528  }
  0x14   : > { %259 = vst [vmem:[#allocation2 + $0xc] sm:$0x1] %v258_v6  ;;  %265 = vst [vmem:[#allocation2 + $0x24] sm:$0x1] %v264_v7  ;;  %v290_v9 = vsel %vm4715_vm4, 0, %v289_v8  ;;  %s4730_s26 = scalar_lea.vmem %s6176_s0, %s3955_s23  ;;  %s4629_s28 = smov 12  }
  0x15   : > { %v292_v10 = vld [vmem:[#allocation2 + $0x20] sm:$0x1]  ;;  %291 = vst [vmem:[#allocation2 + $0x14] sm:$0x1] %v290_v9  ;;  %v295_v12 = vld [vmem:[#allocation2 + $0x2c] sm:$0x1]  ;;  %s4735_s27 = scalar_lea.vmem %s4730_s26, %s3959_s22 }
  0x16   : > { %v293_v11 = vsel %vm4715_vm4, 0, %v292_v10  ;;  %v266_v13 = vld [vmem:[#allocation2 + $0x30] sm:$0x1]  ;;  %vm368_vm5 = vsmask.f32 4368  ;;  %v296_v14 = vsel %vm4715_vm4, 0, %v295_v12 }
  0x17   : > { %294 = vst [vmem:[#allocation2 + $0x20] sm:$0x1] %v293_v11  ;;  %v267_v15 = vsel %vm4706_vm2, 0, %v266_v13  ;;  %v405_v16 = vld [vmem:[%s4735_s27 + $0x8] sm:$0xf]  ;;  %vm4748_vm7 = vmor %vm252_vm1, %vm368_vm5  ;;  %s4630_s29 = smov 8  }
  0x18   : > { %v406_v17 = vld [vmem:[%s4735_s27 + $0xc] sm:$0xf]  ;;  %v403_v18 = vld [vmem:[%s4735_s27] sm:$0xf]  ;;  %297 = vst [vmem:[#allocation2 + $0x2c] sm:$0x1] %v296_v14 }
  0x19   : > { %268 = vst [vmem:[#allocation2 + $0x30] sm:$0x1] %v267_v15  ;;  %v437_v19 = vshrl.u32 %v405_v16, 16  ;;  %v440_v20 = vshll.u32 %v405_v16, 16  ;;  %v445_v21 = vshrl.u32 %v406_v17, 16  ;;  %v448_v22 = vshll.u32 %v406_v17, 16 }
  0x1a   : > { %v404_v23 = vld [vmem:[%s4735_s27 + $0x4] sm:$0xf]  ;;  %v420_v24 = vshrl.u32 %v403_v18, 16  ;;  %v423_v25 = vshll.u32 %v403_v18, 16  ;;  %v407_v28 = vld [vmem:[%s4735_s27 + $0x10] sm:$0xf] }
  0x1b   : > { %v428_v26 = vshrl.u32 %v404_v23, 16  ;;  %v431_v27 = vshll.u32 %v404_v23, 16  ;;  %v439_v30 = vrot.slane %v437_v19, 7  ;;  %v447_v31 = vrot.slane %v445_v21, 7  ;;  %v587_v32 = vld [vmem:[#allocation2 + $0x18] sm:$0xf] }
  0x1c   : > { %v422_v34 = vrot.slane %v420_v24, 7  ;;  %v408_v36 = vld [vmem:[%s4735_s27 + $0x14] sm:$0xf]  ;;  %v454_v37 = vshrl.u32 %v407_v28, 16  ;;  %v457_v38 = vshll.u32 %v407_v28, 16  ;;  %s4847_s30 = sshll.u32 %s4611_s15, 3 }
  0x1d   : > { %v430_v35 = vrot.slane %v428_v26, 7  ;;  %v442_v39 = vor.u32 %v440_v20, %v439_v30  ;;  %v443_v40 = vrot.slane %v439_v30, 4  ;;  %v450_v41 = vor.u32 %v448_v22, %v447_v31  ;;  %v580_v43 = vld [vmem:[#allocation2 + $0xc] sm:$0xf]  ;;  %v584_v44 = vld [vmem:[#allocation2 + $0x14] sm:$0x1] }
  0x1e   : > { %v452_v42 = vrot.slane %v447_v31, 4  ;;  %v425_v45 = vor.u32 %v423_v25, %v422_v34  ;;  %v426_v46 = vrot.slane %v422_v34, 4  ;;  %v591_v49 = vld [vmem:[#allocation2 + $0x20] sm:$0x1]  ;;  %v298_v50 = vld [vmem:[#allocation2 + $0x38] sm:$0x1] }
  0x1f   : > { %v433_v47 = vor.u32 %v431_v27, %v430_v35  ;;  %v435_v48 = vrot.slane %v430_v35, 4  ;;  %v451_v51 = vsel %vm4748_vm7, %v443_v40, %v450_v41  ;;  %v588_v52 = vsel %vm4754_vm8, %v442_v39, %v587_v32  ;;  %v409_v55 = vld [vmem:[%s4735_s27 + $0x18] sm:$0xf]  ;;  %v410_v56 = vld [vmem:[%s4735_s27 + $0x1c] sm:$0xf]  ;;  %s4631_s5 = smov 4  }
  0x20   : > { %v456_v53 = vrot.slane %v454_v37, 7  ;;  %v462_v54 = vshrl.u32 %v408_v36, 16  ;;  %589 = vst [vmem:[#allocation2 + $0x18] sm:$0xf] %v588_v52  ;;  %590 = vst.msk [vmem:[#allocation2 + $0x1c] sm:$0xf] %vm390_vm6, %v451_v51  ;;  %v581_v58 = vsel %vm4754_vm8, %v425_v45, %v580_v43  ;;  %v592_v4 = vsel %vm4706_vm2, %v452_v42, %v591_v49 }
  0x21   : > { %v434_v57 = vsel %vm4748_vm7, %v426_v46, %v433_v47  ;;  %v465_v59 = vshll.u32 %v408_v36, 16  ;;  %v594_v60 = vld [vmem:[#allocation2 + $0x24] sm:$0xf]  ;;  %v585_v61 = vsel %vm4706_vm2, %v435_v48, %v584_v44  ;;  %v269_v62 = vld [vmem:[#allocation2 + $0x3c] sm:$0x1]  ;;  %v299_v7 = vsel %vm4715_vm4, 0, %v298_v50 }
  0x22   : > { %582 = vst [vmem:[#allocation2 + $0xc] sm:$0xf] %v581_v58  ;;  %583 = vst.msk [vmem:[#allocation2 + $0x10] sm:$0xf] %vm390_vm6, %v434_v57  ;;  %v459_v63 = vor.u32 %v457_v38, %v456_v53  ;;  %v460_v0 = vrot.slane %v456_v53, 4  ;;  %v464_v2 = vrot.slane %v462_v54, 7 }
  0x23   : > { %586 = vst [vmem:[#allocation2 + $0x14] sm:$0x1] %v585_v61  ;;  %v598_v5 = vld [vmem:[#allocation2 + $0x2c] sm:$0x1]  ;;  %v301_v6 = vld [vmem:[#allocation2 + $0x44] sm:$0x1] }
  0x24   : > { %593 = vst [vmem:[#allocation2 + $0x20] sm:$0x1] %v592_v4  ;;  %v471_v8 = vshrl.u32 %v409_v55, 16  ;;  %v474_v9 = vshll.u32 %v409_v55, 16  ;;  %v479_v10 = vshrl.u32 %v410_v56, 16  ;;  %v467_v12 = vor.u32 %v465_v59, %v464_v2  ;;  %p316_p6 = scmp.gt.s32.totalorder %s4847_s30, 0 }
  0x25   : > { %v411_v11 = vld [vmem:[%s4735_s27 + $0x20] sm:$0xf]  ;;  %v469_v13 = vrot.slane %v464_v2, 4  ;;  %v595_v14 = vsel %vm4754_vm8, %v459_v63, %v594_v60  ;;  %300 = vst [vmem:[#allocation2 + $0x38] sm:$0x1] %v299_v7  ;;  %v482_v15 = vshll.u32 %v410_v56, 16 }
  0x26   : > { %596 = vst [vmem:[#allocation2 + $0x24] sm:$0xf] %v595_v14  ;;  %v473_v16 = vrot.slane %v471_v8, 7  ;;  %v481_v17 = vrot.slane %v479_v10, 7  ;;  %v270_v18 = vsel %vm4706_vm2, 0, %v269_v62  ;;  %v302_v19 = vsel %vm4715_vm4, 0, %v301_v6 }
  0x27   : > { %v468_v20 = vsel %vm4748_vm7, %v460_v0, %v467_v12  ;;  %v599_v21 = vsel %vm4706_vm2, %v469_v13, %v598_v5  ;;  %v601_v22 = vld [vmem:[#allocation2 + $0x30] sm:$0xf]  ;;  %271 = vst [vmem:[#allocation2 + $0x3c] sm:$0x1] %v270_v18  ;;  %303 = vst [vmem:[#allocation2 + $0x44] sm:$0x1] %v302_v19 }
  0x28   : > { %v412_v23 = vld [vmem:[%s4735_s27 + $0x24] sm:$0xf]  ;;  %v488_v24 = vshrl.u32 %v411_v11, 16  ;;  %v491_v25 = vshll.u32 %v411_v11, 16  ;;  %597 = vst.msk [vmem:[#allocation2 + $0x28] sm:$0xf] %vm390_vm6, %v468_v20  ;;  %v476_v26 = vor.u32 %v474_v9, %v473_v16  ;;  %v484_v28 = vor.u32 %v482_v15, %v481_v17 }
  0x29   : > { %600 = vst [vmem:[#allocation2 + $0x2c] sm:$0x1] %v599_v21  ;;  %v477_v27 = vrot.slane %v473_v16, 4  ;;  %v486_v30 = vrot.slane %v481_v17, 4  ;;  %v4350_v31 = vld [vmem:[#allocation2 + $0x18] sm:$0xff]   ;;  %v4351_v34 = vld [vmem:[#allocation2 + $0xc] sm:$0xff]  }
  0x2a   : > { %v490_v32 = vrot.slane %v488_v24, 7  ;;  %v602_v36 = vsel %vm4754_vm8, %v476_v26, %v601_v22  ;;  %v496_v37 = vshrl.u32 %v412_v23, 16  ;;  %1159 = vrot.lane.b32.xlu1 %v4350_v31, %s4629_s28  ;;  %1157 = vrot.lane.b32.xlu0 %v4351_v34, %s4629_s28  ;;  %v4353_v38 = vld [vmem:[#allocation2 + $0xc] sm:$0xfe]   ;;  %v4355_v43 = vld [vmem:[#allocation2 + $0x18] sm:$0xfe]  }
  0x2b   : > { %v485_v35 = vsel %vm4748_vm7, %v477_v27, %v484_v28  ;;  %603 = vst [vmem:[#allocation2 + $0x30] sm:$0xf] %v602_v36  ;;  %v4354_v39 = vld [vmem:[#allocation2 + $0x14] ss:$0 sps:$4 sm:$0x11]   ;;  %v1047_v41 = vrot.slane %v4353_v38, 1 }
  0x2c   : > { %604 = vst.msk [vmem:[#allocation2 + $0x34] sm:$0xf] %vm390_vm6, %v485_v35  ;;  %v494_v40 = vrot.slane %v490_v32, 4  ;;  %v1048_v42 = vrot.slane %v4354_v39, 1  ;;  %v272_v46 = vld [vmem:[#allocation2 + $0x48] sm:$0x1]  ;;  %v493_v54 = vor.u32 %v491_v25, %v490_v32 }
  0x2d   : > { %v4356_v45 = vld [vmem:[#allocation2 + $0x20] ss:$0 sps:$4 sm:$0x11]   ;;  %v1050_v48 = vrot.slane %v4355_v43, 1  ;;  %v498_v49 = vrot.slane %v496_v37, 7  ;;  %v499_v55 = vshll.u32 %v412_v23, 16 }
  0x2e   : > { %v1049_v47 = vsel %vm1043_vm9, %v1047_v41, %v1048_v42  ;;  %v304_v50 = vld [vmem:[#allocation2 + $0x50] sm:$0x1]  ;;  %v413_v51 = vld [vmem:[%s4735_s27 + $0x28] sm:$0xf]  ;;  %v1051_v52 = vrot.slane %v4356_v45, 1  ;;  %v273_v9 = vsel %vm4706_vm2, 0, %v272_v46 }
  0x2f   : > { %v4352_v44 = vld [vmem:[#allocation2 + $0x24] sm:$0xff]   ;;  %1070 = vrot.lane.b32.xlu1 %v1049_v47, %s4630_s29  ;;  %v605_v57 = vld [vmem:[#allocation2 + $0x38] sm:$0x1]  ;;  %v503_v58 = vrot.slane %v498_v49, 4  ;;  %v414_v59 = vld [vmem:[%s4735_s27 + $0x2c] sm:$0xf]  ;;  %v501_v0 = vor.u32 %v499_v55, %v498_v49 }
  0x30   : > { %1161 = vrot.lane.b32.xlu0 %v4352_v44, %s4629_s28  ;;  %v4357_v53 = vld [vmem:[#allocation2 + $0x24] sm:$0xfe]   ;;  %v4358_v56 = vld [vmem:[#allocation2 + $0x2c] ss:$0 sps:$4 sm:$0x11]   ;;  %v1052_v61 = vsel %vm1043_vm9, %v1050_v48, %v1051_v52  ;;  %v606_v63 = vsel %vm4706_vm2, %v486_v30, %v605_v57  ;;  %v305_v13 = vsel %vm4715_vm4, 0, %v304_v50 }
  0x31   : > { %v275_v60 = vld [vmem:[#allocation2 + $0x54] sm:$0x1]  ;;  %v1053_v62 = vrot.slane %v4357_v53, 1  ;;  %v307_v2 = vld [vmem:[#allocation2 + $0x5c] sm:$0x1]  ;;  %v1054_v6 = vrot.slane %v4358_v56, 1  ;;  %v502_v10 = vsel %vm4748_vm7, %v494_v40, %v501_v0 }
  0x32   : > { %v415_v4 = vld [vmem:[%s4735_s27 + $0x30] sm:$0xf]  ;;  %v416_v5 = vld [vmem:[%s4735_s27 + $0x34] sm:$0xf]  ;;  %607 = vst [vmem:[#allocation2 + $0x38] sm:$0x1] %v606_v63 }
  0x33   : > { %v4359_v7 = vld [vmem:[#allocation2 + $0x30] sm:$0xfe]   ;;  %v608_v8 = vld [vmem:[#allocation2 + $0x3c] sm:$0xf]  ;;  %v612_v12 = vld [vmem:[#allocation2 + $0x44] sm:$0x1]  ;;  %v1055_v15 = vsel %vm1043_vm9, %v1053_v62, %v1054_v6 }
  0x34   : > { %1072 = vrot.lane.b32.xlu0 %v1052_v61, %s4630_s29  ;;  %v609_v11 = vsel %vm4754_vm8, %v493_v54, %v608_v8  ;;  %274 = vst [vmem:[#allocation2 + $0x48] sm:$0x1] %v273_v9  ;;  %v505_v14 = vshrl.u32 %v413_v51, 16  ;;  %v1056_v16 = vrot.slane %v4359_v7, 1  ;;  %611 = vst.msk [vmem:[#allocation2 + $0x40] sm:$0xf] %vm390_vm6, %v502_v10  ;;  %v613_v17 = vsel %vm4706_vm2, %v503_v58, %v612_v12 }
  0x35   : > { %610 = vst [vmem:[#allocation2 + $0x3c] sm:$0xf] %v609_v11  ;;  %306 = vst [vmem:[#allocation2 + $0x50] sm:$0x1] %v305_v13  ;;  %v508_v18 = vshll.u32 %v413_v51, 16  ;;  %v4820_v19 = vld [vmem:[#allocation2 + $0x18] sm:$0xff]   ;;  %1074 = vrot.lane.b32.xlu1 %v1055_v15, %s4630_s29 }
  0x36   : > { %614 = vst [vmem:[#allocation2 + $0x44] sm:$0x1] %v613_v17  ;;  %v507_v20 = vrot.slane %v505_v14, 7  ;;  %v513_v21 = vshrl.u32 %v414_v59, 16  ;;  %v516_v22 = vshll.u32 %v414_v59, 16  ;;  %v276_v23 = vsel %vm4706_vm2, 0, %v275_v60 }
  0x37   : > { %277 = vst [vmem:[#allocation2 + $0x54] sm:$0x1] %v276_v23  ;;  %v308_v24 = vsel %vm4715_vm4, 0, %v307_v2  ;;  %v522_v25 = vshrl.u32 %v415_v4, 16  ;;  %v525_v26 = vshll.u32 %v415_v4, 16  ;;  %v530_v27 = vshrl.u32 %v416_v5, 16 }
  0x38   : > { %v510_v28 = vor.u32 %v508_v18, %v507_v20  ;;  %v511_v30 = vrot.slane %v507_v20, 4  ;;  %v515_v31 = vrot.slane %v513_v21, 7  ;;  %309 = vst [vmem:[#allocation2 + $0x5c] sm:$0x1] %v308_v24  ;;  %v533_v32 = vshll.u32 %v416_v5, 16  ;;  %v4369_v41 = vld [vmem:[#allocation2 + $0xc] sm:$0xff]  }
  0x39   : > { %v524_v34 = vrot.slane %v522_v25, 7  ;;  %v532_v35 = vrot.slane %v530_v27, 7  ;;  %v4368_v36 = vld [vmem:[#allocation2 + $0x20] ss:$0 sps:$4 sm:$0x11]   ;;  %v851_v37 = vshrl.u32 %v4820_v19, 16 }
  0x3a   : > { %v4360_v38 = vld [vmem:[#allocation2 + $0x38] ss:$0 sps:$4 sm:$0x11]   ;;  %v518_v39 = vor.u32 %v516_v22, %v515_v31  ;;  %v520_v40 = vrot.slane %v515_v31, 4  ;;  %v853_v50 = vshll.u32 %v4820_v19, 16  ;;  %v858_v62 = vshll.u32 %v4368_v36, 16 }
  0x3b   : > { %v615_v42 = vld [vmem:[#allocation2 + $0x48] sm:$0xf]  ;;  %v527_v43 = vor.u32 %v525_v26, %v524_v34  ;;  %v528_v44 = vrot.slane %v524_v34, 4  ;;  %v535_v45 = vor.u32 %v533_v32, %v532_v35  ;;  %v537_v46 = vrot.slane %v532_v35, 4  ;;  %v4373_v7 = vld [vmem:[#allocation2 + $0x30] sm:$0xff]   ;;  %s3814_s6 = sadd.s32 4294967295, %s4847_s30 }
  0x3c   : > { %v1057_v47 = vrot.slane %v4360_v38, 1  ;;  %v519_v48 = vsel %vm4748_vm7, %v511_v30, %v518_v39  ;;  %v616_v49 = vsel %vm4754_vm8, %v510_v28, %v615_v42  ;;  %v4361_v51 = vld [vmem:[#allocation2 + $0x3c] sm:$0xfe]   ;;  %v619_v52 = vld [vmem:[#allocation2 + $0x50] sm:$0x1]  ;;  %v855_v58 = vrot.slane %v853_v50, 1 }
  0x3d   : > { %617 = vst [vmem:[#allocation2 + $0x48] sm:$0xf] %v616_v49  ;;  %618 = vst.msk [vmem:[#allocation2 + $0x4c] sm:$0xf] %vm390_vm6, %v519_v48  ;;  %v536_v53 = vsel %vm4748_vm7, %v528_v44, %v535_v45  ;;  %v620_v56 = vsel %vm4706_vm2, %v520_v40, %v619_v52  ;;  %v1059_v59 = vrot.slane %v4361_v51, 1  ;;  %v839_v63 = vshrl.u32 %v4369_v41, 16 }
  0x3e   : > { %v1058_v54 = vsel %vm1043_vm9, %v1056_v16, %v1057_v47  ;;  %v4362_v55 = vld [vmem:[#allocation2 + $0x44] ss:$0 sps:$4 sm:$0x11]   ;;  %v622_v57 = vld [vmem:[#allocation2 + $0x54] sm:$0xf]  ;;  %v841_v6 = vshll.u32 %v4369_v41, 16  ;;  %v856_v38 = vor.u32 %v855_v58, %v851_v37 }
  0x3f   : > { %625 = vst.msk [vmem:[#allocation2 + $0x58] sm:$0xf] %vm390_vm6, %v536_v53  ;;  %1076 = vrot.lane.b32.xlu0 %v1058_v54, %s4630_s29  ;;  %621 = vst [vmem:[#allocation2 + $0x50] sm:$0x1] %v620_v56  ;;  %v623_v60 = vsel %vm4754_vm8, %v527_v43, %v622_v57  ;;  %v626_v61 = vld [vmem:[#allocation2 + $0x5c] sm:$0x1] }
  0x40   : > { %v4371_v0 = vld [vmem:[#allocation2 + $0x24] sm:$0xff]   ;;  %v1060_v2 = vrot.slane %v4362_v55, 1  ;;  %624 = vst [vmem:[#allocation2 + $0x54] sm:$0xf] %v623_v60  ;;  %v627_v4 = vsel %vm4706_vm2, %v537_v46, %v626_v61  ;;  %vm825_vm10 = vsmask.f32 7424 }
  0x41   : > { %v4370_v5 = vld [vmem:[#allocation2 + $0x14] ss:$0 sps:$4 sm:$0x11]   ;;  %628 = vst [vmem:[#allocation2 + $0x5c] sm:$0x1] %v627_v4  ;;  %v860_v8 = vrot.slane %v858_v62, 1 }
  0x42   : > { %v863_v9 = vshrl.u32 %v4371_v0, 16  ;;  %v1061_v10 = vsel %vm1043_vm9, %v1059_v59, %v1060_v2  ;;  %v843_v11 = vrot.slane %v841_v6, 1  ;;  %v846_v12 = vshll.u32 %v4370_v5, 16  ;;  %v4372_v14 = vld [vmem:[#allocation2 + $0x2c] ss:$0 sps:$4 sm:$0x11]  }
  0x43   : > { %v865_v13 = vshll.u32 %v4371_v0, 16  ;;  %1078 = vrot.lane.b32.xlu1 %v1061_v10, %s4630_s29  ;;  %v875_v15 = vshrl.u32 %v4373_v7, 16  ;;  %v870_v20 = vshll.u32 %v4372_v14, 16  ;;  %v877_v21 = vshll.u32 %v4373_v7, 16  ;;  %v4375_v22 = vld [vmem:[#allocation2 + $0x3c] sm:$0xff]   ;;  %p342_p7 = scmp.gt.s32.totalorder %s3814_s6, 0 }
  0x44   : > { %v4363_v16 = vld [vmem:[#allocation2 + $0x48] sm:$0xfe]   ;;  %v848_v17 = vrot.slane %v846_v12, 1  ;;  %v844_v31 = vor.u32 %v843_v11, %v839_v63  ;;  %v887_v34 = vshrl.u32 %v4375_v22, 16  ;;  %v889_v40 = vshll.u32 %v4375_v22, 16  ;;  %s4632_s25 = smov 16  }
  0x45   : > { %v867_v18 = vrot.slane %v865_v13, 1  ;;  %v1062_v24 = vrot.slane %v4363_v16, 1  ;;  %v872_v26 = vrot.slane %v870_v20, 1  ;;  %v879_v27 = vrot.slane %v877_v21, 1  ;;  %v4377_v41 = vld [vmem:[#allocation2 + $0x48] sm:$0xff]   ;;  %s6357_s6 = smov (!%p342_p7, %s3814_s6), 0 }
  0x46   : > { %v4364_v23 = vld [vmem:[#allocation2 + $0x50] ss:$0 sps:$4 sm:$0x11]   ;;  %v4374_v39 = vld [vmem:[#allocation2 + $0x38] ss:$0 sps:$4 sm:$0x11]   ;;  %v849_v43 = vsel %vm825_vm10, %v844_v31, %v848_v17  ;;  %v861_v19 = vsel %vm825_vm10, %v856_v38, %v860_v8 }
  0x47   : > { %v4365_v25 = vld [vmem:[#allocation2 + $0x54] sm:$0xfe]   ;;  %v1063_v28 = vrot.slane %v4364_v23, 1  ;;  %v880_v44 = vor.u32 %v879_v27, %v875_v15  ;;  %v882_v45 = vshll.u32 %v4374_v39, 16  ;;  %v868_v47 = vor.u32 %v867_v18, %v863_v9  ;;  %v254_v58 = vld [vmem:[#allocation2] sm:$0x1] }
  0x48   : > { %v4366_v30 = vld [vmem:[#allocation2 + $0x5c] ss:$0 sps:$4 sm:$0x11]   ;;  %v1065_v32 = vrot.slane %v4365_v25, 1  ;;  %v891_v48 = vrot.slane %v889_v40, 1  ;;  %v899_v49 = vshrl.u32 %v4377_v41, 16 }
  0x49   : > { %v1064_v35 = vsel %vm1043_vm9, %v1062_v24, %v1063_v28  ;;  %v1066_v36 = vrot.slane %v4366_v30, 1  ;;  %v4376_v46 = vld [vmem:[#allocation2 + $0x44] ss:$0 sps:$4 sm:$0x11]   ;;  %v884_v37 = vrot.slane %v882_v45, 1  ;;  %v901_v52 = vshll.u32 %v4377_v41, 16 }
  0x4a   : > { %1080 = vrot.lane.b32.xlu0 %v1064_v35, %s4630_s29  ;;  %v894_v50 = vshll.u32 %v4376_v46, 16  ;;  %v4378_v51 = vld [vmem:[#allocation2 + $0x50] ss:$0 sps:$4 sm:$0x11]   ;;  %v4379_v57 = vld [vmem:[#allocation2 + $0x54] sm:$0xff]   ;;  %v873_v59 = vsel %vm825_vm10, %v868_v47, %v872_v26  ;;  %v255_v61 = vsel %vm4706_vm2, 0, %v254_v58  ;;  %v892_v63 = vor.u32 %v891_v48, %v887_v34 }
  0x4b   : > { %v1067_v42 = vsel %vm1043_vm9, %v1065_v32, %v1066_v36  ;;  %v885_v53 = vsel %vm825_vm10, %v880_v44, %v884_v37  ;;  %v903_v55 = vrot.slane %v901_v52, 1  ;;  %v906_v56 = vshll.u32 %v4378_v51, 16  ;;  %v4380_v60 = vld [vmem:[#allocation2 + $0x5c] ss:$0 sps:$4 sm:$0x11]   ;;  %s3956_s10 = sshll.u32 %s6357_s6, 3 }
  0x4c   : > { %1082 = vrot.lane.b32.xlu1 %v1067_v42, %s4630_s29  ;;  %v896_v54 = vrot.slane %v894_v50, 1  ;;  %v286_v62 = vld [vmem:[#allocation2 + $0x8] sm:$0x1]  ;;  %v911_v4 = vshrl.u32 %v4379_v57, 16  ;;  %256 = vst [vmem:[#allocation2] sm:$0x1] %v255_v61  ;;  %s346_s14 = scalar_lea.vmem %s4730_s26, %s3956_s10 }
  0x4d   : > { %v904_v0 = vor.u32 %v903_v55, %v899_v49  ;;  %v908_v2 = vrot.slane %v906_v56, 1  ;;  %v913_v5 = vshll.u32 %v4379_v57, 16  ;;  %v918_v6 = vshll.u32 %v4380_v60, 16  ;;  %s317_s7 = scalar_select %p316_p6, 1.0, 0.0  ;;  %v4384_v20 = vld [vmem:[#allocation2 + $0x30] sm:$0xff]  }
  0x4e   : > { %924 = vrot.lane.b32.xlu0 %v849_v43, %s4631_s5  ;;  %v287_v7 = vsel %vm4715_vm4, 0, %v286_v62  ;;  %v897_v10 = vsel %vm825_vm10, %v892_v63, %v896_v54  ;;  %v278_v13 = vld [vmem:[#allocation2 + $0x60] sm:$0x1]  ;;  %v417_v14 = vld [vmem:[%s4735_s27 + $0x38] sm:$0xf]  ;;  %v4387_v39 = vld [vmem:[#allocation2 + $0x48] sm:$0xff]  }
  0x4f   : > { %v909_v8 = vsel %vm825_vm10, %v904_v0, %v908_v2  ;;  %288 = vst [vmem:[#allocation2 + $0x8] sm:$0x1] %v287_v7  ;;  %v915_v9 = vrot.slane %v913_v5, 1  ;;  %v920_v11 = vrot.slane %v918_v6, 1  ;;  %p319_p8 = scmp.ne.f32.partialorder %s317_s7, %s317_s7  ;;  %s320_s8 = sshrl.u32 %s317_s7, 16  ;;  %v279_v16 = vsel %vm4706_vm2, 0, %v278_v13 }
  0x50   : > { %926 = vrot.lane.b32.xlu1 %v861_v19, %s4631_s5  ;;  %s321_s9 = sand.u32 1, %s320_s8  ;;  %v418_v17 = vld [vmem:[%s4735_s27 + $0x3c] sm:$0xf]  ;;  %v539_v18 = vshrl.u32 %v417_v14, 16  ;;  %280 = vst [vmem:[#allocation2 + $0x60] sm:$0x1] %v279_v16 }
  0x51   : > { %v916_v12 = vor.u32 %v915_v9, %v911_v4  ;;  %s322_s11 = sadd.s32 32767, %s321_s9  ;;  %v547_v21 = vshrl.u32 %v418_v17, 16  ;;  %v550_v22 = vshll.u32 %v418_v17, 16  ;;  %v542_v24 = vshll.u32 %v417_v14, 16  ;;  %v347_v25 = vld [vmem:[%s346_s14] sm:$0xf] }
  0x52   : > { %930 = vrot.lane.b32.xlu0 %v885_v53, %s4631_s5  ;;  %s323_s12 = sadd.s32 %s322_s11, %s317_s7  ;;  %v541_v23 = vrot.slane %v539_v18, 7  ;;  %v348_v27 = vld [vmem:[%s346_s14 + $0x4] sm:$0xf]  ;;  %v4392_v30 = vld [vmem:[#allocation2 + $0x18] sm:$0xff]   ;;  %v4390_v9 = vld [vmem:[#allocation2 + $0xc] sm:$0xff]   ;;  %s4633_s27 = smov 20  }
  0x53   : > { %v921_v15 = vsel %vm825_vm10, %v916_v12, %v920_v11  ;;  %s324_s13 = sand.u32 4294901760, %s323_s12  ;;  %v4882_v26 = vrot.slane %v547_v21, 7  ;;  %v4393_v35 = vld [vmem:[#allocation2 + $0x20] ss:$0 sps:$4 sm:$0x11]   ;;  %v1293_v42 = vshll.u32 %v4392_v30, 16 }
  0x54   : > { %928 = vrot.lane.b32.xlu1 %v873_v59, %s4631_s5  ;;  %s6359_s13 = smov (%p319_p8, %s324_s13), 2143289344  ;;  %v545_v28 = vrot.slane %v541_v23, 4  ;;  %v544_v34 = vor.u32 %v542_v24, %v541_v23  ;;  %v392_v47 = vld [vmem:[#allocation2] sm:$0xf]  ;;  %v1291_v50 = vshrl.u32 %v4392_v30, 16  ;;  %v1298_v52 = vshll.u32 %v4393_v35, 16 }
  0x55   : > { %s327_s22 = sshrl.u32 %s6359_s13, 16  ;;  %v552_v31 = vor.u32 %v550_v22, %v4882_v26  ;;  %v1295_v51 = vrot.slane %v1293_v42, 1  ;;  %v4397_v60 = vld [vmem:[#allocation2 + $0x20] ss:$0 sps:$4 sm:$0x11]   ;;  %v4399_v30 = vld [vmem:[#allocation2 + $0x24] sm:$0xff]  }
  0x56   : > { %934 = vrot.lane.b32.xlu0 %v909_v8, %s4631_s5  ;;  %s349_s23 = sshll.u32 %s327_s22, 16  ;;  %v397_v48 = vld [vmem:[#allocation2 + $0x8] sm:$0x1]  ;;  %v4396_v61 = vld [vmem:[#allocation2 + $0x18] sm:$0xfe]   ;;  %v1300_v63 = vrot.slane %v1298_v52, 1 }
  0x57   : > { %s350_s24 = sor.u32 %s349_s23, %s327_s22  ;;  %v553_v40 = vsel %vm4748_vm7, %v545_v28, %v552_v31  ;;  %v629_v41 = vld [vmem:[#allocation2 + $0x60] sm:$0xf]  ;;  %v1296_v62 = vor.u32 %v1295_v51, %v1291_v50  ;;  %v1498_v4 = vrot.slane %v4396_v61, 1  ;;  %v4403_v5 = vld [vmem:[#allocation2 + $0x44] ss:$0 sps:$4 sm:$0x11]  }
  0x58   : > { %932 = vrot.lane.b32.xlu1 %v897_v10, %s4631_s5  ;;  %v351_v32 = vstv %s350_s24  ;;  %632 = vst.msk [vmem:[#allocation2 + $0x64] sm:$0xf] %vm390_vm6, %v553_v40  ;;  %v630_v49 = vsel %vm4754_vm8, %v544_v34, %v629_v41  ;;  %v4402_v2 = vld [vmem:[#allocation2 + $0x3c] sm:$0xff]   ;;  %v1499_v7 = vrot.slane %v4397_v60, 1  ;;  %v1334_v11 = vshll.u32 %v4403_v5, 16  ;;  %s4634_s6 = smov 24  }
  0x59   : > { %v353_v36 = vmul.bf16 %v351_v32, %v347_v25  ;;  %v354_v38 = vmul.bf16 %v351_v32, %v348_v27  ;;  %631 = vst [vmem:[#allocation2 + $0x60] sm:$0xf] %v630_v49  ;;  %v1301_v6 = vsel %vm825_vm10, %v1296_v62, %v1300_v63  ;;  %v1327_v8 = vshrl.u32 %v4402_v2, 16  ;;  %v4391_v23 = vld [vmem:[#allocation2 + $0x14] ss:$0 sps:$4 sm:$0x11]  }
  0x5a   : > { %v1329_v10 = vshll.u32 %v4402_v2, 16  ;;  %v1281_v28 = vshll.u32 %v4390_v9, 16  ;;  %v1336_v34 = vrot.slane %v1334_v11, 1  ;;  %v4406_v35 = vld [vmem:[#allocation2 + $0x18] sm:$0xfe]   ;;  %v1279_v40 = vshrl.u32 %v4390_v9, 16 }
  0x5b   : > { %v371_v43 = vshrl.u32 %v353_v36, 16  ;;  %v374_v44 = vshll.u32 %v353_v36, 16  ;;  %v379_v45 = vshrl.u32 %v354_v38, 16  ;;  %v382_v46 = vshll.u32 %v354_v38, 16  ;;  %v4388_v50 = vld [vmem:[#allocation2 + $0x54] sm:$0xff]   ;;  %v4404_v61 = vld [vmem:[#allocation2 + $0x24] sm:$0xff]  }
  0x5c   : > { %936 = vrot.lane.b32.xlu1 %v921_v15, %s4631_s5  ;;  %v1500_v15 = vsel %vm1043_vm9, %v1498_v4, %v1499_v7  ;;  %v1331_v24 = vrot.slane %v1329_v10, 1  ;;  %v4407_v38 = vld [vmem:[#allocation2 + $0x20] ss:$0 sps:$4 sm:$0x11]   ;;  %v1283_v41 = vrot.slane %v1281_v28, 1  ;;  %v1286_v42 = vshll.u32 %v4391_v23, 16 }
  0x5d   : > { %v373_v19 = vrot.slane %v371_v43, 7  ;;  %v381_v37 = vrot.slane %v379_v45, 7  ;;  %v1948_v45 = vrot.slane %v4407_v38, 1  ;;  %v4395_v49 = vld [vmem:[#allocation2 + $0x14] ss:$0 sps:$4 sm:$0x11]  }
  0x5e   : > { %v1332_v32 = vor.u32 %v1331_v24, %v1327_v8  ;;  %v1288_v51 = vrot.slane %v1286_v42, 1  ;;  %v4401_v52 = vld [vmem:[#allocation2 + $0x20] ss:$0 sps:$4 sm:$0x11]   ;;  %v4414_v60 = vld [vmem:[#allocation2 + $0x48] sm:$0xfe]  }
  0x5f   : > { %v376_v53 = vor.u32 %v374_v44, %v373_v19  ;;  %v377_v54 = vrot.slane %v373_v19, 4  ;;  %v384_v55 = vor.u32 %v382_v46, %v381_v37  ;;  %v386_v56 = vrot.slane %v381_v37, 4  ;;  %v4400_v19 = vld [vmem:[#allocation2 + $0x18] sm:$0xff]   ;;  %v4411_v37 = vld [vmem:[#allocation2 + $0x44] ss:$0 sps:$4 sm:$0x11]  }
  0x60   : > { %1163 = vrot.lane.b32.xlu1 %v4384_v20, %s4629_s28  ;;  %v4389_v0 = vld [vmem:[#allocation2 + $0x60] sm:$0xff]   ;;  %v1337_v43 = vsel %vm825_vm10, %v1332_v32, %v1336_v34  ;;  %v1947_v44 = vrot.slane %v4406_v35, 1  ;;  %s4635_s7 = smov 32   ;;  %v4415_v62 = vld [vmem:[#allocation2 + $0x50] ss:$0 sps:$4 sm:$0x11]  }
  0x61   : > { %v385_v57 = vsel %vm4748_vm7, %v377_v54, %v384_v55  ;;  %v393_v58 = vsel %vm4754_vm8, %v376_v53, %v392_v47  ;;  %v398_v59 = vsel %vm4706_vm2, %v386_v56, %v397_v48  ;;  %v4383_v20 = vld [vmem:[#allocation2 + $0x3c] sm:$0xff]   ;;  %v4394_v47 = vld [vmem:[#allocation2 + $0xc] sm:$0xfe]   ;;  %v1508_v55 = vrot.slane %v4411_v37, 1  ;;  %v4417_v24 = vld [vmem:[#allocation2 + $0x54] sm:$0xff]   ;;  %p235_p12 = scmp.lt.s32.totalorder %s4611_s15, 1 }
  0x62   : > { %394 = vst [vmem:[#allocation2] sm:$0xf] %v393_v58  ;;  %396 = vst.msk [vmem:[#allocation2 + $0x4] sm:$0xf] %vm390_vm6, %v385_v57  ;;  %v4410_v48 = vld [vmem:[#allocation2 + $0x3c] sm:$0xfe]   ;;  %v1949_v53 = vsel %vm1043_vm9, %v1947_v44, %v1948_v45  ;;  %v1284_v56 = vor.u32 %v1283_v41, %v1279_v40 }
  0x63   : > { %399 = vst [vmem:[#allocation2 + $0x8] sm:$0x1] %v398_v59  ;;  %v1507_v54 = vrot.slane %v4410_v48, 1  ;;  %v4405_v57 = vld [vmem:[#allocation2 + $0x2c] ss:$0 sps:$4 sm:$0x11]  }
  0x64   : > { %1167 = vrot.lane.b32.xlu1 %v4387_v39, %s4629_s28  ;;  %v1495_v58 = vrot.slane %v4394_v47, 1  ;;  %v1733_v59 = vshll.u32 %v4400_v19, 16  ;;  %v1496_v63 = vrot.slane %v4395_v49, 1  ;;  %v1510_v2 = vrot.slane %v4414_v60, 1  ;;  %v4412_v41 = vld [vmem:[#allocation2 + $0x24] sm:$0xfe]  }
  0x65   : > { %v1289_v4 = vsel %vm825_vm10, %v1284_v56, %v1288_v51  ;;  %v1511_v5 = vrot.slane %v4415_v62, 1  ;;  %v1731_v7 = vshrl.u32 %v4400_v19, 16  ;;  %v1738_v9 = vshll.u32 %v4401_v52, 16  ;;  %v4413_v42 = vld [vmem:[#allocation2 + $0x2c] ss:$0 sps:$4 sm:$0x11]  }
  0x66   : > { %v1735_v8 = vrot.slane %v1733_v59, 1  ;;  %v1745_v10 = vshll.u32 %v4404_v61, 16  ;;  %v1750_v11 = vshll.u32 %v4405_v57, 16  ;;  %v4419_v44 = vld [vmem:[#allocation2 + $0x50] ss:$0 sps:$4 sm:$0x11]  }
  0x67   : > { %v4418_v49 = vld [vmem:[#allocation2 + $0x48] sm:$0xff]   ;;  %v1950_v56 = vrot.slane %v4412_v41, 1  ;;  %v1951_v57 = vrot.slane %v4413_v42, 1  ;;  %v1786_v59 = vshll.u32 %v4419_v44, 16  ;;  %v4422_v60 = vld [vmem:[#allocation2 + $0x54] sm:$0xff]   ;;  %vm728_vm11 = vcmask 31744  }
  0x68   : > { %1171 = vrot.lane.b32.xlu1 %v4389_v0, %s4629_s28  ;;  %v1509_v0 = vsel %vm1043_vm9, %v1507_v54, %v1508_v55  ;;  %v1747_v23 = vrot.slane %v1745_v10, 1  ;;  %v1752_v32 = vrot.slane %v1750_v11, 1  ;;  %v4428_v19 = vld [vmem:[#allocation2 + $0x24] sm:$0xfe]   ;;  %v4426_v10 = vld [vmem:[#allocation2 + $0x30] sm:$0xff]   ;;  %vm946_vm12 = vcmask 64544  }
  0x69   : > { %v4381_v12 = vld [vmem:[#allocation2] sm:$0xfe]   ;;  %v4429_v37 = vld [vmem:[#allocation2 + $0x2c] ss:$0 sps:$4 sm:$0x11]   ;;  %v1501_v52 = vrot.slane %v4428_v19, 1 }
  0x6a   : > { %v4382_v13 = vld [vmem:[#allocation2 + $0x8] ss:$0 sps:$4 sm:$0x11]   ;;  %v4385_v14 = vld [vmem:[#allocation2] sm:$0xff]   ;;  %v1044_v16 = vrot.slane %v4381_v12, 1  ;;  %v4434_v3 = vld [vmem:[#allocation2 + $0x30] sm:$0xff]  }
  0x6b   : > { %v1045_v17 = vrot.slane %v4382_v13, 1  ;;  %v4386_v18 = vld [vmem:[#allocation2 + $0x8] ss:$0 sps:$4 sm:$0x11]   ;;  %v827_v21 = vshrl.u32 %v4385_v14, 16  ;;  %v829_v22 = vshll.u32 %v4385_v14, 16  ;;  %v1512_v13 = vsel %vm1043_vm9, %v1510_v2, %v1511_v5 }
  0x6c   : > { %1376 = vrot.lane.b32.xlu1 %v1301_v6, %s4632_s25  ;;  %v834_v27 = vshll.u32 %v4386_v18, 16  ;;  %v4420_v6 = vld [vmem:[#allocation2 + $0x24] sm:$0xff]   ;;  %v4421_v14 = vld [vmem:[#allocation2 + $0x2c] ss:$0 sps:$4 sm:$0x11]   ;;  %v4398_v18 = vld [vmem:[#allocation2 + $0x18] sm:$0xff]  }
  0x6d   : > { %v1046_v25 = vsel %vm1043_vm9, %v1044_v16, %v1045_v17  ;;  %v831_v31 = vrot.slane %v829_v22, 1  ;;  %v4408_v12 = vld [vmem:[#allocation2 + $0x48] sm:$0xff]   ;;  %v1303_v16 = vshrl.u32 %v4420_v6, 16  ;;  %v1305_v17 = vshll.u32 %v4420_v6, 16  ;;  %s3809_s24 = sshll.u32 %s6355_s16, 1  ;;  %s6365_s15 = smov (!%p235_p12, %s4611_s15), 1 }
  0x6e   : > { %1068 = vrot.lane.b32.xlu0 %v1046_v25, %s4630_s29  ;;  %v836_v36 = vrot.slane %v834_v27, 1  ;;  %v1743_v22 = vshrl.u32 %v4404_v61, 16  ;;  %v1740_v27 = vrot.slane %v1738_v9, 1  ;;  %v1341_v28 = vshll.u32 %v4408_v12, 16  ;;  %v4432_v61 = vld [vmem:[#allocation2 + $0x30] sm:$0xfe]  }
  0x6f   : > { %v832_v39 = vor.u32 %v831_v31, %v827_v21  ;;  %v1310_v21 = vshll.u32 %v4421_v14, 16  ;;  %v1307_v25 = vrot.slane %v1305_v17, 1  ;;  %v1736_v31 = vor.u32 %v1735_v8, %v1731_v7  ;;  %v4433_v62 = vld [vmem:[#allocation2 + $0x38] ss:$0 sps:$4 sm:$0x11]   ;;  %v4416_v17 = vld [vmem:[#allocation2 + $0x48] sm:$0xff]  }
  0x70   : > { %1521 = vrot.lane.b32.xlu1 %v1500_v15, %s4633_s27  ;;  %v1497_v15 = vsel %vm1043_vm9, %v1495_v58, %v1496_v63  ;;  %v1339_v34 = vshrl.u32 %v4408_v12, 16  ;;  %v1748_v40 = vor.u32 %v1747_v23, %v1743_v22  ;;  %v1781_v58 = vshll.u32 %v4418_v49, 16  ;;  %v4438_v63 = vld [vmem:[#allocation2 + $0x54] sm:$0xff]   ;;  %v4435_v23 = vld [vmem:[#allocation2 + $0x3c] sm:$0xff]   ;;  %s4645_s16 = smov 56  }
  0x71   : > { %v837_v46 = vsel %vm825_vm10, %v832_v39, %v836_v36  ;;  %v1308_v35 = vor.u32 %v1307_v25, %v1303_v16  ;;  %v4424_v36 = vld [vmem:[#allocation2 + $0x48] sm:$0xfe]   ;;  %v4425_v39 = vld [vmem:[#allocation2 + $0x50] ss:$0 sps:$4 sm:$0x11]   ;;  %v1741_v48 = vsel %vm825_vm10, %v1736_v31, %v1740_v27  ;;  %v1504_v5 = vrot.slane %v4432_v61, 1 }
  0x72   : > { %1165 = vrot.lane.b32.xlu0 %v4383_v20, %s4629_s28  ;;  %v4409_v20 = vld [vmem:[#allocation2 + $0x50] ss:$0 sps:$4 sm:$0x11]   ;;  %v1960_v47 = vrot.slane %v4425_v39, 1  ;;  %v1505_v6 = vrot.slane %v4433_v62, 1  ;;  %v1779_v7 = vshrl.u32 %v4418_v49, 16  ;;  %v1952_v14 = vsel %vm1043_vm9, %v1950_v56, %v1951_v57 }
  0x73   : > { %v1346_v38 = vshll.u32 %v4409_v20, 16  ;;  %v1783_v8 = vrot.slane %v1781_v58, 1  ;;  %v1788_v9 = vrot.slane %v1786_v59, 1  ;;  %v1351_v12 = vshrl.u32 %v4438_v63, 16  ;;  %v4941_v27 = vld [vmem:[#allocation2 + $0x30] sm:$0xff]  }
  0x74   : > { %1611 = vrot.lane.b32.xlu1 %v4399_v30, %s4634_s6  ;;  %v1312_v30 = vrot.slane %v1310_v21, 1  ;;  %v1506_v11 = vsel %vm1043_vm9, %v1504_v5, %v1505_v6  ;;  %v4439_v16 = vld [vmem:[#allocation2 + $0x5c] ss:$0 sps:$4 sm:$0x11]   ;;  %v1317_v22 = vshll.u32 %v4426_v10, 16  ;;  %v1791_v25 = vshrl.u32 %v4422_v60, 16 }
  0x75   : > { %v1348_v55 = vrot.slane %v1346_v38, 1  ;;  %v4427_v21 = vld [vmem:[#allocation2 + $0x38] ss:$0 sps:$4 sm:$0x11]   ;;  %v310_v38 = vld [vmem:[#allocation2 + $0x68] sm:$0x1] }
  0x76   : > { %922 = vrot.lane.b32.xlu0 %v837_v46, %s4631_s5  ;;  %v1313_v45 = vsel %vm825_vm10, %v1308_v35, %v1312_v30  ;;  %v1959_v46 = vrot.slane %v4424_v36, 1  ;;  %v1784_v30 = vor.u32 %v1783_v8, %v1779_v7  ;;  %v1315_v35 = vshrl.u32 %v4426_v10, 16  ;;  %v4443_v36 = vld [vmem:[#allocation2 + $0x38] ss:$0 sps:$4 sm:$0x11]   ;;  %s4955_s5 = sadd.s32 8, %s4847_s30 }
  0x77   : > { %v1322_v41 = vshll.u32 %v4427_v21, 16  ;;  %v311_v42 = vsel %vm4715_vm4, 0, %v310_v38  ;;  %v4431_v44 = vld [vmem:[#allocation2 + $0x5c] ss:$0 sps:$4 sm:$0x11]   ;;  %p329_p9 = scmp.lt.s32.totalorder %s4955_s5, 16 }
  0x78   : > { %1382 = vrot.lane.b32.xlu1 %v1337_v43, %s4632_s25  ;;  %v1343_v43 = vrot.slane %v1341_v28, 1  ;;  %v1961_v51 = vsel %vm1043_vm9, %v1959_v46, %v1960_v47  ;;  %312 = vst [vmem:[#allocation2 + $0x68] sm:$0x1] %v311_v42  ;;  %v1789_v49 = vsel %vm825_vm10, %v1784_v30, %v1788_v9  ;;  %p355_p10 = scmp.lt.s32.totalorder %s4955_s5, 15  ;;  %v4977_v8 = vld [vmem:[#allocation2 + $0x60] sm:$0xff]   ;;  %vm1092_vm13 = vcmask 97344  }
  0x79   : > { %v1324_v61 = vrot.slane %v1322_v41, 1  ;;  %v281_v10 = vld [vmem:[#allocation2 + $0x6c] sm:$0x1]  ;;  %s4982_s30 = scalar_select %p329_p9, 1.0, 0.0  ;;  %vm1181_vm14 = vcmask 130144  }
  0x7a   : > { %1169 = vrot.lane.b32.xlu0 %v4388_v50, %s4629_s28  ;;  %s4636_s28 = smov 28   ;;  %v1753_v50 = vsel %vm825_vm10, %v1748_v40, %v1752_v32  ;;  %v1344_v54 = vor.u32 %v1343_v43, %v1339_v34  ;;  %v4442_v34 = vld [vmem:[#allocation2 + $0x30] sm:$0xfe]   ;;  %v1319_v40 = vrot.slane %v1317_v22, 1  ;;  %s6361_s5 = smov (!%p355_p10, %s4955_s5), 15  ;;  %vm2064_vm15 = vcmask 1041408  }
  0x7b   : > { %v4947_v43 = vld [vmem:[#allocation2 + $0x54] sm:$0xfe]   ;;  %v1953_v47 = vrot.slane %v4442_v34, 1  ;;  %p332_p11 = scmp.ne.f32.partialorder %s4982_s30, %s4982_s30  ;;  %s333_s8 = sshrl.u32 %s4982_s30, 16  ;;  %v5074_v33 = vld [vmem:[#allocation2 + $0x60] sm:$0xfe]  }
  0x7c   : > { %1971 = vrot.lane.b32.xlu1 %v1949_v53, %s4635_s7  ;;  %v1502_v53 = vrot.slane %v4429_v37, 1  ;;  %v4437_v37 = vld [vmem:[#allocation2 + $0x38] ss:$0 sps:$4 sm:$0x11]   ;;  %v1962_v62 = vrot.slane %v4947_v43, 1  ;;  %s334_s9 = sand.u32 1, %s333_s8  ;;  %s5068_s8 = sadd.s32 %s3809_s24, %s6365_s15 }
  0x7d   : > { %s3957_s10 = sshll.u32 %s6361_s5, 3  ;;  %s335_s11 = sadd.s32 32767, %s334_s9  ;;  %v5012_v34 = vld [vmem:[#allocation2 + $0x44] ss:$0 sps:$4 sm:$0x11]   ;;  %vm1398_vm0 = vcmask 162944  }
  0x7e   : > { %1374 = vrot.lane.b32.xlu0 %v1289_v4, %s4632_s25  ;;  %v1503_v2 = vsel %vm1043_vm9, %v1501_v52, %v1502_v53  ;;  %v1349_v4 = vsel %vm825_vm10, %v1344_v54, %v1348_v55  ;;  %v554_v53 = vrot.slane %v4882_v26, 4  ;;  %v4960_v54 = vld [vmem:[#allocation2 + $0x3c] sm:$0xff]   ;;  %v1755_v26 = vshrl.u32 %v4941_v27, 16  ;;  %s336_s12 = sadd.s32 %s335_s11, %s4982_s30  ;;  %s359_s13 = scalar_lea.vmem %s4730_s26, %s3957_s10 }
  0x7f   : > { %v633_v5 = vld [vmem:[#allocation2 + $0x68] sm:$0x1]  ;;  %v1769_v6 = vshll.u32 %v4960_v54, 16  ;;  %v1767_v22 = vshrl.u32 %v4960_v54, 16  ;;  %s337_s14 = sand.u32 4294901760, %s336_s12  ;;  %s3810_s9 = sshll.u32 %s5068_s8, 2 }
  0x80   : > { %1527 = vrot.lane.b32.xlu1 %v1509_v0, %s4633_s27  ;;  %v4423_v0 = vld [vmem:[#allocation2 + $0x5c] ss:$0 sps:$4 sm:$0x11]   ;;  %v634_v7 = vsel %vm4706_vm2, %v554_v53, %v633_v5  ;;  %s6363_s14 = smov (%p332_p11, %s337_s14), 2143289344  ;;  %v360_v38 = vld [vmem:[%s359_s13] sm:$0xf] }
  0x81   : > { %635 = vst [vmem:[#allocation2 + $0x68] sm:$0x1] %v634_v7  ;;  %s340_s26 = sshrl.u32 %s6363_s14, 16  ;;  %v361_v43 = vld [vmem:[%s359_s13 + $0x4] sm:$0xf]  ;;  %v1957_v53 = vrot.slane %v5012_v34, 1  ;;  %s5089_s13 = scalar_lea.vmem %s6178_s2, %s3810_s9 }
  0x82   : > { %1519 = vrot.lane.b32.xlu0 %v1497_v15, %s4633_s27  ;;  %v1793_v15 = vshll.u32 %v4422_v60, 16  ;;  %v1320_v60 = vor.u32 %v1319_v40, %v1315_v35  ;;  %v4464_v35 = vld [vmem:[#allocation2 + $0x24] sm:$0xff]   ;;  %v4465_v40 = vld [vmem:[#allocation2 + $0x30] sm:$0xff]   ;;  %s362_s22 = sshll.u32 %s340_s26, 16  ;;  %s4637_s14 = smov 120   ;;  %vm1543_vm1 = vcmask 195744  }
  0x83   : > { %732 = vst.msk [vmem:[#allocation3 + $0x18] sm:$0xff] %vm728_vm11, %v4464_v35  ;;  %733 = vst.msk [vmem:[#allocation3 + $0x20] sm:$0xff] %vm728_vm11, %v4465_v40  ;;  %s363_s23 = sor.u32 %s362_s22, %s340_s26  ;;  %v4472_v34 = vld [vmem:[%s6177_s1 + $0x10] ss:$0 sps:$4 sm:$0x33]   ;;  %s4639_s26 = smov 104  }
  0x84   : > { %1529 = vrot.lane.b32.xlu1 %v1512_v13, %s4633_s27  ;;  %v1353_v13 = vshll.u32 %v4438_v63, 16  ;;  %v1795_v31 = vrot.slane %v1793_v15, 1  ;;  %v1963_v63 = vrot.slane %v4431_v44, 1  ;;  %v4450_v15 = vld [vmem:[#allocation2 + $0x60] sm:$0xfe]   ;;  %s4640_s22 = smov 96  }
  0x85   : > { %v1516_v30 = vrot.slane %v4450_v15, 1  ;;  %v5023_v44 = vld [vmem:[#allocation2 + $0x60] sm:$0xff]   ;;  %s4642_s24 = smov 80   ;;  %vm1850_vm3 = vcmask 261344   ;;  %vm2039_vm5 = vcmask 293888   ;;  %s4644_s5 = smov 64  }
  0x86   : > { %1609 = vrot.lane.b32.xlu0 %v4398_v18, %s4634_s6  ;;  %v1798_v18 = vshll.u32 %v4423_v0, 16  ;;  %v1355_v20 = vrot.slane %v1353_v13, 1  ;;  %v1796_v19 = vor.u32 %v1795_v31, %v1791_v25  ;;  %v1325_v13 = vsel %vm825_vm10, %v1320_v60, %v1324_v61  ;;  %v4467_v61 = vld [vmem:[#allocation2 + $0x48] sm:$0xff]   ;;  %s4646_s30 = smov 48   ;;  %s4647_s9 = smov 40  }
  0x87   : > { %735 = vst.msk [vmem:[#allocation3 + $0x30] sm:$0xff] %vm728_vm11, %v4467_v61  ;;  %v1803_v35 = vshrl.u32 %v5023_v44, 16 }
  0x88   : > { %1619 = vrot.lane.b32.xlu1 %v4417_v24, %s4634_s6  ;;  %v1358_v24 = vshll.u32 %v4439_v16, 16  ;;  %v1356_v28 = vor.u32 %v1355_v20, %v1351_v12  ;;  %v1800_v39 = vrot.slane %v1798_v18, 1  ;;  %v4462_v12 = vld [vmem:[#allocation2 + $0x18] sm:$0xff]   ;;  %v1964_v20 = vsel %vm1043_vm9, %v1962_v62, %v1963_v63  ;;  %v4451_v41 = vld [vmem:[#allocation2 + $0x68] ss:$0 sps:$4 sm:$0x11]  }
  0x89   : > { %731 = vst.msk [vmem:[#allocation3 + $0x10] sm:$0xff] %vm728_vm11, %v4462_v12  ;;  %v5065_v29 = vld [vmem:[#allocation2 + $0x68] ss:$0 sps:$4 sm:$0x11]  }
  0x8a   : > { %1826 = vrot.lane.b32.xlu0 %v1741_v48, %s4636_s28  ;;  %v1360_v32 = vrot.slane %v1358_v24, 1  ;;  %v1954_v48 = vrot.slane %v4443_v36, 1  ;;  %v1801_v59 = vsel %vm825_vm10, %v1796_v19, %v1800_v39  ;;  %v4445_v36 = vld [vmem:[#allocation2 + $0x68] ss:$0 sps:$4 sm:$0x11]   ;;  %v1966_v40 = vrot.slane %v5065_v29, 1 }
  0x8b   : > { %v1370_v19 = vshll.u32 %v4445_v36, 16 }
  0x8c   : > { %1378 = vrot.lane.b32.xlu1 %v1313_v45, %s4632_s25  ;;  %v1757_v45 = vshll.u32 %v4941_v27, 16  ;;  %v1361_v46 = vsel %vm825_vm10, %v1356_v28, %v1360_v32  ;;  %v1955_v55 = vsel %vm1043_vm9, %v1953_v47, %v1954_v48  ;;  %v1365_v27 = vshll.u32 %v4977_v8, 16  ;;  %v5008_v28 = vld [vmem:[#allocation2 + $0x3c] sm:$0xfe]   ;;  %v4463_v32 = vld [vmem:[#allocation2 + $0xc] sm:$0xff]  }
  0x8d   : > { %730 = vst.msk [vmem:[#allocation3 + $0x8] sm:$0xff] %vm728_vm11, %v4463_v32  ;;  %v1363_v47 = vshrl.u32 %v4977_v8, 16  ;;  %v1517_v48 = vrot.slane %v4451_v41, 1 }
  0x8e   : > { %1828 = vrot.lane.b32.xlu0 %v1753_v50, %s4636_s28  ;;  %v4446_v50 = vld [vmem:[#allocation2 + $0x54] sm:$0xfe]   ;;  %v1759_v0 = vrot.slane %v1757_v45, 1 }
  0x8f   : > { %v1513_v56 = vrot.slane %v4446_v50, 1  ;;  %v364_v50 = vstv %s363_s23  ;;  %v1518_v54 = vsel %vm1043_vm9, %v1516_v30, %v1517_v48  ;;  %v4471_v30 = vld [vmem:[%s6177_s1 + $0x8] sm:$0xff]   ;;  %s4641_s23 = smov 88  }
  0x90   : > { %1979 = vrot.lane.b32.xlu1 %v1961_v51, %s4635_s7  ;;  %v4447_v51 = vld [vmem:[#allocation2 + $0x5c] ss:$0 sps:$4 sm:$0x11]   ;;  %v1760_v25 = vor.u32 %v1759_v0, %v1755_v26 }
  0x91   : > { %v1514_v57 = vrot.slane %v4447_v51, 1 }
  0x92   : > { %1384 = vrot.lane.b32.xlu0 %v1349_v4, %s4632_s25  ;;  %v4970_v4 = vld [vmem:[#allocation2 + $0x44] ss:$0 sps:$4 sm:$0x11]  }
  0x93   : > { %v1515_v9 = vsel %vm1043_vm9, %v1513_v56, %v1514_v57  ;;  %v1774_v24 = vshll.u32 %v4970_v4, 16  ;;  %v367_v56 = vmul.bf16 %v364_v50, %v361_v43  ;;  %v4466_v57 = vld [vmem:[#allocation2 + $0x3c] sm:$0xff]  }
  0x94   : > { %1523 = vrot.lane.b32.xlu1 %v1503_v2, %s4633_s27  ;;  %v1762_v2 = vshll.u32 %v4437_v37, 16  ;;  %v1956_v37 = vrot.slane %v5008_v28, 1  ;;  %734 = vst.msk [vmem:[#allocation3 + $0x28] sm:$0xff] %vm728_vm11, %v4466_v57  ;;  %v1965_v28 = vrot.slane %v5074_v33, 1 }
  0x95   : > { %v645_v26 = vshrl.u32 %v367_v56, 16  ;;  %v648_v0 = vshll.u32 %v367_v56, 16 }
  0x96   : > { %1973 = vrot.lane.b32.xlu0 %v1952_v14, %s4635_s7  ;;  %v282_v14 = vsel %vm4706_vm2, 0, %v281_v10  ;;  %v1764_v21 = vrot.slane %v1762_v2, 1  ;;  %v1372_v2 = vrot.slane %v1370_v19, 1  ;;  %v1958_v1 = vsel %vm1043_vm9, %v1956_v37, %v1957_v53 }
  0x97   : > { %283 = vst [vmem:[#allocation2 + $0x6c] sm:$0x1] %v282_v14  ;;  %v647_v10 = vrot.slane %v645_v26, 7 }
  0x98   : > { %1525 = vrot.lane.b32.xlu1 %v1506_v11, %s4633_s27  ;;  %v1765_v42 = vsel %vm825_vm10, %v1760_v25, %v1764_v21 }
  0x9a   : > { %1617 = vrot.lane.b32.xlu0 %v4416_v17, %s4634_s6  ;;  %v313_v17 = vld [vmem:[#allocation2 + $0x74] sm:$0x1] }
  0x9b   : > { %v314_v18 = vsel %vm4715_vm4, 0, %v313_v17  ;;  %v650_v17 = vor.u32 %v648_v0, %v647_v10  ;;  %vm1995_vm4 = vcmask 294144  }
  0x9c   : > { %1615 = vrot.lane.b32.xlu1 %v4435_v23, %s4634_s6  ;;  %v4952_v52 = vpop.permute.xlu0 %1157  ;;  %v4963_v58 = vpop.permute.xlu1 %1159  ;;  %315 = vst [vmem:[#allocation2 + $0x74] sm:$0x1] %v314_v18  ;;  %v1771_v23 = vrot.slane %v1769_v6, 1  ;;  %v4468_v6 = vld [vmem:[#allocation2 + $0x54] sm:$0xff]   ;;  %v652_v18 = vrot.slane %v647_v10, 4 }
  0x9d   : > { %736 = vst.msk [vmem:[#allocation3 + $0x38] sm:$0xff] %vm728_vm11, %v4468_v6 }
  0x9e   : > { %1834 = vrot.lane.b32.xlu0 %v1789_v49, %s4636_s28  ;;  %v1772_v45 = vor.u32 %v1771_v23, %v1767_v22  ;;  %v1367_v49 = vrot.slane %v1365_v27, 1  ;;  %v657_v4 = vld [vmem:[#allocation2 + $0x6c] sm:$0xf]  ;;  %v4470_v22 = vld [vmem:[%s6177_s1] sm:$0xff]  }
  0x9f   : > { %3971 = vmatprep.subr.bf16.mxu0 %v4470_v22  ;;  %3993 = vmatprep.subr.bf16.mxu1 %v4470_v22 }
  0xa0   : > { %1386 = vrot.lane.b32.xlu1 %v1361_v46, %s4632_s25  ;;  %v1776_v46 = vrot.slane %v1774_v24, 1  ;;  %v1368_v8 = vor.u32 %v1367_v49, %v1363_v47  ;;  %3972 = vmatpush3.bf16.msra.mxu0 %v4470_v22 }
  0xa1   : > { %v4995_v16 = vpop.permute.xlu1 %1070  ;;  %3996 = vmatpush3.bf16.msra.mxu1 %v4470_v22  ;;  %3973 = vmatprep.subr.bf16.mxu0 %v4471_v30 }
  0xa2   : > { %1836 = vrot.lane.b32.xlu0 %v1801_v59, %s4636_s28  ;;  %v4984_v11 = vpop.permute.xlu0 %1161  ;;  %v1805_v59 = vshll.u32 %v5023_v44, 16  ;;  %v1777_v7 = vsel %vm825_vm10, %v1772_v45, %v1776_v46  ;;  %v1373_v23 = vsel %vm825_vm10, %v1368_v8, %v1372_v2  ;;  %3994 = vmatprep.subr.bf16.mxu1 %v4471_v30 }
  0xa3   : > { %v661_v5 = vld [vmem:[#allocation2 + $0x74] sm:$0x1] }
  0xa4   : > { %1975 = vrot.lane.b32.xlu1 %v1955_v55, %s4635_s7  ;;  %v366_v55 = vmul.bf16 %v364_v50, %v360_v38  ;;  %v662_v25 = vsel %vm4706_vm2, %v652_v18, %v661_v5  ;;  %v1807_v36 = vrot.slane %v1805_v59, 1  ;;  %3974 = vmatpush3.bf16.msra.mxu0 %v4471_v30  ;;  %v2344_v59 = vld [vmem:[%s5089_s13] sm:$0xf]  ;;  %vm1633_vm2 = vcmask 228544  }
  0xa5   : > { %663 = vst [vmem:[#allocation2 + $0x74] sm:$0x1] %v662_v25  ;;  %3997 = vmatpush3.bf16.msra.mxu1 %v4471_v30  ;;  %3999 = vmatprep.subr.msk.bf16.mxu0 %vm2064_vm15, %v4472_v34  ;;  %v2345_v2 = vunpack.c.l.bf16 %v2344_v59 }
  0xa6   : > { %1380 = vrot.lane.b32.xlu0 %v1325_v13, %s4632_s25  ;;  %v5010_v31 = vpop.permute.xlu0 %1072  ;;  %v637_v62 = vshrl.u32 %v366_v55, 16  ;;  %v640_v63 = vshll.u32 %v366_v55, 16  ;;  %v4469_v13 = vld [vmem:[#allocation2] sm:$0xff]   ;;  %4000 = vmatprep.subr.msk.bf16.mxu1 %vm2064_vm15, %v4472_v34 }
  0xa7   : > { %v5018_v39 = vpop.permute.xlu1 %1074  ;;  %729 = vst.msk [vmem:[#allocation3] sm:$0xff] %vm728_vm11, %v4469_v13  ;;  %v2348_v18 = vrot.slane %v2345_v2, 7  ;;  %v2351_v25 = vrot.slane %v2345_v2, 3  ;;  %v2352_v30 = vrot.slane %v2345_v2, 4  ;;  %v2353_v29 = vrot.slane %v2345_v2, 5 }
  0xa8   : > { %1531 = vrot.lane.b32.xlu1 %v1515_v9, %s4633_s27  ;;  %v639_v9 = vrot.slane %v637_v62, 7  ;;  %v1967_v62 = vsel %vm1043_vm9, %v1965_v28, %v1966_v40  ;;  %vm2239_vm11 = vcmask 1046534  }
  0xaa   : > { %1981 = vrot.lane.b32.xlu0 %v1964_v20, %s4635_s7  ;;  %v642_v14 = vor.u32 %v640_v63, %v639_v9  ;;  %v643_v15 = vrot.slane %v639_v9, 4  ;;  %v4455_v20 = vld [vmem:[#allocation2 + $0x68] ss:$0 sps:$4 sm:$0x11]  }
  0xab   : > { %v1810_v38 = vshll.u32 %v4455_v20, 16  ;;  %v2441_v20 = vld [vmem:[%s5089_s13] sm:$0xf] }
  0xac   : > { %1533 = vrot.lane.b32.xlu1 %v1518_v54, %s4633_s27  ;;  %v651_v24 = vsel %vm4748_vm7, %v643_v15, %v650_v17  ;;  %v4457_v47 = vld [vmem:[#allocation2 + $0x74] ss:$0 sps:$4 sm:$0x11]   ;;  %v2347_v17 = vrot.slane %v2345_v2, 6  ;;  %v2442_v22 = vunpack.c.l.bf16 %v2441_v20  ;;  %s4643_s27 = smov 72  }
  0xad   : > { %660 = vst.msk [vmem:[#allocation2 + $0x70] sm:$0xf] %vm390_vm6, %v651_v24  ;;  %v1812_v44 = vrot.slane %v1810_v38, 1  ;;  %v4461_v53 = vld [vmem:[#allocation2 + $0x74] ss:$0 sps:$4 sm:$0x11]  }
  0xae   : > { %1613 = vrot.lane.b32.xlu0 %v4434_v3, %s4634_s6  ;;  %v658_v3 = vsel %vm4754_vm8, %v642_v14, %v657_v4  ;;  %v1969_v26 = vrot.slane %v4461_v53, 1  ;;  %v4080_v24 = vpack.i.bf16 %v2348_v18, %v2347_v17  ;;  %v2444_v33 = vrot.slane %v2442_v22, 5  ;;  %v2829_v18 = vld [vmem:[%s5089_s13] sm:$0xf] }
  0xaf   : > { %659 = vst [vmem:[#allocation2 + $0x6c] sm:$0xf] %v658_v3  ;;  %v2350_v3 = vrot.slane %v2345_v2, 2  ;;  %v2447_v28 = vrot.slane %v2442_v22, 1  ;;  %v2448_v40 = vrot.slane %v2442_v22, 2  ;;  %vm2242_vm8 = vcmask 1047559  }
  0xb1   : > { %v5029_v51 = vpop.permute.xlu0 %1076 }
  0xb2   : > { %1830 = vrot.lane.b32.xlu0 %v1765_v42, %s4636_s28  ;;  %v2066_v42 = vsel %vm2064_vm15, %v4472_v34, 0  ;;  %v2538_v34 = vld [vmem:[%s5089_s13] sm:$0xf] }
  0xb3   : > { %3976 = vmatpush3.bf16.msra.mxu0 %v2066_v42  ;;  %3998 = vmatpush3.bf16.msra.mxu1 %v2066_v42  ;;  %v2539_v38 = vunpack.c.l.bf16 %v2538_v34  ;;  %v2450_v42 = vrot.slane %v2442_v22, 4 }
  0xb5   : > { %v5035_v60 = vpop.permute.xlu1 %1078 }
  0xb6   : > { %1832 = vrot.lane.b32.xlu0 %v1777_v7, %s4636_s28  ;;  %v4453_v43 = vld [vmem:[#allocation2 + $0x6c] sm:$0xff]  }
  0xb7   : > { %1623 = vrot.lane.b32.xlu1 %v4453_v43, %s4634_s6  ;;  %v4456_v46 = vld [vmem:[#allocation2 + $0x6c] sm:$0xff]  }
  0xb8   : > { %v4460_v48 = vld [vmem:[#allocation2 + $0x6c] sm:$0xfe]   ;;  %v1815_v37 = vshrl.u32 %v4456_v46, 16  ;;  %v1817_v50 = vshll.u32 %v4456_v46, 16 }
  0xb9   : > { %v1968_v63 = vrot.slane %v4460_v48, 1 }
  0xba   : > { %1388 = vrot.lane.b32.xlu0 %v1373_v23, %s4632_s25  ;;  %v1819_v54 = vrot.slane %v1817_v50, 1  ;;  %v2545_v50 = vrot.slane %v2539_v38, 1 }
  0xbb   : > { %v1970_v9 = vsel %vm1043_vm9, %v1968_v63, %v1969_v26  ;;  %v2732_v63 = vld [vmem:[%s5089_s13] sm:$0xf] }
  0xbc   : > { %v5041_v12 = vpop.permute.xlu0 %1080  ;;  %v1820_v61 = vor.u32 %v1819_v54, %v1815_v37  ;;  %v4130_v59 = vpack.i.bf16 %v2545_v50, %v2539_v38 }
  0xbe   : > { %v5046_v21 = vpop.permute.xlu1 %1082  ;;  %1977 = vrot.lane.b32.xlu0 %v1958_v1, %s4635_s7  ;;  %v4090_v1 = vpack.i.bf16 %v2351_v25, %v2350_v3 }
  0xc0   : > { %v925_v27 = vpop.permute.xlu0 %924 }
  0xc1   : > { %948 = vst.msk [vmem:[#allocation3 + $0x8] sm:$0xff] %vm946_vm12, %v925_v27 }
  0xc2   : > { %v927_v32 = vpop.permute.xlu1 %926  ;;  %1094 = vst.msk [vmem:[#allocation3 + $0x8] sm:$0xff] %vm1092_vm13, %v4995_v16 }
  0xc3   : > { %949 = vst.msk [vmem:[#allocation3 + $0x10] sm:$0xff] %vm946_vm12, %v927_v32  ;;  %v2445_v32 = vrot.slane %v2442_v22, 6 }
  0xc4   : > { %1183 = vst.msk [vmem:[#allocation3 + $0x8] sm:$0xff] %vm1181_vm14, %v4963_v58  ;;  %v931_v16 = vpop.permute.xlu0 %930  ;;  %v4452_v58 = vld [vmem:[#allocation2 + $0x60] sm:$0xff]  }
  0xc5   : > { %1095 = vst.msk [vmem:[#allocation3 + $0x10] sm:$0xff] %vm1092_vm13, %v5010_v31  ;;  %v2247_v31 = vld [vmem:[%s5089_s13] sm:$0xf]  ;;  %1621 = vrot.lane.b32.xlu0 %v4452_v58, %s4634_s6  ;;  %v4100_v58 = vpack.i.bf16 %v2445_v32, %v2444_v33 }
  0xc6   : > { %951 = vst.msk [vmem:[#allocation3 + $0x20] sm:$0xff] %vm946_vm12, %v931_v16  ;;  %v929_v41 = vpop.permute.xlu1 %928  ;;  %v2248_v19 = vunpack.c.l.bf16 %v2247_v31  ;;  %v4095_v16 = vpack.i.bf16 %v2353_v29, %v2352_v30  ;;  %v2449_v31 = vrot.slane %v2442_v22, 3 }
  0xc7   : > { %1184 = vst.msk [vmem:[#allocation3 + $0x10] sm:$0xff] %vm1181_vm14, %v4984_v11  ;;  %v1808_v11 = vor.u32 %v1807_v36, %v1803_v35  ;;  %v2446_v36 = vrot.slane %v2442_v22, 7 }
  0xc8   : > { %1097 = vst.msk [vmem:[#allocation3 + $0x20] sm:$0xff] %vm1092_vm13, %v5029_v51  ;;  %v935_v45 = vpop.permute.xlu0 %934  ;;  %v1822_v51 = vshll.u32 %v4457_v47, 16  ;;  %v2250_v57 = vrot.slane %v2248_v19, 7  ;;  %v2252_v5 = vrot.slane %v2248_v19, 2  ;;  %v2253_v7 = vrot.slane %v2248_v19, 3 }
  0xc9   : > { %950 = vst.msk [vmem:[#allocation3 + $0x18] sm:$0xff] %vm946_vm12, %v929_v41  ;;  %953 = vst.msk [vmem:[#allocation3 + $0x30] sm:$0xff] %vm946_vm12, %v935_v45  ;;  %v2254_v8 = vrot.slane %v2248_v19, 4  ;;  %v2255_v10 = vrot.slane %v2248_v19, 5  ;;  %v4105_v43 = vpack.i.bf16 %v2442_v22, %v2446_v36  ;;  %v2542_v45 = vrot.slane %v2539_v38, 5 }
  0xca   : > { %1096 = vst.msk [vmem:[#allocation3 + $0x18] sm:$0xff] %vm1092_vm13, %v5018_v39  ;;  %v933_v49 = vpop.permute.xlu1 %932  ;;  %1099 = vst.msk [vmem:[#allocation3 + $0x30] sm:$0xff] %vm1092_vm13, %v5041_v12  ;;  %v1813_v39 = vsel %vm825_vm10, %v1808_v11, %v1812_v44  ;;  %v1824_v55 = vrot.slane %v1822_v51, 1  ;;  %v4060_v6 = vpack.i.bf16 %v2248_v19, %v2250_v57  ;;  %v2256_v12 = vrot.slane %v2248_v19, 6  ;;  %v2635_v47 = vld [vmem:[%s5089_s13] sm:$0xf] }
  0xcb   : > { %952 = vst.msk [vmem:[#allocation3 + $0x28] sm:$0xff] %vm946_vm12, %v933_v49  ;;  %1838 = vrot.lane.b32.xlu0 %v1813_v39, %s4636_s28  ;;  %v4070_v15 = vpack.i.bf16 %v2254_v8, %v2253_v7  ;;  %v4110_v11 = vpack.i.bf16 %v2448_v40, %v2447_v28  ;;  %v2541_v44 = vrot.slane %v2539_v38, 4  ;;  %v2543_v49 = vrot.slane %v2539_v38, 6 }
  0xcc   : > { %1098 = vst.msk [vmem:[#allocation3 + $0x28] sm:$0xff] %vm1092_vm13, %v5035_v60  ;;  %v1825_v0 = vsel %vm825_vm10, %v1820_v61, %v1824_v55  ;;  %v2251_v60 = vrot.slane %v2248_v19, 1  ;;  %v4075_v23 = vpack.i.bf16 %v2256_v12, %v2255_v10  ;;  %v2544_v19 = vrot.slane %v2539_v38, 7 }
  0xcd   : > { %1840 = vrot.lane.b32.xlu1 %v1825_v0, %s4636_s28  ;;  %s4638_s28 = smov 112   ;;  %v4115_v39 = vpack.i.bf16 %v2450_v42, %v2449_v31  ;;  %v4120_v37 = vpack.i.bf16 %v2542_v45, %v2541_v44  ;;  %v2636_v51 = vunpack.c.l.bf16 %v2635_v47  ;;  %v2547_v57 = vrot.slane %v2539_v38, 3 }
  0xce   : > { %v937_v56 = vpop.permute.xlu1 %936  ;;  %v4065_v14 = vpack.i.bf16 %v2252_v5, %v2251_v60  ;;  %v4125_v55 = vpack.i.bf16 %v2544_v19, %v2543_v49 }
  0xcf   : > { %954 = vst.msk [vmem:[#allocation3 + $0x38] sm:$0xff] %vm946_vm12, %v937_v56  ;;  %1983 = vrot.lane.b32.xlu0 %v1967_v62, %s4635_s7  ;;  %v2546_v56 = vrot.slane %v2539_v38, 2  ;;  %v2638_v61 = vrot.slane %v2636_v51, 3  ;;  %v2639_v62 = vrot.slane %v2636_v51, 4  ;;  %v2640_v60 = vrot.slane %v2636_v51, 5 }
  0xd0   : > { %1100 = vst.msk [vmem:[#allocation3 + $0x38] sm:$0xff] %vm1092_vm13, %v5046_v21  ;;  %v2349_v21 = vrot.slane %v2345_v2, 1  ;;  %v2641_v5 = vrot.slane %v2636_v51, 6  ;;  %v2642_v7 = vrot.slane %v2636_v51, 7  ;;  %v2643_v10 = vrot.slane %v2636_v51, 1 }
  0xd1   : > { %1985 = vrot.lane.b32.xlu1 %v1970_v9, %s4635_s7  ;;  %v2644_v12 = vrot.slane %v2636_v51, 2 }
  0xd2   : > { %v1164_v4 = vpop.permute.xlu1 %1163  ;;  %v4085_v27 = vpack.i.bf16 %v2349_v21, %v2345_v2  ;;  %v2733_v2 = vunpack.c.l.bf16 %v2732_v63 }
  0xd3   : > { %1185 = vst.msk [vmem:[#allocation3 + $0x18] sm:$0xff] %vm1181_vm14, %v1164_v4  ;;  %4061 = vrot.lane.b32.xlu0 %v4060_v6, %s4637_s14  ;;  %v4135_v4 = vpack.i.bf16 %v2547_v57, %v2546_v56  ;;  %v4140_v6 = vpack.i.bf16 %v2639_v62, %v2638_v61 }
  0xd4   : > { %v2736_v17 = vrot.slane %v2733_v2, 3  ;;  %v2737_v22 = vrot.slane %v2733_v2, 4  ;;  %v2739_v25 = vrot.slane %v2733_v2, 6 }
  0xd5   : > { %4066 = vrot.lane.b32.xlu1 %v4065_v14, %s4637_s14  ;;  %v4150_v14 = vpack.i.bf16 %v2636_v51, %v2642_v7  ;;  %v3213_v7 = vld [vmem:[%s5089_s13] sm:$0xf] }
  0xd6   : > { %v1168_v13 = vpop.permute.xlu1 %1167 }
  0xd7   : > { %1187 = vst.msk [vmem:[#allocation3 + $0x28] sm:$0xff] %vm1181_vm14, %v1168_v13  ;;  %4071 = vrot.lane.b32.xlu0 %v4070_v15, %s4637_s14  ;;  %v4145_v13 = vpack.i.bf16 %v2641_v5, %v2640_v60  ;;  %v2735_v15 = vrot.slane %v2733_v2, 2  ;;  %v3116_v5 = vld [vmem:[%s5089_s13] sm:$0xf] }
  0xd9   : > { %4076 = vrot.lane.b32.xlu1 %v4075_v23, %s4637_s14  ;;  %v2830_v23 = vunpack.c.l.bf16 %v2829_v18  ;;  %v4160_v3 = vpack.i.bf16 %v2736_v17, %v2735_v15  ;;  %v5208_v17 = vunpack.c.l.bf16 %v3213_v7 }
  0xda   : > { %v1172_v35 = vpop.permute.xlu1 %1171 }
  0xdb   : > { %4081 = vrot.lane.b32.xlu0 %v4080_v24, %s4638_s28  ;;  %1189 = vst.msk [vmem:[#allocation3 + $0x38] sm:$0xff] %vm1181_vm14, %v1172_v35  ;;  %v2738_v24 = vrot.slane %v2733_v2, 5  ;;  %v2832_v34 = vrot.slane %v2830_v23, 1  ;;  %v2833_v35 = vrot.slane %v2830_v23, 2  ;;  %v2835_v28 = vrot.slane %v2830_v23, 4 }
  0xdc   : > { %v2836_v31 = vrot.slane %v2830_v23, 5  ;;  %v2837_v42 = vrot.slane %v2830_v23, 6 }
  0xdd   : > { %4086 = vrot.lane.b32.xlu1 %v4085_v27, %s4638_s28  ;;  %v2740_v27 = vrot.slane %v2733_v2, 7  ;;  %v4165_v33 = vpack.i.bf16 %v2738_v24, %v2737_v22  ;;  %v3218_v24 = vrot.slane %v5208_v17, 7 }
  0xde   : > { %v1377_v41 = vpop.permute.xlu1 %1376  ;;  %v4190_v47 = vpack.i.bf16 %v2837_v42, %v2836_v31 }
  0xdf   : > { %4091 = vrot.lane.b32.xlu0 %v4090_v1, %s4638_s28  ;;  %1400 = vst.msk [vmem:[#allocation3 + $0x8] sm:$0xff] %vm1398_vm0, %v1377_v41  ;;  %v2741_v1 = vrot.slane %v2733_v2, 1  ;;  %v4170_v32 = vpack.i.bf16 %v2740_v27, %v2739_v25  ;;  %v4180_v41 = vpack.i.bf16 %v2833_v35, %v2832_v34 }
  0xe0   : > { %v1069_v48 = vpop.permute.xlu0 %1068 }
  0xe1   : > { %4096 = vrot.lane.b32.xlu1 %v4095_v16, %s4638_s28  ;;  %v2926_v16 = vld [vmem:[%s5089_s13] sm:$0xf]  ;;  %v4175_v40 = vpack.i.bf16 %v2741_v1, %v2733_v2 }
  0xe2   : > { %v1522_v46 = vpop.permute.xlu1 %1521 }
  0xe3   : > { %4101 = vrot.lane.b32.xlu0 %v4100_v58, %s4639_s26  ;;  %1545 = vst.msk [vmem:[#allocation3 + $0x8] sm:$0xff] %vm1543_vm1, %v1522_v46  ;;  %v2834_v58 = vrot.slane %v2830_v23, 3  ;;  %v2838_v46 = vrot.slane %v2830_v23, 7 }
  0xe4   : > { %v1166_v54 = vpop.permute.xlu0 %1165 }
  0xe5   : > { %4106 = vrot.lane.b32.xlu1 %v4105_v43, %s4639_s26  ;;  %1186 = vst.msk [vmem:[#allocation3 + $0x20] sm:$0xff] %vm1181_vm14, %v1166_v54  ;;  %v4185_v45 = vpack.i.bf16 %v2835_v28, %v2834_v58 }
  0xe6   : > { %v1612_v53 = vpop.permute.xlu1 %1611 }
  0xe7   : > { %4111 = vrot.lane.b32.xlu0 %v4110_v11, %s4639_s26  ;;  %1635 = vst.msk [vmem:[#allocation3 + $0x8] sm:$0xff] %vm1633_vm2, %v1612_v53  ;;  %v2927_v11 = vunpack.c.l.bf16 %v2926_v16 }
  0xe8   : > { %v923_v0 = vpop.permute.xlu0 %922 }
  0xe9   : > { %4116 = vrot.lane.b32.xlu1 %v4115_v39, %s4639_s26  ;;  %947 = vst.msk [vmem:[#allocation3] sm:$0xff] %vm946_vm12, %v923_v0  ;;  %v2929_v49 = vrot.slane %v2927_v11, 1  ;;  %v3019_v39 = vld [vmem:[%s5089_s13] sm:$0xf]  ;;  %v2930_v50 = vrot.slane %v2927_v11, 2  ;;  %v2931_v51 = vrot.slane %v2927_v11, 3 }
  0xea   : > { %v1383_v26 = vpop.permute.xlu1 %1382  ;;  %1093 = vst.msk [vmem:[#allocation3] sm:$0xff] %vm1092_vm13, %v1069_v48  ;;  %v2933_v56 = vrot.slane %v2927_v11, 5  ;;  %v5185_v57 = vunpack.c.l.bf16 %v3019_v39  ;;  %v2934_v63 = vrot.slane %v2927_v11, 6  ;;  %v3601_v39 = vld [vmem:[%s5089_s13] sm:$0xf] }
  0xeb   : > { %4121 = vrot.lane.b32.xlu0 %v4120_v37, %s4640_s22  ;;  %1403 = vst.msk [vmem:[#allocation3 + $0x20] sm:$0xff] %vm1398_vm0, %v1383_v26  ;;  %v4195_v37 = vpack.i.bf16 %v2830_v23, %v2838_v46  ;;  %v4200_v54 = vpack.i.bf16 %v2929_v49, %v2927_v11  ;;  %v4205_v62 = vpack.i.bf16 %v2931_v51, %v2930_v50  ;;  %v2935_v26 = vrot.slane %v2927_v11, 7 }
  0xec   : > { %1182 = vst.msk [vmem:[#allocation3] sm:$0xff] %vm1181_vm14, %v4952_v52  ;;  %v1170_v9 = vpop.permute.xlu0 %1169  ;;  %v4155_v52 = vpack.i.bf16 %v2644_v12, %v2643_v10  ;;  %v3023_v2 = vrot.slane %v5185_v57, 1  ;;  %v5203_v10 = vunpack.c.l.bf16 %v3116_v5  ;;  %v3026_v15 = vrot.slane %v5185_v57, 4 }
  0xed   : > { %4126 = vrot.lane.b32.xlu1 %v4125_v55, %s4640_s22  ;;  %1188 = vst.msk [vmem:[#allocation3 + $0x30] sm:$0xff] %vm1181_vm14, %v1170_v9  ;;  %v2932_v55 = vrot.slane %v2927_v11, 4  ;;  %v3022_v9 = vrot.slane %v5185_v57, 7  ;;  %v3217_v23 = vrot.slane %v5208_v17, 6  ;;  %v3027_v16 = vrot.slane %v5185_v57, 5 }
  0xee   : > { %v1972_v8 = vpop.permute.xlu1 %1971  ;;  %v3123_v34 = vrot.slane %v5203_v10, 3  ;;  %v3028_v58 = vrot.slane %v5185_v57, 6  ;;  %v3125_v46 = vrot.slane %v5203_v10, 5  ;;  %v3220_v50 = vrot.slane %v5208_v17, 2 }
  0xef   : > { %4131 = vrot.lane.b32.xlu0 %v4130_v59, %s4640_s22  ;;  %v4210_v60 = vpack.i.bf16 %v2933_v56, %v2932_v55  ;;  %v3221_v51 = vrot.slane %v5208_v17, 3  ;;  %v3504_v56 = vld [vmem:[%s5089_s13] sm:$0xf] }
  0xf0   : > { %v1375_v21 = vpop.permute.xlu0 %1374 }
  0xf1   : > { %4136 = vrot.lane.b32.xlu1 %v4135_v4, %s4640_s22  ;;  %1399 = vst.msk [vmem:[#allocation3] sm:$0xff] %vm1398_vm0, %v1375_v21  ;;  %v3024_v4 = vrot.slane %v5185_v57, 2  ;;  %v3120_v21 = vrot.slane %v5203_v10, 7 }
  0xf2   : > { %v1528_v20 = vpop.permute.xlu1 %1527 }
  0xf3   : > { %4141 = vrot.lane.b32.xlu0 %v4140_v6, %s4641_s23  ;;  %1548 = vst.msk [vmem:[#allocation3 + $0x20] sm:$0xff] %vm1543_vm1, %v1528_v20  ;;  %v4220_v20 = vpack.i.bf16 %v5185_v57, %v3022_v9  ;;  %v4230_v27 = vpack.i.bf16 %v5203_v10, %v3120_v21 }
  0xf4   : > { %v1520_v29 = vpop.permute.xlu0 %1519 }
  0xf5   : > { %4146 = vrot.lane.b32.xlu1 %v4145_v13, %s4641_s23  ;;  %1544 = vst.msk [vmem:[#allocation3] sm:$0xff] %vm1543_vm1, %v1520_v29  ;;  %v4225_v13 = vpack.i.bf16 %v3024_v4, %v3023_v2  ;;  %v3121_v29 = vrot.slane %v5203_v10, 1 }
  0xf6   : > { %v1530_v30 = vpop.permute.xlu1 %1529 }
  0xf7   : > { %4151 = vrot.lane.b32.xlu0 %v4150_v14, %s4641_s23  ;;  %v3025_v14 = vrot.slane %v5185_v57, 3  ;;  %v5265_v57 = vunpack.c.l.bf16 %v3601_v39 }
  0xf8   : > { %v1610_v38 = vpop.permute.xlu0 %1609 }
  0xf9   : > { %4156 = vrot.lane.b32.xlu1 %v4155_v52, %s4641_s23  ;;  %1634 = vst.msk [vmem:[#allocation3] sm:$0xff] %vm1633_vm2, %v1610_v38  ;;  %v4235_v22 = vpack.i.bf16 %v3026_v15, %v3025_v14  ;;  %v3606_v2 = vrot.slane %v5265_v57, 3  ;;  %v3219_v15 = vrot.slane %v5208_v17, 1 }
  0xfa   : > { %v1620_v36 = vpop.permute.xlu1 %1619 }
  0xfb   : > { %4161 = vrot.lane.b32.xlu0 %v4160_v3, %s4642_s24 }
  0xfc   : > { %v1827_v44 = vpop.permute.xlu0 %1826 }
  0xfd   : > { %4166 = vrot.lane.b32.xlu1 %v4165_v33, %s4642_s24  ;;  %1851 = vst.msk [vmem:[#allocation3] sm:$0xff] %vm1850_vm3, %v1827_v44  ;;  %v4245_v33 = vpack.i.bf16 %v3218_v24, %v3217_v23  ;;  %v4250_v44 = vpack.i.bf16 %v3028_v58, %v3027_v16 }
  0xfe   : > { %v1379_v43 = vpop.permute.xlu1 %1378  ;;  %1996 = vst.msk [vmem:[#allocation3] sm:$0xff] %vm1995_vm4, %v1972_v8  ;;  %v4215_v8 = vpack.i.bf16 %v2935_v26, %v2934_v63  ;;  %v5271_v26 = vunpack.c.l.bf16 %v3504_v56 }
  0xff   : > { %4171 = vrot.lane.b32.xlu0 %v4170_v32, %s4642_s24  ;;  %1401 = vst.msk [vmem:[#allocation3 + $0x10] sm:$0xff] %vm1398_vm0, %v1379_v43  ;;  %v3122_v32 = vrot.slane %v5203_v10, 2  ;;  %v3407_v43 = vld [vmem:[%s5089_s13] sm:$0xf] }
 0x100   : > { %v1829_v19 = vpop.permute.xlu0 %1828  ;;  %v5253_v49 = vunpack.c.l.bf16 %v3407_v43  ;;  %v3509_v7 = vrot.slane %v5271_v26, 4 }
 0x101   : > { %4176 = vrot.lane.b32.xlu1 %v4175_v40, %s4642_s24  ;;  %1852 = vst.msk [vmem:[#allocation3 + $0x8] sm:$0xff] %vm1850_vm3, %v1829_v19  ;;  %v4255_v40 = vpack.i.bf16 %v3123_v34, %v3122_v32  ;;  %v3608_v32 = vrot.slane %v5265_v57, 5 }
 0x102   : > { %v5179_v48 = vpop.permute.xlu1 %1979  ;;  %v3414_v55 = vrot.slane %v5253_v49, 7 }
 0x103   : > { %4181 = vrot.lane.b32.xlu0 %v4180_v41, %s4643_s27  ;;  %v3216_v41 = vrot.slane %v5208_v17, 5 }
 0x104   : > { %v1385_v59 = vpop.permute.xlu0 %1384 }
 0x105   : > { %4186 = vrot.lane.b32.xlu1 %v4185_v45, %s4643_s27  ;;  %1404 = vst.msk [vmem:[#allocation3 + $0x28] sm:$0xff] %vm1398_vm0, %v1385_v59  ;;  %v2004_v61 = vld [vmem:[#allocation3] sm:$0xff]  ;;  %v3124_v45 = vrot.slane %v5203_v10, 4 }
 0x106   : > { %v1524_v53 = vpop.permute.xlu1 %1523  ;;  %1549 = vst.msk [vmem:[#allocation3 + $0x28] sm:$0xff] %vm1543_vm1, %v1530_v30  ;;  %3977 = vmatprep.mubr.msk.bf16.mxu0 %vm2039_vm5, %v2004_v61  ;;  %v3119_v30 = vrot.slane %v5203_v10, 6  ;;  %v4270_v61 = vpack.i.bf16 %v3221_v51, %v3220_v50  ;;  %v3604_v50 = vrot.slane %v5265_v57, 1 }
 0x107   : > { %4191 = vrot.lane.b32.xlu0 %v4190_v47, %s4643_s27  ;;  %1546 = vst.msk [vmem:[#allocation3 + $0x10] sm:$0xff] %vm1543_vm1, %v1524_v53  ;;  %v4265_v47 = vpack.i.bf16 %v5208_v17, %v3216_v41 }
 0x108   : > { %1639 = vst.msk [vmem:[#allocation3 + $0x28] sm:$0xff] %vm1633_vm2, %v1620_v36  ;;  %v1974_v6 = vpop.permute.xlu0 %1973  ;;  %v3310_v36 = vld [vmem:[%s5089_s13] sm:$0xf]  ;;  %v4240_v38 = vpack.i.bf16 %v3121_v29, %v3119_v30 }
 0x109   : > { %4196 = vrot.lane.b32.xlu1 %v4195_v37, %s4643_s27  ;;  %1997 = vst.msk [vmem:[#allocation3 + $0x8] sm:$0xff] %vm1995_vm4, %v1974_v6  ;;  %v5238_v31 = vunpack.c.l.bf16 %v3310_v36  ;;  %v4260_v37 = vpack.i.bf16 %v3125_v46, %v3124_v45  ;;  %v3410_v36 = vrot.slane %v5253_v49, 3  ;;  %v3508_v45 = vrot.slane %v5271_v26, 3 }
 0x10a   : > { %v5193_v0 = vpop.permute.xlu1 %1525 }
 0x10b   : > { %4201 = vrot.lane.b32.xlu0 %v4200_v54, %s4644_s5  ;;  %v3413_v54 = vrot.slane %v5253_v49, 6  ;;  %v3317_v63 = vrot.slane %v5238_v31, 1  ;;  %v3313_v10 = vrot.slane %v5238_v31, 4  ;;  %v3319_v30 = vrot.slane %v5238_v31, 3 }
 0x10c   : > { %v1618_v18 = vpop.permute.xlu0 %1617 }
 0x10d   : > { %4206 = vrot.lane.b32.xlu1 %v4205_v62, %s4644_s5  ;;  %1638 = vst.msk [vmem:[#allocation3 + $0x20] sm:$0xff] %vm1633_vm2, %v1618_v18  ;;  %v3315_v62 = vrot.slane %v5238_v31, 6  ;;  %v3222_v18 = vrot.slane %v5208_v17, 4  ;;  %v3411_v17 = vrot.slane %v5253_v49, 4 }
 0x10e   : > { %v1616_v12 = vpop.permute.xlu1 %1615 }
 0x10f   : > { %4211 = vrot.lane.b32.xlu0 %v4210_v60, %s4644_s5  ;;  %v3605_v60 = vrot.slane %v5265_v57, 2  ;;  %v4280_v6 = vpack.i.bf16 %v3315_v62, %v3317_v63 }
 0x110   : > { %v1835_v3 = vpop.permute.xlu0 %1834  ;;  %v2005_v25 = vld [vmem:[#allocation3 + $0x8] sm:$0xff] }
 0x111   : > { %4216 = vrot.lane.b32.xlu1 %v4215_v8, %s4644_s5  ;;  %1855 = vst.msk [vmem:[#allocation3 + $0x20] sm:$0xff] %vm1850_vm3, %v1835_v3  ;;  %3978 = vmatmul.mubr.msk.bf16.vlgmr.msra.gmra.mrb[0].mxu0 %vm2039_vm5, %v2005_v25  ;;  %v3510_v8 = vrot.slane %v5271_v26, 5  ;;  %v4295_v9 = vpack.i.bf16 %v3606_v2, %v3605_v60  ;;  %v4300_v3 = vpack.i.bf16 %v3222_v18, %v3219_v15 }
 0x112   : > { %v1387_v52 = vpop.permute.xlu1 %1386  ;;  %2000 = vst.msk [vmem:[#allocation3 + $0x20] sm:$0xff] %vm1995_vm4, %v5179_v48  ;;  %v3314_v48 = vrot.slane %v5238_v31, 5 }
 0x113   : > { %4226 = vrot.lane.b32.xlu0 %v4225_v13, %s4645_s16  ;;  %1405 = vst.msk [vmem:[#allocation3 + $0x30] sm:$0xff] %vm1398_vm0, %v1387_v52  ;;  %v4290_v14 = vpack.i.bf16 %v3510_v8, %v3509_v7  ;;  %v3511_v52 = vrot.slane %v5271_v26, 6 }
 0x114   : > { %v1837_v35 = vpop.permute.xlu0 %1836  ;;  %v4275_v53 = vpack.i.bf16 %v5238_v31, %v3314_v48 }
 0x115   : > { %4221 = vrot.lane.b32.xlu1 %v4220_v20, %s4645_s16  ;;  %1856 = vst.msk [vmem:[#allocation3 + $0x28] sm:$0xff] %vm1850_vm3, %v1837_v35 }
 0x116   : > { %v5226_v1 = vpop.permute.xlu1 %1975 }
 0x117   : > { %4236 = vrot.lane.b32.xlu0 %v4235_v22, %s4645_s16  ;;  %v3512_v22 = vrot.slane %v5271_v26, 7 }
 0x118   : > { %v1381_v42 = vpop.permute.xlu0 %1380 }
 0x119   : > { %4231 = vrot.lane.b32.xlu1 %v4230_v27, %s4646_s30  ;;  %1402 = vst.msk [vmem:[#allocation3 + $0x18] sm:$0xff] %vm1398_vm0, %v1381_v42  ;;  %v2008_v11 = vld [vmem:[#allocation3 + $0x20] sm:$0xff]  ;;  %v4315_v25 = vpack.i.bf16 %v3512_v22, %v3511_v52  ;;  %v3316_v27 = vrot.slane %v5238_v31, 7  ;;  %v3610_v42 = vrot.slane %v5265_v57, 7 }
 0x11a   : > { %v1532_v28 = vpop.permute.xlu1 %1531  ;;  %1547 = vst.msk [vmem:[#allocation3 + $0x18] sm:$0xff] %vm1543_vm1, %v5193_v0  ;;  %3985 = vmatprep.mubr.msk.bf16.mxu1 %vm2039_vm5, %v2008_v11  ;;  %v4285_v0 = vpack.i.bf16 %v3414_v55, %v3413_v54  ;;  %v3507_v55 = vrot.slane %v5271_v26, 2 }
 0x11b   : > { %4246 = vrot.lane.b32.xlu0 %v4245_v33, %s4647_s9  ;;  %1550 = vst.msk [vmem:[#allocation3 + $0x30] sm:$0xff] %vm1543_vm1, %v1532_v28  ;;  %v3607_v33 = vrot.slane %v5265_v57, 4  ;;  %v4325_v35 = vpack.i.bf16 %v3319_v30, %v3316_v27  ;;  %v3412_v28 = vrot.slane %v5253_v49, 5 }
 0x11c   : > { %1637 = vst.msk [vmem:[#allocation3 + $0x18] sm:$0xff] %vm1633_vm2, %v1616_v12  ;;  %v1982_v19 = vpop.permute.xlu0 %1981  ;;  %v3318_v12 = vrot.slane %v5238_v31, 2  ;;  %v3609_v31 = vrot.slane %v5265_v57, 6 }
 0x11d   : > { %4241 = vrot.lane.b32.xlu1 %v4240_v38, %s4646_s30  ;;  %2001 = vst.msk [vmem:[#allocation3 + $0x28] sm:$0xff] %vm1995_vm4, %v1982_v19  ;;  %v3416_v38 = vrot.slane %v5253_v49, 2  ;;  %v4320_v58 = vpack.i.bf16 %v3608_v32, %v3607_v33 }
 0x11e   : > { %v1534_v20 = vpop.permute.xlu1 %1533  ;;  %v4305_v21 = vpack.i.bf16 %v3313_v10, %v3318_v12  ;;  %v4345_v46 = vpack.i.bf16 %v3610_v42, %v3609_v31 }
 0x11f   : > { %4256 = vrot.lane.b32.xlu0 %v4255_v40, %s4646_s30  ;;  %v3415_v40 = vrot.slane %v5253_v49, 1  ;;  %v4335_v41 = vpack.i.bf16 %v3410_v36, %v3416_v38 }
 0x120   : > { %v1614_v59 = vpop.permute.xlu0 %1613 }
 0x121   : > { %4251 = vrot.lane.b32.xlu1 %v4250_v44, %s4645_s16  ;;  %1636 = vst.msk [vmem:[#allocation3 + $0x10] sm:$0xff] %vm1633_vm2, %v1614_v59  ;;  %v4330_v44 = vpack.i.bf16 %v3412_v28, %v3415_v40 }
 0x123   : > { %4266 = vrot.lane.b32.xlu0 %v4265_v47, %s4647_s9 }
 0x124   : > { %v1831_v4 = vpop.permute.xlu0 %1830  ;;  %v2009_v5 = vld [vmem:[#allocation3 + $0x28] sm:$0xff] }
 0x125   : > { %4261 = vrot.lane.b32.xlu1 %v4260_v37, %s4646_s30  ;;  %1853 = vst.msk [vmem:[#allocation3 + $0x10] sm:$0xff] %vm1850_vm3, %v1831_v4  ;;  %3986 = vmatmul.mubr.msk.bf16.vlgmr.msra.gmra.mrb[0].mxu1 %vm2039_vm5, %v2009_v5  ;;  %v3513_v37 = vrot.slane %v5271_v26, 1 }
 0x126   : > { %1998 = vst.msk [vmem:[#allocation3 + $0x10] sm:$0xff] %vm1995_vm4, %v5226_v1  ;;  %v4310_v1 = vpack.i.bf16 %v3411_v17, %v5253_v49  ;;  %v4340_v49 = vpack.i.bf16 %v3508_v45, %v5271_v26 }
 0x127   : > { %4276 = vrot.lane.b32.xlu0 %v4275_v53, %s4635_s7 }
 0x128   : > { %v1833_v13 = vpop.permute.xlu0 %1832 }
 0x129   : > { %4271 = vrot.lane.b32.xlu1 %v4270_v61, %s4647_s9  ;;  %1854 = vst.msk [vmem:[#allocation3 + $0x18] sm:$0xff] %vm1850_vm3, %v1833_v13  ;;  %v1624_v34 = vpop.permute.xlu1 %1623 }
 0x12b   : > { %4286 = vrot.lane.b32.xlu0 %v4285_v0, %s4634_s6 }
 0x12c   : > { %v1389_v23 = vpop.permute.xlu0 %1388 }
 0x12d   : > { %4281 = vrot.lane.b32.xlu1 %v4280_v6, %s4635_s7  ;;  %1406 = vst.msk [vmem:[#allocation3 + $0x38] sm:$0xff] %vm1398_vm0, %v1389_v23  ;;  %v2006_v24 = vld [vmem:[#allocation3 + $0x10] sm:$0xff]  ;;  %vm2236_vm0 = vcmask 1045509  }
 0x12e   : > { %1551 = vst.msk [vmem:[#allocation3 + $0x38] sm:$0xff] %vm1543_vm1, %v1534_v20  ;;  %3981 = vmatprep.mubr.msk.bf16.mxu0 %vm2039_vm5, %v2006_v24 }
 0x12f   : > { %4296 = vrot.lane.b32.xlu0 %v4295_v9, %s4630_s29  ;;  %1641 = vst.msk [vmem:[#allocation3 + $0x38] sm:$0xff] %vm1633_vm2, %v1624_v34 }
 0x130   : > { %v1978_v29 = vpop.permute.xlu0 %1977 }
 0x131   : > { %4291 = vrot.lane.b32.xlu1 %v4290_v14, %s4632_s25  ;;  %1999 = vst.msk [vmem:[#allocation3 + $0x18] sm:$0xff] %vm1995_vm4, %v1978_v29 }
 0x133   : > { %4306 = vrot.lane.b32.xlu0 %v4305_v21, %s4635_s7 }
 0x135   : > { %4301 = vrot.lane.b32.xlu1 %v4300_v3, %s4647_s9 }
 0x137   : > { %4316 = vrot.lane.b32.xlu0 %v4315_v25, %s4632_s25  ;;  %v1622_v16 = vpop.permute.xlu0 %1621 }
 0x138   : > { %1640 = vst.msk [vmem:[#allocation3 + $0x30] sm:$0xff] %vm1633_vm2, %v1622_v16  ;;  %v2007_v11 = vld [vmem:[#allocation3 + $0x18] sm:$0xff] }
 0x139   : > { %4311 = vrot.lane.b32.xlu1 %v4310_v1, %s4634_s6  ;;  %3982 = vmatmul.mubr.msk.bf16.gmra.mrb[4].mxu0 %vm2039_vm5, %v2007_v11 }
 0x13b   : > { %4326 = vrot.lane.b32.xlu0 %v4325_v35, %s4635_s7 }
 0x13d   : > { %v1839_v43 = vpop.permute.xlu0 %1838  ;;  %4321 = vrot.lane.b32.xlu1 %v4320_v58, %s4630_s29 }
 0x13e   : > { %1857 = vst.msk [vmem:[#allocation3 + $0x30] sm:$0xff] %vm1850_vm3, %v1839_v43 }
 0x13f   : > { %4336 = vrot.lane.b32.xlu0 %v4335_v41, %s4634_s6  ;;  %v1841_v47 = vpop.permute.xlu1 %1840 }
 0x140   : > { %1858 = vst.msk [vmem:[#allocation3 + $0x38] sm:$0xff] %vm1850_vm3, %v1841_v47 }
 0x141   : > { %v1984_v48 = vpop.permute.xlu0 %1983  ;;  %4331 = vrot.lane.b32.xlu1 %v4330_v44, %s4634_s6 }
 0x142   : > { %2002 = vst.msk [vmem:[#allocation3 + $0x30] sm:$0xff] %vm1995_vm4, %v1984_v48 }
 0x143   : > { %4346 = vrot.lane.b32.xlu0 %v4345_v46, %s4630_s29  ;;  %v1986_v19 = vpop.permute.xlu1 %1985 }
 0x144   : > { %2003 = vst.msk [vmem:[#allocation3 + $0x38] sm:$0xff] %vm1995_vm4, %v1986_v19  ;;  %v5456_v19 = vld [vmem:[%s6179_s3] ss:$0 sm:$0xff] }
 0x145   : > { %v5327_v39 = vpop.permute.xlu0 %4061  ;;  %4341 = vrot.lane.b32.xlu1 %v4340_v49, %s4632_s25 }
 0x146   : > { %6242 = vst [vmem:[#allocation4_spill] sm:$0xff] %v5327_v39 }
 0x147   : > { %3625 = vrot.lane.b32.xlu0 %v5265_v57, %s4630_s29  ;;  %v5335_v53 = vpop.permute.xlu1 %4066 }
 0x148   : > { %6243 = vst [vmem:[#allocation5_spill] sm:$0xff] %v5335_v53 }
 0x149   : > { %v2010_v51 = vld [vmem:[#allocation3 + $0x30] sm:$0xff]  ;;  %v5337_v54 = vpop.permute.xlu0 %4071  ;;  %3528 = vrot.lane.b32.xlu1 %v3513_v37, %s4632_s25 }
 0x14a   : > { %6244 = vst [vmem:[#allocation6_spill] sm:$0xff] %v5337_v54  ;;  %3989 = vmatprep.mubr.msk.bf16.mxu1 %vm2039_vm5, %v2010_v51 }
 0x14b   : > { %3611 = vrot.lane.b32.xlu0 %v3604_v50, %s4630_s29  ;;  %v2011_v56 = vld [vmem:[#allocation3 + $0x38] sm:$0xff]  ;;  %v5343_v59 = vpop.permute.xlu1 %4076 }
 0x14c   : > { %6245 = vst [vmem:[#allocation7_spill] sm:$0xff] %v5343_v59  ;;  %3990 = vmatmul.mubr.msk.bf16.gmra.mrb[4].mxu1 %vm2039_vm5, %v2011_v56 }
 0x14d   : > { %v5345_v61 = vpop.permute.xlu0 %4081  ;;  %3514 = vrot.lane.b32.xlu1 %v3507_v55, %s4632_s25 }
 0x14f   : > { %v5349_v57 = vpop.permute.xlu1 %4086 }
 0x150   : > { %6246 = vst [vmem:[#allocation8_spill] sm:$0xff] %v5349_v57 }
 0x151   : > { %v5351_v62 = vpop.permute.xlu0 %4091 }
 0x153   : > { %v5353_v63 = vpop.permute.xlu1 %4096 }
 0x155   : > { %v5355_v0 = vpop.permute.xlu0 %4101 }
 0x157   : > { %v5357_v26 = vpop.permute.xlu1 %4106 }
 0x159   : > { %v5359_v60 = vpop.permute.xlu0 %4111 }
 0x15b   : > { %v5361_v2 = vpop.permute.xlu1 %4116 }
 0x15d   : > { %v5363_v4 = vpop.permute.xlu0 %4121 }
 0x15f   : > { %v5365_v5 = vpop.permute.xlu1 %4126 }
 0x161   : > { %v5369_v7 = vpop.permute.xlu0 %4131 }
 0x163   : > { %v5367_v6 = vpop.permute.xlu1 %4136 }
 0x165   : > { %v5373_v9 = vpop.permute.xlu0 %4141 }
 0x167   : > { %v5371_v8 = vpop.permute.xlu1 %4146 }
 0x169   : > { %v5377_v12 = vpop.permute.xlu0 %4151 }
 0x16b   : > { %v5375_v10 = vpop.permute.xlu1 %4156 }
 0x16d   : > { %v4162_v14 = vpop.permute.xlu0 %4161 }
 0x16f   : > { %v5379_v13 = vpop.permute.xlu1 %4166 }
 0x171   : > { %v5383_v18 = vpop.permute.xlu0 %4171 }
 0x173   : > { %v5381_v15 = vpop.permute.xlu1 %4176 }
 0x174   : > { %6247 = vst [vmem:[#allocation9_spill] sm:$0xff] %v5381_v15 }
 0x175   : > { %v5387_v21 = vpop.permute.xlu0 %4181 }
 0x176   : > { %6249 = vst [vmem:[#allocation11_spill] sm:$0xff] %v5387_v21 }
 0x177   : > { %v5385_v20 = vpop.permute.xlu1 %4186 }
 0x178   : > { %6248 = vst [vmem:[#allocation10_spill] sm:$0xff] %v5385_v20 }
 0x179   : > { %v5391_v22 = vpop.permute.xlu0 %4191 }
 0x17a   : > { %6251 = vst [vmem:[#allocation13_spill] sm:$0xff] %v5391_v22 }
 0x17b   : > { %v5389_v52 = vpop.permute.xlu1 %4196 }
 0x17c   : > { %6250 = vst [vmem:[#allocation12_spill] sm:$0xff] %v5389_v52 }
 0x17d   : > { %v5395_v24 = vpop.permute.xlu0 %4201 }
 0x17e   : > { %6253 = vst [vmem:[#allocation15_spill] sm:$0xff] %v5395_v24 }
 0x17f   : > { %v5393_v23 = vpop.permute.xlu1 %4206 }
 0x180   : > { %6252 = vst [vmem:[#allocation14_spill] sm:$0xff] %v5393_v23 }
 0x181   : > { %v5399_v17 = vpop.permute.xlu0 %4211 }
 0x182   : > { %6255 = vst [vmem:[#allocation17_spill] sm:$0xff] %v5399_v17 }
 0x183   : > { %v5397_v3 = vpop.permute.xlu1 %4216 }
 0x184   : > { %6254 = vst [vmem:[#allocation16_spill] sm:$0xff] %v5397_v3 }
 0x185   : > { %v5403_v27 = vpop.permute.xlu0 %4226 }
 0x186   : > { %6257 = vst [vmem:[#allocation19_spill] sm:$0xff] %v5403_v27 }
 0x187   : > { %v5401_v25 = vpop.permute.xlu1 %4221 }
 0x188   : > { %6256 = vst [vmem:[#allocation18_spill] sm:$0xff] %v5401_v25 }
 0x189   : > { %v5407_v29 = vpop.permute.xlu0 %4236 }
 0x18a   : > { %6259 = vst [vmem:[#allocation21_spill] sm:$0xff] %v5407_v29 }
 0x18b   : > { %v5405_v30 = vpop.permute.xlu1 %4231 }
 0x18c   : > { %6258 = vst [vmem:[#allocation20_spill] sm:$0xff] %v5405_v30 }
 0x18d   : > { %v5411_v33 = vpop.permute.xlu0 %4246 }
 0x18f   : > { %v5409_v1 = vpop.permute.xlu1 %4241 }
 0x190   : > { %6260 = vst [vmem:[#allocation22_spill] sm:$0xff] %v5409_v1 }
 0x191   : > { %v5415_v34 = vpop.permute.xlu0 %4256 }
 0x192   : > { %6262 = vst [vmem:[#allocation24_spill] sm:$0xff] %v5415_v34 }
 0x193   : > { %v5413_v32 = vpop.permute.xlu1 %4251 }
 0x194   : > { %6261 = vst [vmem:[#allocation23_spill] sm:$0xff] %v5413_v32 }
 0x195   : > { %v5419_v36 = vpop.permute.xlu0 %4266 }
 0x196   : > { %6263 = vst [vmem:[#allocation25_spill] sm:$0xff] %v5419_v36 }
 0x197   : > { %v5417_v35 = vpop.permute.xlu1 %4261 }
 0x199   : > { %v5423_v16 = vpop.permute.xlu0 %4276 }
 0x19b   : > { %v5421_v38 = vpop.permute.xlu1 %4271 }
 0x19d   : > { %v5427_v28 = vpop.permute.xlu0 %4286 }
 0x19e   : > { %6264 = vst [vmem:[#allocation26_spill] sm:$0xff] %v5427_v28 }
 0x19f   : > { %v5425_v58 = vpop.permute.xlu1 %4281 }
 0x1a1   : > { %v5431_v41 = vpop.permute.xlu0 %4296 }
 0x1a2   : > { %6266 = vst [vmem:[#allocation28_spill] sm:$0xff] %v5431_v41 }
 0x1a3   : > { %v5429_v40 = vpop.permute.xlu1 %4291 }
 0x1a4   : > { %6265 = vst [vmem:[#allocation27_spill] sm:$0xff] %v5429_v40 }
 0x1a5   : > { %v5435_v42 = vpop.permute.xlu0 %4306 }
 0x1a6   : > { %6267 = vst [vmem:[#allocation29_spill] sm:$0xff] %v5435_v42 }
 0x1a7   : > { %v5433_v31 = vpop.permute.xlu1 %4301 }
 0x1a9   : > { %v5439_v11 = vpop.permute.xlu0 %4316 }
 0x1aa   : > { %6269 = vst [vmem:[#allocation31_spill] sm:$0xff] %v5439_v11 }
 0x1ab   : > { %v5437_v43 = vpop.permute.xlu1 %4311 }
 0x1ac   : > { %6268 = vst [vmem:[#allocation30_spill] sm:$0xff] %v5437_v43 }
 0x1ad   : > { %v5443_v45 = vpop.permute.xlu0 %4326 }
 0x1af   : > { %v5441_v44 = vpop.permute.xlu1 %4321 }
 0x1b0   : > { %6270 = vst [vmem:[#allocation32_spill] sm:$0xff] %v5441_v44 }
 0x1b1   : > { %v5447_v47 = vpop.permute.xlu0 %4336 }
 0x1b2   : > { %6272 = vst [vmem:[#allocation34_spill] sm:$0xff] %v5447_v47 }
 0x1b3   : > { %v5445_v46 = vpop.permute.xlu1 %4331 }
 0x1b4   : > { %6271 = vst [vmem:[#allocation33_spill] sm:$0xff] %v5445_v46 }
 0x1b5   : > { %v5451_v49 = vpop.permute.xlu0 %4346 }
 0x1b6   : > { %6274 = vst [vmem:[#allocation36_spill] sm:$0xff] %v5451_v49 }
 0x1b7   : > { %v5449_v48 = vpop.permute.xlu1 %4341 }
 0x1b8   : > { %6273 = vst [vmem:[#allocation35_spill] sm:$0xff] %v5449_v48 }
 0x1b9   : > { %v5460_v51 = vpop.permute.xlu0 %3625 }
 0x1ba   : > { %6276 = vst [vmem:[#allocation38_spill] sm:$0xff] %v5460_v51 }
 0x1bb   : > { %v5458_v37 = vpop.permute.xlu1 %3528 }
 0x1bc   : > { %6275 = vst [vmem:[#allocation37_spill] sm:$0xff] %v5458_v37 }
 0x1bd   : > { %v3612_v3 = vpop.permute.xlu0 %3611 }
 0x1bf   : > { %v3515_v37 = vpop.permute.xlu1 %3514 }
 0x1e4   : > { %v3979_v50 = vpop.f32.mrb[0].mxu0 }
 0x1e5   : > { %v5463_v55 = vadd.f32 %v3979_v50, %v5456_v19  ;;  %v2102_v56 = vpop.f32.mrb[1].mxu0 }
 0x1e6   : > { %v5466_v44 = vadd.f32 %v5456_v19, %v2102_v56  ;;  %v3980_v41 = vpop.f32.mrb[2].mxu0 }
 0x1e7   : > { %6277 = vst [vmem:[#allocation39_spill] sm:$0xff] %v5463_v55  ;;  %v5469_v49 = vadd.f32 %v3980_v41, %v5456_v19  ;;  %v2105_v11 = vpop.f32.mrb[3].mxu0  ;;  %v4473_v40 = vadd.high.f32.bf16 %v5463_v55, %v4162_v14  ;;  %v4475_v50 = vadd.high.f32.bf16 %v5463_v55, %v5373_v9 }
 0x1e8   : > { %6278 = vst [vmem:[#allocation40_spill] sm:$0xff] %v5466_v44  ;;  %v5473_v48 = vadd.f32 %v5456_v19, %v2105_v11  ;;  %v4474_v51 = vadd.low.f32.bf16 %v5466_v44, %v5387_v21  ;;  %v4476_v56 = vadd.low.f32.bf16 %v5466_v44, %v4162_v14  ;;  %v4479_v29 = vadd.low.f32.bf16 %v5466_v44, %v5373_v9 }
 0x1e9   : > { %6279 = vst [vmem:[#allocation41_spill] sm:$0xff] %v5469_v49  ;;  %v2783_v41 = vmul.f32 0.1, %v4473_v40  ;;  %v4477_v23 = vadd.high.f32.bf16 %v5469_v49, %v5437_v43  ;;  %vm2775_vm7 = vcmp.ge.f32.partialorder %v4473_v40, 0.0  ;;  %vm2678_vm9 = vcmp.ge.f32.partialorder %v4475_v50, 0.0 }
 0x1ea   : > { %6280 = vst [vmem:[#allocation42_spill] sm:$0xff] %v5473_v48  ;;  %vm2871_vm6 = vcmp.ge.f32.partialorder %v4474_v51, 0.0  ;;  %v2879_v17 = vmul.f32 0.1, %v4474_v51  ;;  %v3538_v24 = vadd.f32 %v3515_v37, %v5473_v48  ;;  %v4478_v11 = vadd.high.f32.bf16 %v5473_v48, %v5447_v47 }
 0x1eb   : > { %v4480_v14 = vadd.high.f32.bf16 %v5463_v55, %v5363_v4  ;;  %v5490_v27 = vadd.f32 %v3612_v3, %v5473_v48  ;;  %vm2774_vm10 = vcmp.ge.f32.partialorder %v4476_v56, 0.0  ;;  %v2782_v43 = vmul.f32 0.1, %v4476_v56 }
 0x1ec   : > { %v2887_v25 = vsel %vm2871_vm6, %v4474_v51, %v2879_v17  ;;  %v2791_v37 = vsel %vm2775_vm7, %v4473_v40, %v2783_v41  ;;  %vm3450_vm12 = vcmp.ge.f32.partialorder %v4477_v23, 0.0  ;;  %v3457_v47 = vmul.f32 0.1, %v4478_v11 }
 0x1ed   : > { %6281 = vst [vmem:[#allocation43_spill] sm:$0xff] %v5490_v27  ;;  %2916 = vrot.lane.b32.xlu0 %v2887_v25, %s4645_s16  ;;  %v3458_v28 = vmul.f32 0.1, %v4477_v23  ;;  %vm3546_vm13 = vcmp.ge.f32.partialorder %v3538_v24, 0.0  ;;  %vm3449_vm14 = vcmp.ge.f32.partialorder %v4478_v11, 0.0  ;;  %vm2677_vm15 = vcmp.ge.f32.partialorder %v4479_v29, 0.0 }
 0x1ee   : > { %v2685_v9 = vmul.f32 0.1, %v4479_v29  ;;  %v2686_v34 = vmul.f32 0.1, %v4475_v50  ;;  %v4481_v3 = vadd.high.f32.bf16 %v5473_v48, %v5435_v42  ;;  %v4482_v17 = vadd.low.f32.bf16 %v5469_v49, %v5423_v16 }
 0x1ef   : > { %v3466_v30 = vsel %vm3450_vm12, %v4477_v23, %v3458_v28  ;;  %v3554_v51 = vmul.f32 0.1, %v3538_v24  ;;  %v2790_v25 = vsel %vm2774_vm10, %v4476_v56, %v2782_v43  ;;  %v4483_v41 = vadd.low.f32.bf16 %v5466_v44, %v5363_v4 }
 0x1f0   : > { %v2694_v40 = vsel %vm2678_vm9, %v4475_v50, %v2686_v34  ;;  %v2806_v1 = vrot.slane %v2791_v37, 7  ;;  %v3465_v54 = vsel %vm3449_vm14, %v4478_v11, %v3457_v47  ;;  %v3481_v53 = vrot.slane %v3466_v30, 7 }
 0x1f1   : > { %vm3353_vm1 = vcmp.ge.f32.partialorder %v4482_v17, 0.0  ;;  %v2693_v23 = vsel %vm2677_vm15, %v4479_v29, %v2685_v9  ;;  %v3360_v28 = vmul.f32 0.1, %v4481_v3  ;;  %v3361_v39 = vmul.f32 0.1, %v4482_v17 }
 0x1f2   : > { %vm2581_vm2 = vcmp.ge.f32.partialorder %v4480_v14, 0.0  ;;  %v2709_v52 = vrot.slane %v2694_v40, 7  ;;  %vm3352_vm3 = vcmp.ge.f32.partialorder %v4481_v3, 0.0  ;;  %v2588_v22 = vmul.f32 0.1, %v4483_v41 }
 0x1f3   : > { %v2589_v20 = vmul.f32 0.1, %v4480_v14  ;;  %v3369_v21 = vsel %vm3353_vm1, %v4482_v17, %v3361_v39  ;;  %vm2580_vm4 = vcmp.ge.f32.partialorder %v4483_v41, 0.0  ;;  %v4484_v34 = vadd.low.f32.bf16 %v5466_v44, %v5355_v0 }
 0x1f4   : > { %v4485_v4 = vadd.high.f32.bf16 %v5463_v55, %v5355_v0  ;;  %v5506_v43 = vmul.f32 0.1, %v5490_v27  ;;  %v3384_v30 = vrot.slane %v3369_v21, 7  ;;  %v5509_v47 = vsel %vm3546_vm13, %v3538_v24, %v3554_v51 }
 0x1f5   : > { %v2597_v29 = vsel %vm2581_vm2, %v4480_v14, %v2589_v20  ;;  %6283 = vst [vmem:[#allocation45_spill] sm:$0xff] %v5509_v47  ;;  %v5512_v50 = vsel %vm2242_vm8, %v2806_v1, %v2790_v25  ;;  %v3368_v56 = vsel %vm3352_vm3, %v4481_v3, %v3360_v28  ;;  %v5515_v37 = vsel %vm2239_vm11, %v3481_v53, %v3465_v54 }
 0x1f6   : > { %6282 = vst [vmem:[#allocation44_spill] sm:$0xff] %v5506_v43  ;;  %v2612_v39 = vrot.slane %v2597_v29, 7  ;;  %v5518_v9 = vsel %vm2239_vm11, %v2709_v52, %v2693_v23  ;;  %v2596_v0 = vsel %vm2580_vm4, %v4483_v41, %v2588_v22  ;;  %v5522_v21 = vadd.low.f32.bf16 %v5473_v48, %v5419_v36 }
 0x1f7   : > { %vm2483_vm5 = vcmp.ge.f32.partialorder %v4484_v34, 0.0  ;;  %vm2484_vm6 = vcmp.ge.f32.partialorder %v4485_v4, 0.0  ;;  %v5529_v1 = vadd.low.f32.bf16 %v5469_v49, %v5411_v33  ;;  %v5535_v52 = vsel %vm2236_vm0, %v3384_v30, %v3368_v56 }
 0x1f8   : > { %v3987_v11 = vpop.f32.mrb[0].mxu1  ;;  %v2491_v22 = vmul.f32 0.1, %v4484_v34  ;;  %v2492_v14 = vmul.f32 0.1, %v4485_v4  ;;  %v5545_v40 = vsel %vm2236_vm0, %v2612_v39, %v2596_v0  ;;  %vm2224_vm12 = vcmask 1041409  }
 0x1f9   : > { %v5525_v20 = vadd.f32 %v3987_v11, %v5456_v19  ;;  %v2134_v24 = vpop.f32.mrb[1].mxu1  ;;  %vm3256_vm13 = vcmp.ge.f32.partialorder %v5529_v1, 0.0  ;;  %vm2233_vm14 = vcmask 1044484   ;;  %vm3255_vm2 = vcmp.ge.f32.partialorder %v5522_v21, 0.0 }
 0x1fa   : > { %v5532_v53 = vadd.f32 %v5456_v19, %v2134_v24  ;;  %v3988_v54 = vpop.f32.mrb[2].mxu1  ;;  %v2499_v0 = vsel %vm2483_vm5, %v4484_v34, %v2491_v22  ;;  %v5571_v34 = vadd.low.f32.bf16 %v5466_v44, %v5345_v61 }
 0x1fb   : > { %6284 = vst [vmem:[#allocation46_spill] sm:$0xff] %v5525_v20  ;;  %v5538_v3 = vadd.f32 %v3988_v54, %v5456_v19  ;;  %v2137_v17 = vpop.f32.mrb[3].mxu1  ;;  %v4488_v51 = vadd.high.f32.bf16 %v5525_v20, %v5359_v60  ;;  %v4489_v25 = vadd.high.f32.bf16 %v5525_v20, %v5369_v7  ;;  %v4492_v30 = vadd.high.f32.bf16 %v5525_v20, %v5377_v12 }
 0x1fc   : > { %6285 = vst [vmem:[#allocation47_spill] sm:$0xff] %v5532_v53  ;;  %v5548_v41 = vadd.f32 %v5456_v19, %v2137_v17  ;;  %v4490_v23 = vadd.low.f32.bf16 %v5532_v53, %v5369_v7  ;;  %v4491_v28 = vadd.low.f32.bf16 %v5532_v53, %v5377_v12  ;;  %v2500_v7 = vsel %vm2484_vm6, %v4485_v4, %v2492_v14 }
 0x1fd   : > { %6286 = vst [vmem:[#allocation48_spill] sm:$0xff] %v5538_v3  ;;  %vm2488_vm7 = vcmp.ge.f32.partialorder %v4488_v51, 0.0  ;;  %v2496_v29 = vmul.f32 0.1, %v4488_v51  ;;  %vm2585_vm9 = vcmp.ge.f32.partialorder %v4489_v25, 0.0  ;;  %v4493_v39 = vadd.low.f32.bf16 %v5538_v3, %v5421_v38 }
 0x1fe   : > { %6287 = vst [vmem:[#allocation49_spill] sm:$0xff] %v5548_v41  ;;  %v2593_v56 = vmul.f32 0.1, %v4489_v25  ;;  %vm2584_vm10 = vcmp.ge.f32.partialorder %v4490_v23, 0.0  ;;  %v2592_v11 = vmul.f32 0.1, %v4490_v23  ;;  %v4494_v27 = vadd.low.f32.bf16 %v5532_v53, %v5383_v18 }
 0x1ff   : > { %v5559_v24 = vsel %vm2488_vm7, %v4488_v51, %v2496_v29  ;;  %v3263_v54 = vmul.f32 0.1, %v5522_v21  ;;  %v3264_v17 = vmul.f32 0.1, %v5529_v1  ;;  %v2689_v47 = vmul.f32 0.1, %v4491_v28 }
 0x200   : > { %v2600_v12 = vsel %vm2584_vm10, %v4490_v23, %v2592_v11  ;;  %v2601_v43 = vsel %vm2585_vm9, %v4489_v25, %v2593_v56  ;;  %vm2681_vm15 = vcmp.ge.f32.partialorder %v4491_v28, 0.0  ;;  %vm2682_vm1 = vcmp.ge.f32.partialorder %v4492_v30, 0.0 }
 0x201   : > { %v3268_v4 = vmul.f32 0.1, %v4493_v39  ;;  %v4496_v22 = vadd.high.f32.bf16 %v5548_v41, %v5423_v16  ;;  %v4497_v14 = vadd.low.f32.bf16 %v5538_v3, %v5425_v58  ;;  %v4498_v51 = vadd.high.f32.bf16 %v5525_v20, %v5383_v18 }
 0x202   : > { %v2618_v25 = vrot.slane %v2600_v12, 4  ;;  %v2619_v23 = vrot.slane %v2601_v43, 3  ;;  %vm3260_vm3 = vcmp.ge.f32.partialorder %v4493_v39, 0.0  ;;  %v2690_v29 = vmul.f32 0.1, %v4492_v30 }
 0x203   : > { %v5579_v56 = vsel %vm2681_vm15, %v4491_v28, %v2689_v47  ;;  %vm3356_vm4 = vcmp.ge.f32.partialorder %v4496_v22, 0.0  ;;  %vm3357_vm5 = vcmp.ge.f32.partialorder %v4497_v14, 0.0  ;;  %vm2778_vm6 = vcmp.ge.f32.partialorder %v4494_v27, 0.0 }
 0x204   : > { %v3364_v11 = vmul.f32 0.1, %v4496_v22  ;;  %v3365_v49 = vmul.f32 0.1, %v4497_v14  ;;  %vm2779_vm7 = vcmp.ge.f32.partialorder %v4498_v51, 0.0  ;;  %v4499_v16 = vadd.low.f32.bf16 %v5532_v53, %v5359_v60 }
 0x205   : > { %v5583_v48 = vsel %vm3260_vm3, %v4493_v39, %v3268_v4  ;;  %v2786_v3 = vmul.f32 0.1, %v4494_v27  ;;  %v2787_v44 = vmul.f32 0.1, %v4498_v51  ;;  %v4500_v18 = vadd.low.f32.bf16 %v5548_v41, %v5433_v31 }
 0x206   : > { %v3372_v43 = vsel %vm3356_vm4, %v4496_v22, %v3364_v11  ;;  %v3373_v12 = vsel %vm3357_vm5, %v4497_v14, %v3365_v49  ;;  %vm2487_vm9 = vcmp.ge.f32.partialorder %v4499_v16, 0.0  ;;  %v2495_v47 = vmul.f32 0.1, %v4499_v16 }
 0x207   : > { %v5588_v28 = vsel %vm2682_vm1, %v4492_v30, %v2690_v29  ;;  %v5590_v57 = vsel %vm2778_vm6, %v4494_v27, %v2786_v3  ;;  %v5592_v36 = vsel %vm2779_vm7, %v4498_v51, %v2787_v44  ;;  %v2515_v15 = vrot.slane %v2500_v7, 7 }
 0x208   : > { %v5595_v60 = vsel %vm2224_vm12, %v2619_v23, %v2618_v25  ;;  %v2714_v39 = vrot.slane %v5579_v56, 4  ;;  %v3390_v4 = vrot.slane %v3372_v43, 4  ;;  %v3391_v42 = vrot.slane %v3373_v12, 3 }
 0x209   : > { %v5599_v49 = vsel %vm2487_vm9, %v4499_v16, %v2495_v47  ;;  %vm3259_vm10 = vcmp.ge.f32.partialorder %v4500_v18, 0.0  ;;  %v3267_v14 = vmul.f32 0.1, %v4500_v18  ;;  %v2716_v30 = vrot.slane %v5588_v28, 3 }
 0x20a   : > { %v3272_v3 = vsel %vm3256_vm13, %v5529_v1, %v3264_v17  ;;  %v5608_v51 = vsel %vm2233_vm14, %v2515_v15, %v2499_v0  ;;  %v3271_v25 = vsel %vm3255_vm2, %v5522_v21, %v3263_v54  ;;  %v5619_v16 = vsel %vm2224_vm12, %v3391_v42, %v3390_v4 }
 0x20b   : > { %v5613_v23 = vsel %vm3259_vm10, %v4500_v18, %v3267_v14  ;;  %v3287_v29 = vrot.slane %v3272_v3, 7  ;;  %v5624_v15 = vadd.high.f32.bf16 %v5463_v55, %v5345_v61  ;;  %vm2227_vm13 = vcmask 1042434  }
 0x20c   : > { %v3983_v7 = vpop.f32.mrb[4].mxu0  ;;  %v5632_v17 = vadd.low.f32.bf16 %v5532_v53, %v5351_v62  ;;  %v5636_v42 = vadd.high.f32.bf16 %v5525_v20, %v5351_v62 }
 0x20d   : > { %v5616_v56 = vadd.f32 %v3983_v7, %v5456_v19  ;;  %v2118_v11 = vpop.f32.mrb[5].mxu0  ;;  %v5646_v47 = vsel %vm2233_vm14, %v3287_v29, %v3271_v25 }
 0x20e   : > { %v5627_v0 = vadd.f32 %v5456_v19, %v2118_v11  ;;  %v3984_v21 = vpop.f32.mrb[6].mxu0 }
 0x20f   : > { %v5639_v18 = vadd.f32 %v3984_v21, %v5456_v19  ;;  %v2121_v61 = vpop.f32.mrb[7].mxu0  ;;  %v4504_v43 = vadd.high.f32.bf16 %v5616_v56, %v5371_v8  ;;  %v4505_v12 = vadd.high.f32.bf16 %v5616_v56, %v5365_v5  ;;  %v4508_v14 = vadd.high.f32.bf16 %v5616_v56, %v5379_v13 }
 0x210   : > { %v5649_v28 = vadd.f32 %v5456_v19, %v2121_v61  ;;  %v4506_v62 = vadd.low.f32.bf16 %v5627_v0, %v5371_v8  ;;  %v4507_v4 = vadd.low.f32.bf16 %v5627_v0, %v5365_v5  ;;  %v4510_v25 = vadd.low.f32.bf16 %v5627_v0, %v5379_v13 }
 0x211   : > { %vm2680_vm15 = vcmp.ge.f32.partialorder %v4504_v43, 0.0  ;;  %v2688_v3 = vmul.f32 0.1, %v4504_v43  ;;  %v4509_v7 = vadd.low.f32.bf16 %v5639_v18, %v5443_v45  ;;  %vm2583_vm3 = vcmp.ge.f32.partialorder %v4505_v12, 0.0 }
 0x212   : > { %6288 = vst [vmem:[#allocation50_spill] sm:$0xff] %v5649_v28  ;;  %v4511_v29 = vadd.high.f32.bf16 %v5649_v28, %v5445_v46  ;;  %vm2679_vm1 = vcmp.ge.f32.partialorder %v4506_v62, 0.0  ;;  %v2687_v11 = vmul.f32 0.1, %v4506_v62  ;;  %v4512_v8 = vadd.high.f32.bf16 %v5649_v28, %v5425_v58 }
 0x213   : > { %v2696_v5 = vsel %vm2680_vm15, %v4504_v43, %v2688_v3  ;;  %vm3355_vm2 = vcmp.ge.f32.partialorder %v4509_v7, 0.0  ;;  %v3363_v21 = vmul.f32 0.1, %v4509_v7  ;;  %vm2582_vm6 = vcmp.ge.f32.partialorder %v4507_v4, 0.0 }
 0x214   : > { %v2713_v61 = vrot.slane %v2696_v5, 5  ;;  %vm3451_vm4 = vcmp.ge.f32.partialorder %v4511_v29, 0.0  ;;  %v3459_v54 = vmul.f32 0.1, %v4511_v29  ;;  %v2695_v1 = vsel %vm2679_vm1, %v4506_v62, %v2687_v11 }
 0x215   : > { %v2711_v44 = vrot.slane %v2695_v1, 6  ;;  %vm3354_vm5 = vcmp.ge.f32.partialorder %v4512_v8, 0.0  ;;  %v3362_v27 = vmul.f32 0.1, %v4512_v8  ;;  %v3371_v46 = vsel %vm3355_vm2, %v4509_v7, %v3363_v21 }
 0x216   : > { %v2715_v13 = vsel %vm2224_vm12, %v2714_v39, %v2713_v61  ;;  %v3467_v22 = vsel %vm3451_vm4, %v4511_v29, %v3459_v54  ;;  %v2590_v41 = vmul.f32 0.1, %v4507_v4  ;;  %v2591_v62 = vmul.f32 0.1, %v4505_v12 }
 0x217   : > { %v5667_v20 = vsel %vm2227_vm13, %v2716_v30, %v2715_v13  ;;  %v3483_v58 = vrot.slane %v3467_v22, 6  ;;  %v5671_v43 = vsel %vm2242_vm8, %v2711_v44, %v5518_v9  ;;  %v3370_v3 = vsel %vm3354_vm5, %v4512_v8, %v3362_v27 }
 0x218   : > { %v3386_v5 = vrot.slane %v3370_v3, 6  ;;  %v2598_v1 = vsel %vm2582_vm6, %v4507_v4, %v2590_v41  ;;  %vm2776_vm7 = vcmp.ge.f32.partialorder %v4510_v25, 0.0  ;;  %v3388_v11 = vrot.slane %v3371_v46, 5 }
 0x219   : > { %v2614_v53 = vrot.slane %v2598_v1, 6  ;;  %vm2777_vm9 = vcmp.ge.f32.partialorder %v4508_v14, 0.0  ;;  %v2784_v39 = vmul.f32 0.1, %v4510_v25  ;;  %v2599_v30 = vsel %vm2583_vm3, %v4505_v12, %v2591_v62 }
 0x21a   : > { %v3387_v54 = vsel %vm2239_vm11, %v3386_v5, %v5535_v52  ;;  %v2785_v7 = vmul.f32 0.1, %v4508_v14  ;;  %v5678_v22 = vadd.low.f32.bf16 %v5627_v0, %v5357_v26  ;;  %v2616_v27 = vrot.slane %v2599_v30, 5 }
 0x21b   : > { %v2615_v9 = vsel %vm2239_vm11, %v2614_v53, %v5545_v40  ;;  %v5682_v41 = vsel %vm2776_vm7, %v4510_v25, %v2784_v39  ;;  %v5685_v46 = vmul.f32 0.1, %v5571_v34  ;;  %v5689_v52 = vsel %vm2242_vm8, %v3483_v58, %v5515_v37 }
 0x21c   : > { %v5692_v12 = vsel %vm2242_vm8, %v3388_v11, %v3387_v54  ;;  %v5694_v4 = vsel %vm2777_vm9, %v4508_v14, %v2785_v7  ;;  %v5698_v29 = vadd.high.f32.bf16 %v5616_v56, %v5357_v26  ;;  %v5704_v25 = vsel %vm2242_vm8, %v2616_v27, %v2615_v9 }
 0x21d   : > { %v5712_v61 = vmul.f32 0.1, %v5678_v22  ;;  %v5719_v13 = vadd.high.f32.bf16 %v5649_v28, %v5411_v33  ;;  %vm2230_vm5 = vcmask 1043459  }
 0x21e   : > { %v5715_v26 = vmul.f32 0.1, %v5698_v29 }
 0x21f   : > { %v3991_v44 = vpop.f32.mrb[4].mxu1 }
 0x220   : > { %v5701_v53 = vadd.f32 %v3991_v44, %v5456_v19  ;;  %v2150_v40 = vpop.f32.mrb[5].mxu1 }
 0x221   : > { %v5709_v21 = vadd.f32 %v5456_v19, %v2150_v40  ;;  %v3992_v14 = vpop.f32.mrb[6].mxu1 }
 0x222   : > { %v5722_v58 = vadd.f32 %v3992_v14, %v5456_v19  ;;  %v2153_v3 = vpop.f32.mrb[7].mxu1  ;;  %v4516_v5 = vadd.high.f32.bf16 %v5701_v53, %v5343_v59  ;;  %v4517_v62 = vadd.high.f32.bf16 %v5701_v53, %v5353_v63  ;;  %v4518_v1 = vadd.high.f32.bf16 %v5701_v53, %v5361_v2 }
 0x223   : > { %v5731_v11 = vadd.f32 %v5456_v19, %v2153_v3  ;;  %v4519_v33 = vadd.low.f32.bf16 %v5709_v21, %v5353_v63  ;;  %v4520_v39 = vadd.low.f32.bf16 %v5709_v21, %v5361_v2  ;;  %v4521_v54 = vadd.low.f32.bf16 %v5709_v21, %v5367_v6 }
 0x224   : > { %vm2296_vm10 = vcmp.ge.f32.partialorder %v4516_v5, 0.0  ;;  %v2304_v30 = vmul.f32 0.1, %v4516_v5  ;;  %v4522_v7 = vadd.high.f32.bf16 %v5722_v58, %v5413_v32  ;;  %vm2393_vm15 = vcmp.ge.f32.partialorder %v4517_v62, 0.0 }
 0x225   : > { %vm2392_vm1 = vcmp.ge.f32.partialorder %v4519_v33, 0.0  ;;  %v2400_v9 = vmul.f32 0.1, %v4519_v33  ;;  %v2401_v27 = vmul.f32 0.1, %v4517_v62  ;;  %vm2489_vm2 = vcmp.ge.f32.partialorder %v4520_v39, 0.0 }
 0x226   : > { %v2312_v19 = vsel %vm2296_vm10, %v4516_v5, %v2304_v30  ;;  %vm3068_vm3 = vcmp.ge.f32.partialorder %v4522_v7, 0.0  ;;  %v3076_v44 = vmul.f32 0.1, %v4522_v7  ;;  %vm2490_vm4 = vcmp.ge.f32.partialorder %v4518_v1, 0.0 }
 0x227   : > { %v2333_v63 = vrot.slane %v2312_v19, 1  ;;  %v2408_v40 = vsel %vm2392_vm1, %v4519_v33, %v2400_v9  ;;  %v2409_v2 = vsel %vm2393_vm15, %v4517_v62, %v2401_v27  ;;  %v2497_v14 = vmul.f32 0.1, %v4520_v39 }
 0x228   : > { %v3084_v3 = vsel %vm3068_vm3, %v4522_v7, %v3076_v44  ;;  %v2428_v37 = vrot.slane %v2408_v40, 2  ;;  %v2429_v8 = vrot.slane %v2409_v2, 1  ;;  %v2498_v28 = vmul.f32 0.1, %v4518_v1 }
 0x229   : > { %2336 = vrot.lane.b32.xlu1 %v2333_v63, %s4630_s29  ;;  %v3105_v32 = vrot.slane %v3084_v3, 1  ;;  %v2505_v59 = vsel %vm2489_vm2, %v4520_v39, %v2497_v14  ;;  %v4523_v55 = vadd.low.f32.bf16 %v5731_v11, %v5417_v35  ;;  %v4524_v5 = vadd.high.f32.bf16 %v5722_v58, %v5417_v35 }
 0x22a   : > { %v2430_v30 = vsel %vm2224_vm12, %v2429_v8, %v2428_v37  ;;  %v2506_v19 = vsel %vm2490_vm4, %v4518_v1, %v2498_v28  ;;  %v2524_v33 = vrot.slane %v2505_v59, 2  ;;  %v4525_v62 = vadd.high.f32.bf16 %v5701_v53, %v5367_v6 }
 0x22b   : > { %3108 = vrot.lane.b32.xlu0 %v3105_v32, %s4643_s27  ;;  %v2526_v7 = vrot.slane %v2506_v19, 1  ;;  %vm3164_vm6 = vcmp.ge.f32.partialorder %v4523_v55, 0.0  ;;  %vm3165_vm7 = vcmp.ge.f32.partialorder %v4524_v5, 0.0  ;;  %v3172_v39 = vmul.f32 0.1, %v4523_v55 }
 0x22c   : > { %v6289_v9 = vrot.slane %v5559_v24, 3  ;;  %v3173_v44 = vmul.f32 0.1, %v4524_v5  ;;  %vm2586_vm9 = vcmp.ge.f32.partialorder %v4521_v54, 0.0  ;;  %vm2587_vm10 = vcmp.ge.f32.partialorder %v4525_v62, 0.0 }
 0x22d   : > { %2433 = vrot.lane.b32.xlu1 %v2430_v30, %s4632_s25  ;;  %v3180_v35 = vsel %vm3164_vm6, %v4523_v55, %v3172_v39  ;;  %v2594_v28 = vmul.f32 0.1, %v4521_v54  ;;  %v2595_v6 = vmul.f32 0.1, %v4525_v62  ;;  %v4526_v37 = vadd.high.f32.bf16 %v5731_v11, %v5421_v38  ;;  %v6290_v30 = vld [vmem:[#allocation29_spill] sm:$0xff] }
 0x22e   : > { %v2525_v27 = vsel %vm2224_vm12, %v2524_v33, %v6289_v9  ;;  %v3181_v8 = vsel %vm3165_vm7, %v4524_v5, %v3173_v44  ;;  %v3200_v32 = vrot.slane %v3180_v35, 2  ;;  %v4527_v24 = vadd.high.f32.bf16 %v5722_v58, %v5433_v31 }
 0x22f   : > { %v2527_v59 = vsel %vm2227_vm13, %v2526_v7, %v2525_v27  ;;  %2819 = vrot.lane.b32.xlu0 %v5512_v50, %s4646_s30  ;;  %v3201_v1 = vrot.slane %v3181_v8, 1  ;;  %v2602_v63 = vsel %vm2586_vm9, %v4521_v54, %v2594_v28  ;;  %v2603_v40 = vsel %vm2587_vm10, %v4525_v62, %v2595_v6  ;;  %v6292_v8 = vld [vmem:[#allocation9_spill] sm:$0xff] }
 0x230   : > { %v4528_v2 = vadd.low.f32.bf16 %v5709_v21, %v5375_v10  ;;  %vm2485_vm15 = vcmp.ge.f32.partialorder %v5678_v22, 0.0  ;;  %vm2486_vm1 = vcmp.ge.f32.partialorder %v5698_v29, 0.0  ;;  %v2621_v55 = vrot.slane %v2602_v63, 2 }
 0x231   : > { %v2623_v14 = vrot.slane %v2603_v40, 1  ;;  %vm3261_vm2 = vcmp.ge.f32.partialorder %v4526_v37, 0.0  ;;  %vm3262_vm3 = vcmp.ge.f32.partialorder %v4527_v24, 0.0  ;;  %2530 = vrot.lane.b32.xlu1 %v2527_v59, %s4634_s6  ;;  %v3202_v38 = vsel %vm2224_vm12, %v3201_v1, %v3200_v32 }
 0x232   : > { %v3269_v31 = vmul.f32 0.1, %v4526_v37  ;;  %v3270_v50 = vmul.f32 0.1, %v4527_v24  ;;  %v4529_v54 = vadd.high.f32.bf16 %v5701_v53, %v5375_v10  ;;  %v2622_v3 = vsel %vm2227_vm13, %v2621_v55, %v5595_v60 }
 0x233   : > { %vm2683_vm4 = vcmp.ge.f32.partialorder %v4528_v2, 0.0  ;;  %v2691_v5 = vmul.f32 0.1, %v4528_v2  ;;  %v4530_v19 = vadd.low.f32.bf16 %v5731_v11, %v6290_v30  ;;  %3205 = vrot.lane.b32.xlu0 %v3202_v38, %s4642_s24  ;;  %v2624_v33 = vsel %vm2230_vm5, %v2623_v14, %v2622_v3 }
 0x234   : > { %v3277_v62 = vsel %vm3261_vm2, %v4526_v37, %v3269_v31  ;;  %v3278_v7 = vsel %vm3262_vm3, %v4527_v24, %v3270_v50  ;;  %vm2684_vm6 = vcmp.ge.f32.partialorder %v4529_v54, 0.0  ;;  %v2692_v27 = vmul.f32 0.1, %v4529_v54 }
 0x235   : > { %v3296_v39 = vrot.slane %v3277_v62, 2  ;;  %v3298_v9 = vrot.slane %v3278_v7, 1  ;;  %v2699_v44 = vsel %vm2683_vm4, %v4528_v2, %v2691_v5  ;;  %2627 = vrot.lane.b32.xlu1 %v2624_v33, %s4635_s7  ;;  %v4531_v60 = vadd.high.f32.bf16 %v5722_v58, %v5443_v45 }
 0x236   : > { %v2718_v10 = vrot.slane %v2699_v44, 2  ;;  %vm3358_vm7 = vcmp.ge.f32.partialorder %v4530_v19, 0.0  ;;  %v3366_v59 = vmul.f32 0.1, %v4530_v19  ;;  %v6291_v35 = vrot.slane %v5583_v48, 3 }
 0x237   : > { %v2700_v6 = vsel %vm2684_vm6, %v4529_v54, %v2692_v27  ;;  %v4532_v32 = vadd.low.f32.bf16 %v5709_v21, %v6292_v8  ;;  %v4533_v37 = vadd.high.f32.bf16 %v5701_v53, %v6292_v8  ;;  %vm3359_vm9 = vcmp.ge.f32.partialorder %v4531_v60, 0.0 }
 0x238   : > { %v3297_v28 = vsel %vm2224_vm12, %v3296_v39, %v6291_v35  ;;  %v2719_v1 = vsel %vm2230_vm5, %v2718_v10, %v5667_v20  ;;  %v2720_v63 = vrot.slane %v2700_v6, 1  ;;  %v3367_v45 = vmul.f32 0.1, %v4531_v60 }
 0x239   : > { %v3299_v24 = vsel %vm2227_vm13, %v3298_v9, %v3297_v28  ;;  %v3374_v48 = vsel %vm3358_vm7, %v4530_v19, %v3366_v59  ;;  %vm2780_vm10 = vcmp.ge.f32.partialorder %v4532_v32, 0.0  ;;  %vm2781_vm2 = vcmp.ge.f32.partialorder %v4533_v37, 0.0  ;;  %v6299_v28 = vld [vmem:[#allocation8_spill] sm:$0xff] }
 0x23a   : > { %3302 = vrot.lane.b32.xlu0 %v3299_v24, %s4641_s23  ;;  %vm2386_vm3 = vcmp.ge.f32.partialorder %v5571_v34, 0.0  ;;  %v2721_v40 = vsel %vm2233_vm14, %v2720_v63, %v2719_v1  ;;  %v3393_v2 = vrot.slane %v3374_v48, 2  ;;  %v2788_v55 = vmul.f32 0.1, %v4532_v32 }
 0x23b   : > { %v2789_v14 = vmul.f32 0.1, %v4533_v37  ;;  %vm2387_vm4 = vcmp.ge.f32.partialorder %v5624_v15, 0.0  ;;  %vm2390_vm6 = vcmp.ge.f32.partialorder %v5632_v17, 0.0  ;;  %2724 = vrot.lane.b32.xlu1 %v2721_v40, %s4647_s9  ;;  %v3375_v20 = vsel %vm3359_vm9, %v4531_v60, %v3367_v45 }
 0x23c   : > { %v6293_v38 = vrot.slane %v5682_v41, 6  ;;  %v6294_v31 = vrot.slane %v5694_v4, 5  ;;  %v2501_v54 = vsel %vm2485_vm15, %v5678_v22, %v5712_v61  ;;  %v2502_v3 = vsel %vm2486_vm1, %v5698_v29, %v5715_v26 }
 0x23d   : > { %vm2391_vm7 = vcmp.ge.f32.partialorder %v5636_v42, 0.0  ;;  %v3394_v5 = vsel %vm2227_vm13, %v3393_v2, %v5619_v16  ;;  %v3395_v41 = vrot.slane %v3375_v20, 1  ;;  %v2796_v4 = vsel %vm2780_vm10, %v4532_v32, %v2788_v55  ;;  %v6297_v16 = vld [vmem:[#allocation25_spill] sm:$0xff] }
 0x23e   : > { %v2810_v50 = vsel %vm2224_vm12, %v6294_v31, %v6293_v38  ;;  %v2797_v30 = vsel %vm2781_vm2, %v4533_v37, %v2789_v14  ;;  %v6295_v19 = vrot.slane %v5590_v57, 4  ;;  %v2815_v22 = vrot.slane %v2796_v4, 2  ;;  %v6305_v4 = vld [vmem:[#allocation47_spill] sm:$0xff] }
 0x23f   : > { %v2817_v61 = vrot.slane %v2797_v30, 1  ;;  %v2517_v62 = vrot.slane %v2501_v54, 6  ;;  %v3396_v7 = vsel %vm2230_vm5, %v3395_v41, %v3394_v5  ;;  %v6296_v29 = vrot.slane %v5592_v36, 3  ;;  %3494 = vrot.lane.b32.xlu1 %v5689_v52, %s4639_s26 }
 0x240   : > { %v2812_v33 = vsel %vm2227_vm13, %v6295_v19, %v2810_v50  ;;  %v2519_v39 = vrot.slane %v2502_v3, 5  ;;  %v4534_v9 = vadd.high.f32.bf16 %v5639_v18, %v6297_v16  ;;  %3399 = vrot.lane.b32.xlu0 %v3396_v7, %s4640_s22  ;;  %vm3257_vm15 = vcmp.ge.f32.partialorder %v5719_v13, 0.0  ;;  %v6302_v50 = vld [vmem:[#allocation39_spill] sm:$0xff]  ;;  %v6303_v3 = vld [vmem:[#allocation10_spill] sm:$0xff] }
 0x241   : > { %v2814_v26 = vsel %vm2230_vm5, %v6296_v29, %v2812_v33  ;;  %v2518_v27 = vsel %vm2236_vm0, %v2517_v62, %v5608_v51  ;;  %v3265_v36 = vmul.f32 0.1, %v5719_v13  ;;  %v6298_v59 = vrot.slane %v5599_v49, 4  ;;  %v6306_v19 = vld [vmem:[#allocation46_spill] sm:$0xff] }
 0x242   : > { %v2816_v57 = vsel %vm2233_vm14, %v2815_v22, %v2814_v26  ;;  %v2520_v10 = vsel %vm2239_vm11, %v2519_v39, %v2518_v27  ;;  %vm3258_vm1 = vcmp.ge.f32.partialorder %v4534_v9, 0.0  ;;  %v3266_v60 = vmul.f32 0.1, %v4534_v9  ;;  %v6307_v22 = vld [vmem:[#allocation12_spill] sm:$0xff] }
 0x243   : > { %v2818_v44 = vsel %vm2236_vm0, %v2817_v61, %v2816_v57  ;;  %v2522_v35 = vsel %vm2242_vm8, %v6298_v59, %v2520_v10  ;;  %v3273_v52 = vsel %vm3257_vm15, %v5719_v13, %v3265_v36  ;;  %v4535_v6 = vadd.low.f32.bf16 %v5627_v0, %v6299_v28  ;;  %3397 = vrot.lane.b32.xlu1 %v5692_v12, %s4640_s22  ;;  %v6308_v27 = vld [vmem:[#allocation4_spill] sm:$0xff] }
 0x244   : > { %v4536_v51 = vadd.high.f32.bf16 %v5616_v56, %v6299_v28  ;;  %v3274_v8 = vsel %vm3258_vm1, %v4534_v9, %v3266_v60  ;;  %v3289_v32 = vrot.slane %v3273_v52, 6  ;;  %v2395_v37 = vmul.f32 0.1, %v5624_v15  ;;  %2722 = vrot.lane.b32.xlu0 %v5671_v43, %s4647_s9  ;;  %v6309_v36 = vld [vmem:[#allocation40_spill] sm:$0xff] }
 0x245   : > { %v2398_v24 = vmul.f32 0.1, %v5632_v17  ;;  %v3291_v49 = vrot.slane %v3274_v8, 5  ;;  %vm2388_vm9 = vcmp.ge.f32.partialorder %v4535_v6, 0.0  ;;  %v2396_v13 = vmul.f32 0.1, %v4535_v6 }
 0x246   : > { %vm2389_vm10 = vcmp.ge.f32.partialorder %v4536_v51, 0.0  ;;  %v3290_v1 = vsel %vm2236_vm0, %v3289_v32, %v5646_v47  ;;  %v2397_v63 = vmul.f32 0.1, %v4536_v51  ;;  %v2399_v45 = vmul.f32 0.1, %v5636_v42 }
 0x247   : > { %v2402_v48 = vsel %vm2386_vm3, %v5571_v34, %v5685_v46  ;;  %v3292_v43 = vsel %vm2239_vm11, %v3291_v49, %v3290_v1  ;;  %v2403_v12 = vsel %vm2387_vm4, %v5624_v15, %v2395_v37  ;;  %v2404_v40 = vsel %vm2388_vm9, %v4535_v6, %v2396_v13  ;;  %2821 = vrot.lane.b32.xlu1 %v2818_v44, %s4646_s30 }
 0x248   : > { %v2406_v2 = vsel %vm2390_vm6, %v5632_v17, %v2398_v24  ;;  %v6300_v47 = vrot.slane %v5613_v23, 4  ;;  %v2405_v14 = vsel %vm2389_vm10, %v4536_v51, %v2397_v63  ;;  %v2407_v34 = vsel %vm2391_vm7, %v5636_v42, %v2399_v45  ;;  %2625 = vrot.lane.b32.xlu0 %v5704_v25, %s4635_s7  ;;  %v6301_v23 = vld [vmem:[#allocation11_spill] sm:$0xff]  ;;  %v6304_v25 = vld [vmem:[#allocation13_spill] sm:$0xff] }
 0x249   : > { %v2418_v46 = vrot.slane %v2403_v12, 7  ;;  %v2420_v15 = vrot.slane %v2404_v40, 6  ;;  %v2422_v20 = vrot.slane %v2405_v14, 5  ;;  %v2424_v38 = vrot.slane %v2406_v2, 4  ;;  %v6310_v12 = vld [vmem:[#allocation5_spill] sm:$0xff] }
 0x24a   : > { %v3294_v55 = vsel %vm2242_vm8, %v6300_v47, %v3292_v43  ;;  %v2426_v31 = vrot.slane %v2407_v34, 3  ;;  %v4537_v54 = vadd.high.f32.bf16 %v6302_v50, %v6301_v23  ;;  %v4538_v5 = vadd.low.f32.bf16 %v5627_v0, %v6303_v3 }
 0x24b   : > { %v2419_v17 = vsel %vm2230_vm5, %v2418_v46, %v2402_v48  ;;  %v4539_v42 = vadd.high.f32.bf16 %v5616_v56, %v6303_v3  ;;  %v4540_v30 = vadd.low.f32.bf16 %v6305_v4, %v6304_v25  ;;  %v4541_v33 = vadd.high.f32.bf16 %v6306_v19, %v6304_v25  ;;  %3300 = vrot.lane.b32.xlu1 %v3294_v55, %s4641_s23  ;;  %v6311_v55 = vld [vmem:[#allocation6_spill] sm:$0xff] }
 0x24c   : > { %v2421_v41 = vsel %vm2233_vm14, %v2420_v15, %v2419_v17  ;;  %v4542_v61 = vadd.low.f32.bf16 %v5709_v21, %v6307_v22  ;;  %v4543_v7 = vadd.high.f32.bf16 %v5701_v53, %v6307_v22  ;;  %vm2872_vm2 = vcmp.ge.f32.partialorder %v4537_v54, 0.0  ;;  %2528 = vrot.lane.b32.xlu0 %v2522_v35, %s4634_s6  ;;  %v6312_v15 = vld [vmem:[#allocation7_spill] sm:$0xff] }
 0x24d   : > { %v2423_v62 = vsel %vm2236_vm0, %v2422_v20, %v2421_v41  ;;  %vm2873_vm3 = vcmp.ge.f32.partialorder %v4538_v5, 0.0  ;;  %vm2874_vm4 = vcmp.ge.f32.partialorder %v4539_v42, 0.0  ;;  %vm2875_vm6 = vcmp.ge.f32.partialorder %v4540_v30, 0.0 }
 0x24e   : > { %v2425_v29 = vsel %vm2239_vm11, %v2424_v38, %v2423_v62  ;;  %vm2876_vm7 = vcmp.ge.f32.partialorder %v4541_v33, 0.0  ;;  %vm2877_vm15 = vcmp.ge.f32.partialorder %v4542_v61, 0.0  ;;  %vm2878_vm1 = vcmp.ge.f32.partialorder %v4543_v7, 0.0  ;;  %v6313_v62 = vld [vmem:[#allocation22_spill] sm:$0xff] }
 0x24f   : > { %v2427_v26 = vsel %vm2242_vm8, %v2426_v31, %v2425_v29  ;;  %v2880_v39 = vmul.f32 0.1, %v4537_v54  ;;  %v2881_v16 = vmul.f32 0.1, %v4538_v5  ;;  %v2882_v9 = vmul.f32 0.1, %v4539_v42 }
 0x250   : > { %v2883_v57 = vmul.f32 0.1, %v4540_v30  ;;  %v4544_v44 = vadd.low.f32.bf16 %v6309_v36, %v6308_v27  ;;  %v2884_v10 = vmul.f32 0.1, %v4541_v33  ;;  %v2885_v60 = vmul.f32 0.1, %v4542_v61  ;;  %2431 = vrot.lane.b32.xlu0 %v2427_v26, %s4632_s25 }
 0x251   : > { %v2886_v59 = vmul.f32 0.1, %v4543_v7  ;;  %v2888_v35 = vsel %vm2872_vm2, %v4537_v54, %v2880_v39  ;;  %v2889_v52 = vsel %vm2873_vm3, %v4538_v5, %v2881_v16  ;;  %v2890_v28 = vsel %vm2874_vm4, %v4539_v42, %v2882_v9 }
 0x252   : > { %v2891_v6 = vsel %vm2875_vm6, %v4540_v30, %v2883_v57  ;;  %v2903_v51 = vrot.slane %v2888_v35, 7  ;;  %v2892_v8 = vsel %vm2876_vm7, %v4541_v33, %v2884_v10  ;;  %v2893_v32 = vsel %vm2877_vm15, %v4542_v61, %v2885_v60  ;;  %v6315_v35 = vld [vmem:[#allocation20_spill] sm:$0xff] }
 0x253   : > { %v2894_v37 = vsel %vm2878_vm1, %v4543_v7, %v2886_v59  ;;  %v2904_v24 = vrot.slane %v2889_v52, 6  ;;  %v2906_v49 = vrot.slane %v2890_v28, 5  ;;  %v2908_v13 = vrot.slane %v2891_v6, 4  ;;  %v6314_v7 = vld [vmem:[#allocation42_spill] sm:$0xff]  ;;  %v6316_v52 = vld [vmem:[#allocation41_spill] sm:$0xff] }
 0x254   : > { %v2910_v1 = vrot.slane %v2892_v8, 3  ;;  %v2912_v63 = vrot.slane %v2893_v32, 2  ;;  %v2914_v48 = vrot.slane %v2894_v37, 1  ;;  %v4545_v43 = vadd.high.f32.bf16 %v6302_v50, %v6308_v27  ;;  %v6317_v6 = vld [vmem:[#allocation50_spill] sm:$0xff]  ;;  %v6318_v37 = vld [vmem:[#allocation24_spill] sm:$0xff] }
 0x255   : > { %v2905_v45 = vsel %vm2224_vm12, %v2904_v24, %v2903_v51  ;;  %v4546_v40 = vadd.low.f32.bf16 %v5627_v0, %v6310_v12  ;;  %v4547_v47 = vadd.high.f32.bf16 %v5616_v56, %v6310_v12  ;;  %v4548_v14 = vadd.low.f32.bf16 %v6305_v4, %v6311_v55  ;;  %v6319_v24 = vld [vmem:[#allocation49_spill] sm:$0xff] }
 0x256   : > { %v2907_v2 = vsel %vm2227_vm13, %v2906_v49, %v2905_v45  ;;  %v4549_v34 = vadd.high.f32.bf16 %v6306_v19, %v6311_v55  ;;  %v4550_v20 = vadd.low.f32.bf16 %v5709_v21, %v6312_v15  ;;  %vm2289_vm9 = vcmp.ge.f32.partialorder %v4544_v44, 0.0 }
 0x257   : > { %v2909_v46 = vsel %vm2230_vm5, %v2908_v13, %v2907_v2  ;;  %vm2290_vm10 = vcmp.ge.f32.partialorder %v4545_v43, 0.0  ;;  %vm2291_vm2 = vcmp.ge.f32.partialorder %v4546_v40, 0.0  ;;  %vm2292_vm3 = vcmp.ge.f32.partialorder %v4547_v47, 0.0  ;;  %v6320_v13 = vld [vmem:[#allocation48_spill] sm:$0xff] }
 0x258   : > { %v2911_v38 = vsel %vm2233_vm14, %v2910_v1, %v2909_v46  ;;  %vm2293_vm4 = vcmp.ge.f32.partialorder %v4548_v14, 0.0  ;;  %vm2294_vm6 = vcmp.ge.f32.partialorder %v4549_v34, 0.0  ;;  %vm2295_vm7 = vcmp.ge.f32.partialorder %v4550_v20, 0.0 }
 0x259   : > { %v2913_v31 = vsel %vm2236_vm0, %v2912_v63, %v2911_v38  ;;  %v2297_v17 = vmul.f32 0.1, %v4544_v44  ;;  %v2298_v54 = vmul.f32 0.1, %v4545_v43  ;;  %v2299_v3 = vmul.f32 0.1, %v4546_v40 }
 0x25a   : > { %v2915_v23 = vsel %vm2239_vm11, %v2914_v48, %v2913_v31  ;;  %v2300_v5 = vmul.f32 0.1, %v4547_v47  ;;  %v2301_v42 = vmul.f32 0.1, %v4548_v14  ;;  %v2302_v41 = vmul.f32 0.1, %v4549_v34 }
 0x25b   : > { %2918 = vrot.lane.b32.xlu1 %v2915_v23, %s4645_s16  ;;  %v2303_v25 = vmul.f32 0.1, %v4550_v20  ;;  %v2305_v30 = vsel %vm2289_vm9, %v4544_v44, %v2297_v17  ;;  %v2306_v33 = vsel %vm2290_vm10, %v4545_v43, %v2298_v54  ;;  %v2307_v22 = vsel %vm2291_vm2, %v4546_v40, %v2299_v3 }
 0x25c   : > { %v2308_v61 = vsel %vm2292_vm3, %v4547_v47, %v2300_v5  ;;  %v4551_v29 = vadd.low.f32.bf16 %v6314_v7, %v6313_v62  ;;  %v2309_v26 = vsel %vm2293_vm4, %v4548_v14, %v2301_v42  ;;  %v2310_v39 = vsel %vm2294_vm6, %v4549_v34, %v2302_v41 }
 0x25d   : > { %v2311_v16 = vsel %vm2295_vm7, %v4550_v20, %v2303_v25  ;;  %v2321_v9 = vrot.slane %v2306_v33, 7  ;;  %v2323_v57 = vrot.slane %v2307_v22, 6  ;;  %v2325_v27 = vrot.slane %v2308_v61, 5  ;;  %v6321_v20 = vld [vmem:[#allocation26_spill] sm:$0xff]  ;;  %v6323_v61 = vld [vmem:[#allocation33_spill] sm:$0xff] }
 0x25e   : > { %v2327_v10 = vrot.slane %v2309_v26, 4  ;;  %v2329_v44 = vrot.slane %v2310_v39, 3  ;;  %v2331_v59 = vrot.slane %v2311_v16, 2  ;;  %v4552_v28 = vadd.low.f32.bf16 %v6316_v52, %v6315_v35  ;;  %v6322_v33 = vld [vmem:[#allocation30_spill] sm:$0xff] }
 0x25f   : > { %v2322_v60 = vsel %vm2227_vm13, %v2321_v9, %v2305_v30  ;;  %v4553_v51 = vadd.high.f32.bf16 %v6317_v6, %v6315_v35  ;;  %v4554_v32 = vadd.high.f32.bf16 %v5639_v18, %v6313_v62  ;;  %v4555_v49 = vadd.low.f32.bf16 %v6319_v24, %v6318_v37  ;;  %v6324_v26 = vld [vmem:[#allocation34_spill] sm:$0xff] }
 0x260   : > { %v2324_v8 = vsel %vm2230_vm5, %v2323_v57, %v2322_v60  ;;  %v4556_v1 = vadd.high.f32.bf16 %v6320_v13, %v6318_v37  ;;  %vm3158_vm15 = vcmp.ge.f32.partialorder %v4551_v29, 0.0  ;;  %vm3159_vm1 = vcmp.ge.f32.partialorder %v4552_v28, 0.0 }
 0x261   : > { %v2326_v63 = vsel %vm2233_vm14, %v2325_v27, %v2324_v8  ;;  %vm3160_vm9 = vcmp.ge.f32.partialorder %v4553_v51, 0.0  ;;  %vm3161_vm10 = vcmp.ge.f32.partialorder %v4554_v32, 0.0  ;;  %vm3162_vm2 = vcmp.ge.f32.partialorder %v4555_v49, 0.0 }
 0x262   : > { %v2328_v45 = vsel %vm2236_vm0, %v2327_v10, %v2326_v63  ;;  %vm3163_vm3 = vcmp.ge.f32.partialorder %v4556_v1, 0.0  ;;  %v3166_v43 = vmul.f32 0.1, %v4551_v29  ;;  %v3167_v12 = vmul.f32 0.1, %v4552_v28 }
 0x263   : > { %v2330_v48 = vsel %vm2239_vm11, %v2329_v44, %v2328_v45  ;;  %v3168_v40 = vmul.f32 0.1, %v4553_v51  ;;  %v3169_v47 = vmul.f32 0.1, %v4554_v32  ;;  %v3170_v55 = vmul.f32 0.1, %v4555_v49 }
 0x264   : > { %v2332_v2 = vsel %vm2242_vm8, %v2331_v59, %v2330_v48  ;;  %v3171_v14 = vmul.f32 0.1, %v4556_v1  ;;  %v3174_v34 = vsel %vm3158_vm15, %v4551_v29, %v3166_v43  ;;  %v3175_v46 = vsel %vm3159_vm1, %v4552_v28, %v3167_v12 }
 0x265   : > { %2334 = vrot.lane.b32.xlu0 %v2332_v2, %s4630_s29  ;;  %v3176_v15 = vsel %vm3160_vm9, %v4553_v51, %v3168_v40  ;;  %v4557_v38 = vadd.low.f32.bf16 %v5639_v18, %v6321_v20  ;;  %v3177_v31 = vsel %vm3161_vm10, %v4554_v32, %v3169_v47  ;;  %v3178_v17 = vsel %vm3162_vm2, %v4555_v49, %v3170_v55  ;;  %v6325_v32 = vld [vmem:[#allocation18_spill] sm:$0xff]  ;;  %v6326_v40 = vld [vmem:[#allocation19_spill] sm:$0xff]  ;;  %s3812_s29 = sshll.u32 %s5068_s8, 3 }
 0x266   : > { %v3179_v23 = vsel %vm3163_vm3, %v4556_v1, %v3171_v14  ;;  %v3190_v54 = vrot.slane %v3175_v46, 7  ;;  %v3192_v3 = vrot.slane %v3176_v15, 6  ;;  %v3194_v5 = vrot.slane %v3177_v31, 5  ;;  %v6327_v14 = vld [vmem:[#allocation21_spill] sm:$0xff]  ;;  %s6115_s7 = scalar_lea.vmem %s6180_s4, %s3812_s29 }
 0x267   : > { %v3196_v42 = vrot.slane %v3178_v17, 4  ;;  %v3198_v41 = vrot.slane %v3179_v23, 3  ;;  %v4558_v30 = vadd.high.f32.bf16 %v6319_v24, %v6321_v20  ;;  %v4559_v22 = vadd.low.f32.bf16 %v6320_v13, %v6322_v33  ;;  %v6328_v20 = vld [vmem:[#allocation23_spill] sm:$0xff] }
 0x268   : > { %v3191_v25 = vsel %vm2230_vm5, %v3190_v54, %v3174_v34  ;;  %v4560_v62 = vadd.low.f32.bf16 %v5731_v11, %v6323_v61  ;;  %v4561_v39 = vadd.low.f32.bf16 %v5722_v58, %v6324_v26  ;;  %vm3452_vm4 = vcmp.ge.f32.partialorder %v4557_v38, 0.0 }
 0x269   : > { %v3193_v29 = vsel %vm2233_vm14, %v3192_v3, %v3191_v25  ;;  %v3460_v16 = vmul.f32 0.1, %v4557_v38  ;;  %vm3453_vm6 = vcmp.ge.f32.partialorder %v4558_v30, 0.0  ;;  %vm3454_vm7 = vcmp.ge.f32.partialorder %v4559_v22, 0.0 }
 0x26a   : > { %v3195_v9 = vsel %vm2236_vm0, %v3194_v5, %v3193_v29  ;;  %vm3455_vm15 = vcmp.ge.f32.partialorder %v4560_v62, 0.0  ;;  %vm3456_vm1 = vcmp.ge.f32.partialorder %v4561_v39, 0.0  ;;  %v3461_v27 = vmul.f32 0.1, %v4558_v30 }
 0x26b   : > { %v3197_v57 = vsel %vm2239_vm11, %v3196_v42, %v3195_v9  ;;  %v3462_v10 = vmul.f32 0.1, %v4559_v22  ;;  %v3463_v60 = vmul.f32 0.1, %v4560_v62  ;;  %v3464_v59 = vmul.f32 0.1, %v4561_v39 }
 0x26c   : > { %v3199_v44 = vsel %vm2242_vm8, %v3198_v41, %v3197_v57  ;;  %v3468_v35 = vsel %vm3452_vm4, %v4557_v38, %v3460_v16  ;;  %v3469_v28 = vsel %vm3453_vm6, %v4558_v30, %v3461_v27  ;;  %v4562_v37 = vadd.low.f32.bf16 %v6314_v7, %v6325_v32  ;;  %v6329_v42 = vld [vmem:[#allocation15_spill] sm:$0xff] }
 0x26d   : > { %3203 = vrot.lane.b32.xlu1 %v3199_v44, %s4642_s24  ;;  %v3470_v51 = vsel %vm3454_vm7, %v4559_v22, %v3462_v10  ;;  %v3485_v8 = vrot.slane %v3468_v35, 5  ;;  %v3471_v49 = vsel %vm3455_vm15, %v4560_v62, %v3463_v60  ;;  %v3472_v1 = vsel %vm3456_vm1, %v4561_v39, %v3464_v59  ;;  %v6330_v35 = vld [vmem:[#allocation14_spill] sm:$0xff] }
 0x26e   : > { %v3486_v63 = vrot.slane %v3469_v28, 4  ;;  %v3488_v45 = vrot.slane %v3470_v51, 3  ;;  %v3490_v48 = vrot.slane %v3471_v49, 2  ;;  %v3492_v43 = vrot.slane %v3472_v1, 1  ;;  %v6332_v1 = vld [vmem:[#allocation16_spill] sm:$0xff] }
 0x26f   : > { %v4563_v12 = vadd.high.f32.bf16 %v6316_v52, %v6325_v32  ;;  %v4564_v2 = vadd.low.f32.bf16 %v6317_v6, %v6326_v40  ;;  %v4565_v55 = vadd.high.f32.bf16 %v5639_v18, %v6326_v40  ;;  %v4566_v34 = vadd.low.f32.bf16 %v6319_v24, %v6327_v14  ;;  %v6331_v32 = vld [vmem:[#allocation17_spill] sm:$0xff] }
 0x270   : > { %v3487_v47 = vsel %vm2224_vm12, %v3486_v63, %v3485_v8  ;;  %v4567_v46 = vadd.high.f32.bf16 %v6320_v13, %v6327_v14  ;;  %v4568_v38 = vadd.low.f32.bf16 %v5731_v11, %v6328_v20  ;;  %vm3061_vm9 = vcmp.ge.f32.partialorder %v4562_v37, 0.0 }
 0x271   : > { %v3489_v15 = vsel %vm2227_vm13, %v3488_v45, %v3487_v47  ;;  %vm3062_vm10 = vcmp.ge.f32.partialorder %v4563_v12, 0.0  ;;  %vm3063_vm2 = vcmp.ge.f32.partialorder %v4564_v2, 0.0  ;;  %vm3064_vm3 = vcmp.ge.f32.partialorder %v4565_v55, 0.0 }
 0x272   : > { %v3491_v31 = vsel %vm2230_vm5, %v3490_v48, %v3489_v15  ;;  %vm3065_vm4 = vcmp.ge.f32.partialorder %v4566_v34, 0.0  ;;  %vm3066_vm6 = vcmp.ge.f32.partialorder %v4567_v46, 0.0  ;;  %vm3067_vm7 = vcmp.ge.f32.partialorder %v4568_v38, 0.0  ;;  %v6333_v15 = vld [vmem:[#allocation35_spill] sm:$0xff] }
 0x273   : > { %v3493_v17 = vsel %vm2233_vm14, %v3492_v43, %v3491_v31  ;;  %v3069_v23 = vmul.f32 0.1, %v4562_v37  ;;  %v3070_v54 = vmul.f32 0.1, %v4563_v12  ;;  %v3071_v3 = vmul.f32 0.1, %v4564_v2 }
 0x274   : > { %3496 = vrot.lane.b32.xlu0 %v3493_v17, %s4639_s26  ;;  %v3072_v5 = vmul.f32 0.1, %v4565_v55  ;;  %v4569_v41 = vadd.low.f32.bf16 %v6314_v7, %v6329_v42  ;;  %v3073_v25 = vmul.f32 0.1, %v4566_v34  ;;  %v3074_v30 = vmul.f32 0.1, %v4567_v46 }
 0x275   : > { %v3075_v33 = vmul.f32 0.1, %v4568_v38  ;;  %v3077_v22 = vsel %vm3061_vm9, %v4562_v37, %v3069_v23  ;;  %v3078_v61 = vsel %vm3062_vm10, %v4563_v12, %v3070_v54  ;;  %v3079_v62 = vsel %vm3063_vm2, %v4564_v2, %v3071_v3 }
 0x276   : > { %v3080_v29 = vsel %vm3064_vm3, %v4565_v55, %v3072_v5  ;;  %v4570_v26 = vadd.high.f32.bf16 %v6316_v52, %v6329_v42  ;;  %v3081_v39 = vsel %vm3065_vm4, %v4566_v34, %v3073_v25  ;;  %v3082_v16 = vsel %vm3066_vm6, %v4567_v46, %v3074_v30 }
 0x277   : > { %v3083_v7 = vsel %vm3067_vm7, %v4568_v38, %v3075_v33  ;;  %v3093_v9 = vrot.slane %v3078_v61, 7  ;;  %v3095_v57 = vrot.slane %v3079_v62, 6  ;;  %v3097_v27 = vrot.slane %v3080_v29, 5  ;;  %v6334_v38 = vld [vmem:[#allocation43_spill] sm:$0xff] }
 0x278   : > { %v3099_v10 = vrot.slane %v3081_v39, 4  ;;  %v3101_v44 = vrot.slane %v3082_v16, 3  ;;  %v3103_v59 = vrot.slane %v3083_v7, 2  ;;  %v4571_v28 = vadd.low.f32.bf16 %v6317_v6, %v6330_v35 }
 0x279   : > { %v3094_v60 = vsel %vm2227_vm13, %v3093_v9, %v3077_v22  ;;  %v4572_v51 = vadd.high.f32.bf16 %v5639_v18, %v6330_v35  ;;  %v4573_v37 = vadd.low.f32.bf16 %v6319_v24, %v6331_v32  ;;  %v4574_v49 = vadd.high.f32.bf16 %v6320_v13, %v6331_v32 }
 0x27a   : > { %v3096_v8 = vsel %vm2230_vm5, %v3095_v57, %v3094_v60  ;;  %v4575_v63 = vadd.low.f32.bf16 %v5731_v11, %v6332_v1  ;;  %v4576_v48 = vadd.high.f32.bf16 %v5722_v58, %v6332_v1  ;;  %vm2968_vm15 = vcmp.ge.f32.partialorder %v4569_v41, 0.0  ;;  %v6335_v57 = vld [vmem:[#allocation27_spill] sm:$0xff] }
 0x27b   : > { %v3098_v45 = vsel %vm2233_vm14, %v3097_v27, %v3096_v8  ;;  %vm2969_vm1 = vcmp.ge.f32.partialorder %v4570_v26, 0.0  ;;  %vm2970_vm9 = vcmp.ge.f32.partialorder %v4571_v28, 0.0  ;;  %vm2971_vm10 = vcmp.ge.f32.partialorder %v4572_v51, 0.0 }
 0x27c   : > { %v3100_v43 = vsel %vm2236_vm0, %v3099_v10, %v3098_v45  ;;  %vm2972_vm2 = vcmp.ge.f32.partialorder %v4573_v37, 0.0  ;;  %vm2973_vm3 = vcmp.ge.f32.partialorder %v4574_v49, 0.0  ;;  %vm2974_vm4 = vcmp.ge.f32.partialorder %v4575_v63, 0.0  ;;  %v6338_v45 = vld [vmem:[#allocation45_spill] sm:$0xff] }
 0x27d   : > { %v3102_v12 = vsel %vm2239_vm11, %v3101_v44, %v3100_v43  ;;  %vm2975_vm6 = vcmp.ge.f32.partialorder %v4576_v48, 0.0  ;;  %v2976_v2 = vmul.f32 0.1, %v4569_v41  ;;  %v2977_v47 = vmul.f32 0.1, %v4570_v26  ;;  %v6336_v44 = vld [vmem:[#allocation31_spill] sm:$0xff] }
 0x27e   : > { %v3104_v40 = vsel %vm2242_vm8, %v3103_v59, %v3102_v12  ;;  %v2978_v55 = vmul.f32 0.1, %v4571_v28  ;;  %v2979_v14 = vmul.f32 0.1, %v4572_v51  ;;  %v2980_v34 = vmul.f32 0.1, %v4573_v37 }
 0x27f   : > { %3106 = vrot.lane.b32.xlu1 %v3104_v40, %s4643_s27  ;;  %v2981_v46 = vmul.f32 0.1, %v4574_v49  ;;  %v4577_v20 = vadd.high.f32.bf16 %v6316_v52, %v6333_v15  ;;  %vm3643_vm7 = vcmp.ge.f32.partialorder %v6334_v38, 0.0  ;;  %v2982_v31 = vmul.f32 0.1, %v4575_v63 }
 0x280   : > { %v2983_v17 = vmul.f32 0.1, %v4576_v48  ;;  %v2984_v23 = vsel %vm2968_vm15, %v4569_v41, %v2976_v2  ;;  %v2985_v54 = vsel %vm2969_vm1, %v4570_v26, %v2977_v47  ;;  %v2986_v3 = vsel %vm2970_vm9, %v4571_v28, %v2978_v55 }
 0x281   : > { %v2987_v5 = vsel %vm2971_vm10, %v4572_v51, %v2979_v14  ;;  %v2988_v42 = vsel %vm2972_vm2, %v4573_v37, %v2980_v34  ;;  %v2989_v25 = vsel %vm2973_vm3, %v4574_v49, %v2981_v46  ;;  %v2990_v30 = vsel %vm2974_vm4, %v4575_v63, %v2982_v31  ;;  %v6337_v37 = vld [vmem:[#allocation37_spill] sm:$0xff]  ;;  %v6339_v34 = vld [vmem:[#allocation44_spill] sm:$0xff] }
 0x282   : > { %v2991_v33 = vsel %vm2975_vm6, %v4576_v48, %v2983_v17  ;;  %v3000_v22 = vrot.slane %v2985_v54, 7  ;;  %v3002_v61 = vrot.slane %v2986_v3, 6  ;;  %v3004_v62 = vrot.slane %v2987_v5, 5  ;;  %v6340_v17 = vld [vmem:[#allocation28_spill] sm:$0xff] }
 0x283   : > { %v3006_v29 = vrot.slane %v2988_v42, 4  ;;  %v3008_v39 = vrot.slane %v2989_v25, 3  ;;  %v3010_v41 = vrot.slane %v2990_v30, 2  ;;  %v3012_v16 = vrot.slane %v2991_v33, 1 }
 0x284   : > { %v3001_v26 = vsel %vm2224_vm12, %v3000_v22, %v2984_v23  ;;  %vm3547_vm15 = vcmp.ge.f32.partialorder %v4577_v20, 0.0  ;;  %v3555_v7 = vmul.f32 0.1, %v4577_v20  ;;  %v4578_v27 = vadd.low.f32.bf16 %v6317_v6, %v6335_v57 }
 0x285   : > { %v3003_v9 = vsel %vm2227_vm13, %v3002_v61, %v3001_v26  ;;  %v4579_v10 = vadd.high.f32.bf16 %v5639_v18, %v6335_v57  ;;  %v4580_v60 = vadd.low.f32.bf16 %v6319_v24, %v6336_v44  ;;  %v4581_v28 = vadd.high.f32.bf16 %v6320_v13, %v6336_v44 }
 0x286   : > { %v3005_v59 = vsel %vm2230_vm5, %v3004_v62, %v3003_v9  ;;  %v3563_v35 = vsel %vm3547_vm15, %v4577_v20, %v3555_v7  ;;  %v4582_v51 = vadd.low.f32.bf16 %v5731_v11, %v6333_v15  ;;  %v3545_v49 = vadd.f32 %v6337_v37, %v5722_v58  ;;  %v6341_v62 = vld [vmem:[#allocation32_spill] sm:$0xff]  ;;  %v6343_v7 = vld [vmem:[#allocation38_spill] sm:$0xff] }
 0x287   : > { %v3007_v8 = vsel %vm2233_vm14, %v3006_v29, %v3005_v59  ;;  %v3578_v32 = vrot.slane %v3563_v35, 7  ;;  %vm3548_vm1 = vcmp.ge.f32.partialorder %v4578_v27, 0.0  ;;  %vm3549_vm9 = vcmp.ge.f32.partialorder %v4579_v10, 0.0 }
 0x288   : > { %v3009_v1 = vsel %vm2236_vm0, %v3008_v39, %v3007_v8  ;;  %vm3550_vm10 = vcmp.ge.f32.partialorder %v4580_v60, 0.0  ;;  %vm3551_vm2 = vcmp.ge.f32.partialorder %v4581_v28, 0.0  ;;  %vm3552_vm3 = vcmp.ge.f32.partialorder %v4582_v51, 0.0 }
 0x289   : > { %v3011_v63 = vsel %vm2239_vm11, %v3010_v41, %v3009_v1  ;;  %v3579_v48 = vsel %vm2242_vm8, %v3578_v32, %v6338_v45  ;;  %vm3553_vm4 = vcmp.ge.f32.partialorder %v3545_v49, 0.0  ;;  %v3556_v12 = vmul.f32 0.1, %v4578_v27  ;;  %v6342_v41 = vld [vmem:[#allocation36_spill] sm:$0xff]  ;;  %v2165_v32 = vld [vmem:[%s5089_s13] sm:$0xf] }
 0x28a   : > { %v3013_v43 = vsel %vm2242_vm8, %v3012_v16, %v3011_v63  ;;  %3591 = vrot.lane.b32.xlu1 %v3579_v48, %s4638_s28  ;;  %v3557_v40 = vmul.f32 0.1, %v4579_v10  ;;  %v3558_v2 = vmul.f32 0.1, %v4580_v60  ;;  %v3559_v47 = vmul.f32 0.1, %v4581_v28 }
 0x28b   : > { %3014 = vrot.lane.b32.xlu0 %v3013_v43, %s4644_s5  ;;  %v3560_v55 = vmul.f32 0.1, %v4582_v51  ;;  %v3561_v14 = vmul.f32 0.1, %v3545_v49  ;;  %v3659_v46 = vsel %vm3643_vm7, %v6334_v38, %v6339_v34  ;;  %v3564_v15 = vsel %vm3548_vm1, %v4578_v27, %v3556_v12 }
 0x28c   : > { %v3565_v20 = vsel %vm3549_vm9, %v4579_v10, %v3557_v40  ;;  %v3566_v31 = vsel %vm3550_vm10, %v4580_v60, %v3558_v2  ;;  %v4583_v23 = vadd.low.f32.bf16 %v6316_v52, %v6340_v17  ;;  %v3567_v54 = vsel %vm3551_vm2, %v4581_v28, %v3559_v47 }
 0x28d   : > { %v3568_v3 = vsel %vm3552_vm3, %v4582_v51, %v3560_v55  ;;  %v3569_v5 = vsel %vm3553_vm4, %v3545_v49, %v3561_v14  ;;  %v3580_v42 = vrot.slane %v3564_v15, 6  ;;  %v3581_v25 = vrot.slane %v3565_v20, 5 }
 0x28e   : > { %v3583_v30 = vrot.slane %v3566_v31, 4  ;;  %v3585_v33 = vrot.slane %v3567_v54, 3  ;;  %v3587_v38 = vrot.slane %v3568_v3, 2  ;;  %3688 = vrot.lane.b32.xlu1 %v3659_v46, %s4637_s14  ;;  %v3589_v22 = vrot.slane %v3569_v5, 1  ;;  %v6093_v3 = vpop.permute.xlu0 %2916 }
 0x28f   : > { %v4584_v61 = vadd.high.f32.bf16 %v6317_v6, %v6340_v17  ;;  %v4585_v52 = vadd.low.f32.bf16 %v5639_v18, %v6341_v62  ;;  %v4586_v29 = vadd.high.f32.bf16 %v6319_v24, %v6341_v62  ;;  %v3582_v39 = vsel %vm2224_vm12, %v3581_v25, %v3580_v42 }
 0x290   : > { %v4587_v26 = vadd.low.f32.bf16 %v6320_v13, %v6342_v41  ;;  %v4588_v16 = vadd.high.f32.bf16 %v5731_v11, %v6342_v41  ;;  %v3642_v9 = vadd.f32 %v6343_v7, %v5722_v58  ;;  %v3584_v57 = vsel %vm2227_vm13, %v3583_v30, %v3582_v39 }
 0x291   : > { %vm3644_vm6 = vcmp.ge.f32.partialorder %v4583_v23, 0.0  ;;  %vm3645_vm7 = vcmp.ge.f32.partialorder %v4584_v61, 0.0  ;;  %vm3646_vm15 = vcmp.ge.f32.partialorder %v4585_v52, 0.0  ;;  %v3586_v18 = vsel %vm2230_vm5, %v3585_v33, %v3584_v57 }
 0x292   : > { %vm3647_vm1 = vcmp.ge.f32.partialorder %v4586_v29, 0.0  ;;  %vm3648_vm9 = vcmp.ge.f32.partialorder %v4587_v26, 0.0  ;;  %vm3649_vm10 = vcmp.ge.f32.partialorder %v4588_v16, 0.0  ;;  %v3588_v6 = vsel %vm2233_vm14, %v3587_v38, %v3586_v18 }
 0x293   : > { %vm3650_vm2 = vcmp.ge.f32.partialorder %v3642_v9, 0.0  ;;  %v3652_v24 = vmul.f32 0.1, %v4583_v23  ;;  %v3653_v13 = vmul.f32 0.1, %v4584_v61  ;;  %v3590_v11 = vsel %vm2236_vm0, %v3589_v22, %v3588_v6 }
 0x294   : > { %v3654_v27 = vmul.f32 0.1, %v4585_v52  ;;  %v3655_v58 = vmul.f32 0.1, %v4586_v29  ;;  %v3656_v10 = vmul.f32 0.1, %v4587_v26  ;;  %3593 = vrot.lane.b32.xlu0 %v3590_v11, %s4638_s28  ;;  %v2166_v40 = vunpack.c.l.bf16 %v2165_v32 }
 0x295   : > { %v3657_v44 = vmul.f32 0.1, %v4588_v16  ;;  %v3658_v60 = vmul.f32 0.1, %v3642_v9  ;;  %v3660_v59 = vsel %vm3644_vm6, %v4583_v23, %v3652_v24  ;;  %v3661_v35 = vsel %vm3645_vm7, %v4584_v61, %v3653_v13 }
 0x296   : > { %v3662_v28 = vsel %vm3646_vm15, %v4585_v52, %v3654_v27  ;;  %v3663_v51 = vsel %vm3647_vm1, %v4586_v29, %v3655_v58  ;;  %v3664_v8 = vsel %vm3648_vm9, %v4587_v26, %v3656_v10  ;;  %v3675_v1 = vrot.slane %v3660_v59, 7 }
 0x297   : > { %v3665_v37 = vsel %vm3649_vm10, %v4588_v16, %v3657_v44  ;;  %v3666_v49 = vsel %vm3650_vm2, %v3642_v9, %v3658_v60  ;;  %v3676_v63 = vrot.slane %v3661_v35, 6  ;;  %v3678_v45 = vrot.slane %v3662_v28, 5 }
 0x298   : > { %v3680_v43 = vrot.slane %v3663_v51, 4  ;;  %v3684_v12 = vrot.slane %v3665_v37, 2  ;;  %v3682_v47 = vrot.slane %v3664_v8, 3  ;;  %v3686_v55 = vrot.slane %v3666_v49, 1 }
 0x299   : > { %v3677_v48 = vsel %vm2224_vm12, %v3676_v63, %v3675_v1  ;;  %v2168_v34 = vrot.slane %v2166_v40, 1  ;;  %v2169_v46 = vrot.slane %v2166_v40, 2  ;;  %v2170_v15 = vrot.slane %v2166_v40, 3 }
 0x29a   : > { %v3679_v2 = vsel %vm2227_vm13, %v3678_v45, %v3677_v48  ;;  %v2171_v31 = vrot.slane %v2166_v40, 4  ;;  %v2172_v17 = vrot.slane %v2166_v40, 5  ;;  %v2173_v23 = vrot.slane %v2166_v40, 6 }
 0x29b   : > { %v3681_v14 = vsel %vm2230_vm5, %v3680_v43, %v3679_v2  ;;  %v2174_v5 = vrot.slane %v2166_v40, 7  ;;  %v2183_v42 = vadd.f32 %v2166_v40, %v6309_v36  ;;  %v2184_v25 = vadd.f32 %v2168_v34, %v6302_v50  ;;  %v2337_v6 = vpop.permute.xlu1 %2336 }
 0x29c   : > { %v3683_v20 = vsel %vm2233_vm14, %v3682_v47, %v3681_v14  ;;  %v2187_v33 = vadd.f32 %v2171_v31, %v6305_v4  ;;  %v2188_v38 = vadd.f32 %v2172_v17, %v6306_v19  ;;  %v2185_v22 = vadd.f32 %v2169_v46, %v5627_v0 }
 0x29d   : > { %v3685_v54 = vsel %vm2236_vm0, %v3684_v12, %v3683_v20  ;;  %v2186_v61 = vadd.f32 %v2170_v15, %v5616_v56  ;;  %v2189_v62 = vadd.f32 %v2173_v23, %v5709_v21  ;;  %v2190_v36 = vadd.f32 %v2174_v5, %v5701_v53  ;;  %v6105_v50 = vpop.permute.xlu0 %3108 }
 0x29e   : > { %v3687_v30 = vsel %vm2239_vm11, %v3686_v55, %v3685_v54  ;;  %v2203_v52 = vmul.f32 0.1, %v2187_v33  ;;  %vm2195_vm3 = vcmp.ge.f32.partialorder %v2187_v33, 0.0  ;;  %vm2191_vm4 = vcmp.ge.f32.partialorder %v2183_v42, 0.0 }
 0x29f   : > { %3690 = vrot.lane.b32.xlu0 %v3687_v30, %s4637_s14  ;;  %v2204_v29 = vmul.f32 0.1, %v2188_v38  ;;  %vm2192_vm6 = vcmp.ge.f32.partialorder %v2184_v25, 0.0  ;;  %vm2193_vm7 = vcmp.ge.f32.partialorder %v2185_v22, 0.0  ;;  %v2199_v4 = vmul.f32 0.1, %v2183_v42  ;;  %v2434_v37 = vpop.permute.xlu1 %2433 }
 0x2a0   : > { %vm2194_vm15 = vcmp.ge.f32.partialorder %v2186_v61, 0.0  ;;  %vm2197_vm1 = vcmp.ge.f32.partialorder %v2189_v62, 0.0  ;;  %v2200_v0 = vmul.f32 0.1, %v2184_v25  ;;  %v2201_v19 = vmul.f32 0.1, %v2185_v22 }
 0x2a1   : > { %vm2196_vm9 = vcmp.ge.f32.partialorder %v2188_v38, 0.0  ;;  %v2211_v39 = vsel %vm2195_vm3, %v2187_v33, %v2203_v52  ;;  %v2202_v56 = vmul.f32 0.1, %v2186_v61  ;;  %v2205_v21 = vmul.f32 0.1, %v2189_v62  ;;  %v2820_v13 = vpop.permute.xlu0 %2819 }
 0x2a2   : > { %v2206_v41 = vmul.f32 0.1, %v2190_v36  ;;  %v2207_v26 = vsel %vm2191_vm4, %v2183_v42, %v2199_v4  ;;  %v2208_v16 = vsel %vm2192_vm6, %v2184_v25, %v2200_v0  ;;  %v2209_v53 = vsel %vm2193_vm7, %v2185_v22, %v2201_v19 }
 0x2a3   : > { %vm2198_vm10 = vcmp.ge.f32.partialorder %v2190_v36, 0.0  ;;  %v2210_v7 = vsel %vm2194_vm15, %v2186_v61, %v2202_v56  ;;  %v2213_v9 = vsel %vm2197_vm1, %v2189_v62, %v2205_v21  ;;  %v2223_v57 = vrot.slane %v2208_v16, 7  ;;  %v2531_v63 = vpop.permute.xlu1 %2530 }
 0x2a4   : > { %v2212_v18 = vsel %vm2196_vm9, %v2188_v38, %v2204_v29  ;;  %v2226_v24 = vrot.slane %v2209_v53, 6  ;;  %v2229_v27 = vrot.slane %v2210_v7, 5  ;;  %v2232_v58 = vrot.slane %v2211_v39, 4 }
 0x2a5   : > { %v2225_v11 = vsel %vm2224_vm12, %v2223_v57, %v2207_v26  ;;  %v2214_v10 = vsel %vm2198_vm10, %v2190_v36, %v2206_v41  ;;  %v2238_v60 = vrot.slane %v2213_v9, 2  ;;  %v2235_v59 = vrot.slane %v2212_v18, 3  ;;  %v6119_v49 = vpop.permute.xlu0 %3205 }
 0x2a6   : > { %v2228_v44 = vsel %vm2227_vm13, %v2226_v24, %v2225_v11  ;;  %vm2245_vm12 = vcmask 64512   ;;  %v2241_v8 = vrot.slane %v2214_v10, 1  ;;  %vm2342_vm2 = vcmask 122944  }
 0x2a7   : > { %v2231_v35 = vsel %vm2230_vm5, %v2229_v27, %v2228_v44  ;;  %v2628_v48 = vpop.permute.xlu1 %2627  ;;  %vm2536_vm13 = vcmask 256192   ;;  %vm2631_vm5 = vcmask 326916   ;;  %vm2633_vm3 = vcmask 322816  }
 0x2a8   : > { %v2234_v28 = vsel %vm2233_vm14, %v2232_v58, %v2231_v35  ;;  %vm2534_vm14 = vcmask 261315   ;;  %vm2728_vm4 = vcmask 392517   ;;  %vm2730_vm6 = vcmask 389440  }
 0x2a9   : > { %v2237_v51 = vsel %vm2236_vm0, %v2235_v59, %v2234_v28  ;;  %vm2439_vm0 = vcmask 189568   ;;  %vm2825_vm7 = vcmask 458118   ;;  %vm2827_vm15 = vcmask 456064  }
 0x2aa   : > { %v2240_v32 = vsel %vm2239_vm11, %v2238_v60, %v2237_v51  ;;  %vm2437_vm11 = vcmask 195714   ;;  %vm2922_vm1 = vcmask 523719   ;;  %vm2924_vm9 = vcmask 522688  }
 0x2ab   : > { %v2243_v1 = vsel %vm2242_vm8, %v2241_v8, %v2240_v32  ;;  %vm2340_vm8 = vcmask 130113   ;;  %vm3017_vm10 = vcmask 589312  }
 0x2ac   : > { %2246 = vst.msk [vmem:[%s6115_s7] sm:$0xff] %vm2245_vm12, %v2243_v1  ;;  %v3303_v45 = vpop.permute.xlu0 %3302  ;;  %vm3112_vm12 = vcmask 654913  }
 0x2ad   : > { %2343 = vst.msk [vmem:[%s6115_s7 + $0x7] sm:$0x1] %vm2342_vm2, %v2337_v6  ;;  %v2725_v12 = vpop.permute.xlu1 %2724  ;;  %vm3114_vm2 = vcmask 647744  }
 0x2b1   : > { %v6126_v2 = vpop.permute.xlu1 %3494 }
 0x2b2   : > { %v6124_v43 = vpop.permute.xlu0 %3399 }
 0x2b5   : > { %v3398_v55 = vpop.permute.xlu1 %3397 }
 0x2b6   : > { %v2723_v40 = vpop.permute.xlu0 %2722 }
 0x2b9   : > { %v2822_v34 = vpop.permute.xlu1 %2821 }
 0x2ba   : > { %v2626_v47 = vpop.permute.xlu0 %2625 }
 0x2bd   : > { %v3301_v15 = vpop.permute.xlu1 %3300 }
 0x2be   : > { %v2529_v14 = vpop.permute.xlu0 %2528 }
 0x2c2   : > { %v2432_v46 = vpop.permute.xlu0 %2431 }
 0x2cd   : > { %v2919_v31 = vpop.permute.xlu1 %2918 }
 0x2d7   : > { %v2335_v20 = vpop.permute.xlu0 %2334 }
 0x2d8   : > { %2341 = vst.msk [vmem:[%s6115_s7 - $0x1] sm:$0xfe] %vm2340_vm8, %v2335_v20  ;;  %vm3209_vm8 = vcmask 720514  }
 0x2d9   : > { %2438 = vst.msk [vmem:[%s6115_s7 - $0x2] sm:$0xfc] %vm2437_vm11, %v2432_v46  ;;  %vm3211_vm11 = vcmask 714368  }
 0x2da   : > { %2440 = vst.msk [vmem:[%s6115_s7 + $0x6] sm:$0x3] %vm2439_vm0, %v2434_v37  ;;  %vm3308_vm0 = vcmask 780992  }
 0x2db   : > { %2535 = vst.msk [vmem:[%s6115_s7 - $0x3] sm:$0xf8] %vm2534_vm14, %v2529_v14  ;;  %vm3306_vm14 = vcmask 786115  }
 0x2dc   : > { %2537 = vst.msk [vmem:[%s6115_s7 + $0x5] sm:$0x7] %vm2536_vm13, %v2531_v63  ;;  %vm3403_vm13 = vcmask 851716  }
 0x2dd   : > { %2632 = vst.msk [vmem:[%s6115_s7 - $0x4] sm:$0xf0] %vm2631_vm5, %v2626_v47  ;;  %vm3405_vm5 = vcmask 847616  }
 0x2de   : > { %2634 = vst.msk [vmem:[%s6115_s7 + $0x4] sm:$0xf] %vm2633_vm3, %v2628_v48  ;;  %vm3500_vm3 = vcmask 917317  }
 0x2df   : > { %2729 = vst.msk [vmem:[%s6115_s7 - $0x5] sm:$0xe0] %vm2728_vm4, %v2723_v40  ;;  %v3204_v17 = vpop.permute.xlu1 %3203  ;;  %vm3502_vm4 = vcmask 914240  }
 0x2e0   : > { %2731 = vst.msk [vmem:[%s6115_s7 + $0x3] sm:$0x1f] %vm2730_vm6, %v2725_v12  ;;  %vm3597_vm6 = vcmask 982918  }
 0x2e1   : > { %2826 = vst.msk [vmem:[%s6115_s7 - $0x6] sm:$0xc0] %vm2825_vm7, %v2820_v13  ;;  %vm3694_vm7 = vcmask 1048519  }
 0x2e2   : > { %2828 = vst.msk [vmem:[%s6115_s7 + $0x2] sm:$0x3f] %vm2827_vm15, %v2822_v34  ;;  %vm3599_vm15 = vcmask 980864  }
 0x2e3   : > { %2923 = vst.msk [vmem:[%s6115_s7 - $0x7] sm:$0x80] %vm2922_vm1, %v6093_v3  ;;  %vm3696_vm1 = vcmask 1047488  }
 0x2e4   : > { %2925 = vst.msk [vmem:[%s6115_s7 + $0x1] sm:$0x7f] %vm2924_vm9, %v2919_v31 }
 0x2e6   : > { %v3497_v54 = vpop.permute.xlu0 %3496 }
 0x2f1   : > { %v3107_v23 = vpop.permute.xlu1 %3106 }
 0x2fc   : > { %v3592_v5 = vpop.permute.xlu1 %3591 }
 0x2fd   : > { %v3015_v42 = vpop.permute.xlu0 %3014 }
 0x2fe   : > { %3018 = vst.msk [vmem:[%s6115_s7] sm:$0xff] %vm3017_vm10, %v3015_v42 }
 0x2ff   : > { %3113 = vst.msk [vmem:[%s6115_s7 - $0x1] sm:$0xfe] %vm3112_vm12, %v3107_v23 }
 0x300   : > { %3115 = vst.msk [vmem:[%s6115_s7 + $0x7] sm:$0x1] %vm3114_vm2, %v6105_v50  ;;  %v3689_v3 = vpop.permute.xlu1 %3688 }
 0x301   : > { %3210 = vst.msk [vmem:[%s6115_s7 - $0x2] sm:$0xfc] %vm3209_vm8, %v3204_v17 }
 0x302   : > { %3212 = vst.msk [vmem:[%s6115_s7 + $0x6] sm:$0x3] %vm3211_vm11, %v6119_v49 }
 0x303   : > { %3309 = vst.msk [vmem:[%s6115_s7 + $0x5] sm:$0x7] %vm3308_vm0, %v3303_v45 }
 0x304   : > { %3307 = vst.msk [vmem:[%s6115_s7 - $0x3] sm:$0xf8] %vm3306_vm14, %v3301_v15 }
 0x305   : > { %3404 = vst.msk [vmem:[%s6115_s7 - $0x4] sm:$0xf0] %vm3403_vm13, %v3398_v55 }
 0x306   : > { %3406 = vst.msk [vmem:[%s6115_s7 + $0x4] sm:$0xf] %vm3405_vm5, %v6124_v43  ;;  %v3594_v25 = vpop.permute.xlu0 %3593 }
 0x307   : > { %3501 = vst.msk [vmem:[%s6115_s7 - $0x5] sm:$0xe0] %vm3500_vm3, %v6126_v2 }
 0x308   : > { %3503 = vst.msk [vmem:[%s6115_s7 + $0x3] sm:$0x1f] %vm3502_vm4, %v3497_v54 }
 0x309   : > { %3598 = vst.msk [vmem:[%s6115_s7 - $0x6] sm:$0xc0] %vm3597_vm6, %v3592_v5 }
 0x30a   : > { %3695 = vst.msk [vmem:[%s6115_s7 - $0x7] sm:$0x80] %vm3694_vm7, %v3689_v3 }
 0x30b   : > { %3600 = vst.msk [vmem:[%s6115_s7 + $0x2] sm:$0x3f] %vm3599_vm15, %v3594_v25 }
 0x311   : > { %v3691_v30 = vpop.permute.xlu0 %3690 }
 0x312   : > { %3697 = vst.msk [vmem:[%s6115_s7 + $0x1] sm:$0x7f] %vm3696_vm1, %v3691_v30 }
 0x313 PF: > { %s14_s19 = sadd.s32 1, %s4627_s19   ;;  %s6344_s15 = smov %s4619_s17 }
 0x314   : > { %p11_p13 = scmp.ge.s32.totalorder %s14_s19, 6   ;;  %s6345_s16 = smov %s4623_s18 }
 0x315   : > { %s6346_s17 = smov %s6349_s20  ;;  %s6347_s18 = smov %s6353_s21 }
 0x316   :  { %13 = sbr.rel (!%p11_p13) target bundleno = 3 (0x3), region = 75 }

</bundles_post_ra>
